<compile_context>
chip_gen: v7x
topology: tpu7x:2x2x1
jax: 0.10.0
libtpu: 0.0.40
codegen_flags: <defaults>
</compile_context>

<pallas_src>
import functools
import math

import jax
import jax.numpy as jnp
from jax import lax
from jax.experimental import pallas as pl
from jax.experimental.pallas import tpu as pltpu


# ----------------------------------------------------------------------------
# Kernel: one (batch element, layer) step.  Output block is the layer carry.
# ----------------------------------------------------------------------------
def decoder_kernel(
    tgt_ref, qpos_ref, mem_ref, pos_ref,
    sa_w_ref, sa_b_ref, sa_wo_ref, sa_bo_ref,
    ca_w_ref, ca_b_ref, ca_wo_ref, ca_bo_ref,
    l1_w_ref, l1_b_ref, l2_w_ref, l2_b_ref,
    n1_g_ref, n1_b_ref, n2_g_ref, n2_b_ref, n3_g_ref, n3_b_ref,
    out_ref,
    *, nhead,
):
    f32 = jnp.float32
    bf16 = jnp.bfloat16
    D = tgt_ref.shape[-1]
    layer = pl.program_id(1)

    # Layer 0: seed the VMEM-resident carry.  The output block index is constant
    # across the (arbitrary, innermost) layer axis, so the block stays resident
    # in VMEM until the batch index changes.
    @pl.when(layer == 0)
    def _():
        out_ref[0] = tgt_ref[0]

    x = out_ref[0].astype(f32)        # (Lq, D) running activation
    qpos = qpos_ref[0].astype(f32)    # (Lq, D)
    mem = mem_ref[0].astype(f32)      # (Lm, D)
    pos = pos_ref[0].astype(f32)      # (Lm, D)

    def layernorm(v, g_ref, b_ref):
        mu = jnp.mean(v, axis=-1, keepdims=True)
        c = v - mu
        var = jnp.mean(c * c, axis=-1, keepdims=True)
        return c * lax.rsqrt(var + 1e-5) * g_ref[0] + b_ref[0]

    def softmax(s):  # f32 in / f32 out, denominator on the EUP
        s = s - jnp.max(s, axis=-1, keepdims=True)
        p = jnp.exp(s)
        return p * pl.reciprocal(jnp.sum(p, axis=-1, keepdims=True), approx=True)

    # q @ k^T without materializing a transpose.
    dn_nt = (((1,), (1,)), ((), ()))

    def mha(q_in, k_in, v_in, w_ref, b_ref, wo_ref, bo_ref):
        # w_ref : (1, 3*nhead, D, hd)  pre-transposed per-head [q | k | v] projections
        #         (1/sqrt(hd) already folded into the q block)
        # b_ref : (1, 3*nhead, 1, hd)  matching biases (q bias also pre-scaled)
        # wo_ref: (1, nhead, hd, D)    pre-transposed per-head output projection
        # bo_ref: (1, 1, D)
        q_b = q_in.astype(bf16)
        k_b = k_in.astype(bf16)
        v_b = v_in.astype(bf16)
        out = jnp.zeros((q_in.shape[0], D), f32)
        for h in range(nhead):           # unrolled at trace time (nhead is static)
            qh = jnp.dot(q_b, w_ref[0, h], preferred_element_type=f32) + b_ref[0, h]
            kh = jnp.dot(k_b, w_ref[0, nhead + h], preferred_element_type=f32) + b_ref[0, nhead + h]
            vh = jnp.dot(v_b, w_ref[0, 2 * nhead + h], preferred_element_type=f32) + b_ref[0, 2 * nhead + h]
            s = lax.dot_general(qh.astype(bf16), kh.astype(bf16), dn_nt,
                                preferred_element_type=f32)                # (Lq, Lk)
            p = softmax(s).astype(bf16)
            oh = jnp.dot(p, vh.astype(bf16), preferred_element_type=f32)   # (Lq, hd)
            # Accumulate this head's output-projection contribution (no lane concat).
            out = out + jnp.dot(oh.astype(bf16), wo_ref[0, h],
                                preferred_element_type=f32)                # (Lq, D)
        return out + bo_ref[0]

    # --- self attention -------------------------------------------------------
    qk = x + qpos
    sa = mha(qk, qk, x, sa_w_ref, sa_b_ref, sa_wo_ref, sa_bo_ref)
    x = layernorm(x + sa, n1_g_ref, n1_b_ref)

    # --- cross attention ------------------------------------------------------
    ca = mha(x + qpos, mem + pos, mem, ca_w_ref, ca_b_ref, ca_wo_ref, ca_bo_ref)
    x = layernorm(x + ca, n2_g_ref, n2_b_ref)

    # --- feed-forward ---------------------------------------------------------
    h1 = jnp.dot(x.astype(bf16), l1_w_ref[0], preferred_element_type=f32) + l1_b_ref[0]
    h1 = jnp.maximum(h1, 0.0)
    ff = jnp.dot(h1.astype(bf16), l2_w_ref[0], preferred_element_type=f32) + l2_b_ref[0]
    x = layernorm(x + ff, n3_g_ref, n3_b_ref)

    out_ref[0] = x.astype(out_ref.dtype)


# ----------------------------------------------------------------------------
# Wrapper: single pallas_call over (batch, num_layers)
# ----------------------------------------------------------------------------
def transformer_decoder(tgt, memory, pos, query_pos, params, *, nhead):
    B, Lq, D = tgt.shape
    Lm = memory.shape[1]
    num_layers = params["sa_w"].shape[0]

    def act_spec(Ls):
        # Constant block index along the layer axis -> no re-DMA per layer.
        return pl.BlockSpec((1, Ls, D), lambda b, l: (b, 0, 0))

    def w_spec(shape):
        nd = len(shape)
        return pl.BlockSpec((1,) + tuple(shape[1:]),
                            lambda b, l, _nd=nd: (l,) + (0,) * (_nd - 1))

    weight_names = [
        "sa_w", "sa_b", "sa_wo", "sa_bo",
        "ca_w", "ca_b", "ca_wo", "ca_bo",
        "l1_w", "l1_b", "l2_w", "l2_b",
        "n1_g", "n1_b", "n2_g", "n2_b", "n3_g", "n3_b",
    ]
    inputs = [tgt, query_pos, memory, pos] + [params[n] for n in weight_names]
    in_specs = [act_spec(Lq), act_spec(Lq), act_spec(Lm), act_spec(Lm)] + [
        w_spec(params[n].shape) for n in weight_names
    ]

    return pl.pallas_call(
        functools.partial(decoder_kernel, nhead=nhead),
        out_shape=jax.ShapeDtypeStruct((B, Lq, D), jnp.float32),
        grid_spec=pltpu.PrefetchScalarGridSpec(
            num_scalar_prefetch=0,
            grid=(B, num_layers),
            in_specs=in_specs,
            out_specs=pl.BlockSpec((1, Lq, D), lambda b, l: (b, 0, 0)),
        ),
        compiler_params=pltpu.CompilerParams(
            dimension_semantics=("parallel", "arbitrary"),
        ),
    )(*inputs)


# ----------------------------------------------------------------------------
# Host-side parameter construction & layout preparation
# ----------------------------------------------------------------------------
def make_layer_params(key, d_model, dim_ff):
    """Parameters in PyTorch layout (nn.MultiheadAttention packed weights)."""
    ks = jax.random.split(key, 10)
    std = 0.02
    f32 = jnp.float32
    return {
        "sa_in_w":  jax.random.normal(ks[0], (3 * d_model, d_model), f32) * std,
        "sa_in_b":  jax.random.normal(ks[1], (3 * d_model,), f32) * std,
        "sa_out_w": jax.random.normal(ks[2], (d_model, d_model), f32) * std,
        "sa_out_b": jax.random.normal(ks[3], (d_model,), f32) * std,
        "ca_in_w":  jax.random.normal(ks[4], (3 * d_model, d_model), f32) * std,
        "ca_in_b":  jax.random.normal(ks[5], (3 * d_model,), f32) * std,
        "ca_out_w": jax.random.normal(ks[6], (d_model, d_model), f32) * std,
        "ca_out_b": jax.random.normal(ks[7], (d_model,), f32) * std,
        "l1_w": jax.random.normal(ks[8], (dim_ff, d_model), f32) * std,
        "l1_b": jnp.zeros((dim_ff,), f32),
        "l2_w": jax.random.normal(ks[9], (d_model, dim_ff), f32) * std,
        "l2_b": jnp.zeros((d_model,), f32),
        "n1_g": jnp.ones((d_model,), f32), "n1_b": jnp.zeros((d_model,), f32),
        "n2_g": jnp.ones((d_model,), f32), "n2_b": jnp.zeros((d_model,), f32),
        "n3_g": jnp.ones((d_model,), f32), "n3_b": jnp.zeros((d_model,), f32),
    }


def _prep_attn(w_in, b_in, w_out, b_out, nhead):
    """PyTorch packed attention weights -> per-head, pre-transposed, scale-folded."""
    D = w_out.shape[0]
    hd = D // nhead
    scale = 1.0 / math.sqrt(hd)

    def split(w, b, s):
        # y = x @ w.T + b ; w: (D, D).  Kernel computes x @ w_h with w_h (D, hd).
        wt = (w.T * s).reshape(D, nhead, hd).transpose(1, 0, 2)   # (nhead, D, hd)
        bh = (b * s).reshape(nhead, 1, hd)                        # (nhead, 1, hd)
        return wt, bh

    wq, bq = split(w_in[0:D], b_in[0:D], scale)          # scale folded into q
    wk, bk = split(w_in[D:2 * D], b_in[D:2 * D], 1.0)
    wv, bv = split(w_in[2 * D:3 * D], b_in[2 * D:3 * D], 1.0)
    w_qkv = jnp.concatenate([wq, wk, wv], axis=0)        # (3*nhead, D, hd)
    b_qkv = jnp.concatenate([bq, bk, bv], axis=0)        # (3*nhead, 1, hd)
    wo = w_out.T.reshape(nhead, hd, D)                   # (nhead, hd, D)
    bo = b_out.reshape(1, D)
    return w_qkv, b_qkv, wo, bo


def prepare_params(layer_params, nhead):
    """Convert per-layer PyTorch-layout params to the stacked kernel layout."""
    bf16 = jnp.bfloat16
    per_layer = []
    for p in layer_params:
        sa_w, sa_b, sa_wo, sa_bo = _prep_attn(p["sa_in_w"], p["sa_in_b"],
                                              p["sa_out_w"], p["sa_out_b"], nhead)
        ca_w, ca_b, ca_wo, ca_bo = _prep_attn(p["ca_in_w"], p["ca_in_b"],
                                              p["ca_out_w"], p["ca_out_b"], nhead)
        per_layer.append({
            "sa_w": sa_w.astype(bf16), "sa_b": sa_b,
            "sa_wo": sa_wo.astype(bf16), "sa_bo": sa_bo,
            "ca_w": ca_w.astype(bf16), "ca_b": ca_b,
            "ca_wo": ca_wo.astype(bf16), "ca_bo": ca_bo,
            "l1_w": p["l1_w"].T.astype(bf16), "l1_b": p["l1_b"].reshape(1, -1),
            "l2_w": p["l2_w"].T.astype(bf16), "l2_b": p["l2_b"].reshape(1, -1),
            "n1_g": p["n1_g"].reshape(1, -1), "n1_b": p["n1_b"].reshape(1, -1),
            "n2_g": p["n2_g"].reshape(1, -1), "n2_b": p["n2_b"].reshape(1, -1),
            "n3_g": p["n3_g"].reshape(1, -1), "n3_b": p["n3_b"].reshape(1, -1),
        })
    return {k: jnp.stack([lp[k] for lp in per_layer], axis=0) for k in per_layer[0]}


# ----------------------------------------------------------------------------
# Pure-JAX reference (mirrors PyTorch semantics) for a loose sanity check.
# ----------------------------------------------------------------------------
def reference_decoder(tgt, memory, pos, query_pos, layer_params, nhead):
    def mha(q_in, k_in, v_in, w_in, b_in, w_out, b_out):
        B, Lq, D = q_in.shape
        Lk = k_in.shape[1]
        hd = D // nhead
        scale = 1.0 / math.sqrt(hd)
        q = q_in @ w_in[0:D].T + b_in[0:D]
        k = k_in @ w_in[D:2 * D].T + b_in[D:2 * D]
        v = v_in @ w_in[2 * D:3 * D].T + b_in[2 * D:3 * D]
        q = q.reshape(B, Lq, nhead, hd).transpose(0, 2, 1, 3) * scale
        k = k.reshape(B, Lk, nhead, hd).transpose(0, 2, 1, 3)
        v = v.reshape(B, Lk, nhead, hd).transpose(0, 2, 1, 3)
        s = jnp.einsum("bhqd,bhkd->bhqk", q, k)
        p = jax.nn.softmax(s, axis=-1)
        o = jnp.einsum("bhqk,bhkd->bhqd", p, v)
        o = o.transpose(0, 2, 1, 3).reshape(B, Lq, D)
        return o @ w_out.T + b_out

    def layernorm(v, g, b):
        mu = jnp.mean(v, axis=-1, keepdims=True)
        var = jnp.mean((v - mu) ** 2, axis=-1, keepdims=True)
        return (v - mu) * lax.rsqrt(var + 1e-5) * g + b

    x = tgt
    for p in layer_params:
        qk = x + query_pos
        sa = mha(qk, qk, x, p["sa_in_w"], p["sa_in_b"], p["sa_out_w"], p["sa_out_b"])
        x = layernorm(x + sa, p["n1_g"], p["n1_b"])
        ca = mha(x + query_pos, memory + pos, memory,
                 p["ca_in_w"], p["ca_in_b"], p["ca_out_w"], p["ca_out_b"])
        x = layernorm(x + ca, p["n2_g"], p["n2_b"])
        h1 = jnp.maximum(x @ p["l1_w"].T + p["l1_b"], 0.0)
        ff = h1 @ p["l2_w"].T + p["l2_b"]
        x = layernorm(x + ff, p["n3_g"], p["n3_b"])
    return x


if __name__ == "__main__":
    B = 2          # batch
    Lq = 8         # number of queries (tgt length)
    Lm = 16        # memory length
    D = 32         # d_model
    NHEAD = 4
    DFF = 64
    NUM_LAYERS = 2

    key = jax.random.PRNGKey(0)
    k_tgt, k_mem, k_pos, k_qpos, k_params = jax.random.split(key, 5)

    tgt = jax.random.normal(k_tgt, (B, Lq, D), jnp.float32)
    memory = jax.random.normal(k_mem, (B, Lm, D), jnp.float32)
    pos = jax.random.normal(k_pos, (B, Lm, D), jnp.float32)
    query_pos = jax.random.normal(k_qpos, (B, Lq, D), jnp.float32)

    layer_keys = jax.random.split(k_params, NUM_LAYERS)
    torch_layout_params = [make_layer_params(k, D, DFF) for k in layer_keys]
    params = prepare_params(torch_layout_params, NHEAD)

    out = transformer_decoder(tgt, memory, pos, query_pos, params, nhead=NHEAD)
    out = jax.block_until_ready(out)
    assert out.shape == (B, Lq, D)

    # Loose sanity check against a pure-JAX/f32 reference (kernel uses bf16 MXU).
    ref = reference_decoder(tgt, memory, pos, query_pos, torch_layout_params, NHEAD)
    max_err = float(jnp.max(jnp.abs(out - ref)))
    assert max_err < 1e-1, f"max abs error too large: {max_err}"

    print("KERNEL_OK")
</pallas_src>

<mosaic_0001>
module attributes {stable_mosaic.version = 11 : i64} {
  func.func @decoder_kernel(%arg0: i32, %arg1: i32, %arg2: memref<1x8x32xf32, #tpu.memory_space<vmem>>, %arg3: memref<1x8x32xf32, #tpu.memory_space<vmem>>, %arg4: memref<1x16x32xf32, #tpu.memory_space<vmem>>, %arg5: memref<1x16x32xf32, #tpu.memory_space<vmem>>, %arg6: memref<1x12x32x8xbf16, #tpu.memory_space<vmem>>, %arg7: memref<1x12x1x8xf32, #tpu.memory_space<vmem>>, %arg8: memref<1x4x8x32xbf16, #tpu.memory_space<vmem>>, %arg9: memref<1x1x32xf32, #tpu.memory_space<vmem>>, %arg10: memref<1x12x32x8xbf16, #tpu.memory_space<vmem>>, %arg11: memref<1x12x1x8xf32, #tpu.memory_space<vmem>>, %arg12: memref<1x4x8x32xbf16, #tpu.memory_space<vmem>>, %arg13: memref<1x1x32xf32, #tpu.memory_space<vmem>>, %arg14: memref<1x32x64xbf16, #tpu.memory_space<vmem>>, %arg15: memref<1x1x64xf32, #tpu.memory_space<vmem>>, %arg16: memref<1x64x32xbf16, #tpu.memory_space<vmem>>, %arg17: memref<1x1x32xf32, #tpu.memory_space<vmem>>, %arg18: memref<1x1x32xf32, #tpu.memory_space<vmem>>, %arg19: memref<1x1x32xf32, #tpu.memory_space<vmem>>, %arg20: memref<1x1x32xf32, #tpu.memory_space<vmem>>, %arg21: memref<1x1x32xf32, #tpu.memory_space<vmem>>, %arg22: memref<1x1x32xf32, #tpu.memory_space<vmem>>, %arg23: memref<1x1x32xf32, #tpu.memory_space<vmem>>, %arg24: memref<1x8x32xf32, #tpu.memory_space<vmem>>) attributes {dimension_semantics = [#tpu.dimension_semantics<parallel>, #tpu.dimension_semantics<arbitrary>], iteration_bounds = array<i64: 2, 2>, scalar_prefetch = 0 : i64, scratch_operands = 0 : i64, tpu.core_type = #tpu.core_type<tc>, window_params = [{transform_indices = @transform_0, window_bounds = array<i64: 1, 8, 32>}, {transform_indices = @transform_1, window_bounds = array<i64: 1, 8, 32>}, {transform_indices = @transform_2, window_bounds = array<i64: 1, 16, 32>}, {transform_indices = @transform_3, window_bounds = array<i64: 1, 16, 32>}, {transform_indices = @transform_4, window_bounds = array<i64: 1, 12, 32, 8>}, {transform_indices = @transform_5, window_bounds = array<i64: 1, 12, 1, 8>}, {transform_indices = @transform_6, window_bounds = array<i64: 1, 4, 8, 32>}, {transform_indices = @transform_7, window_bounds = array<i64: 1, 1, 32>}, {transform_indices = @transform_8, window_bounds = array<i64: 1, 12, 32, 8>}, {transform_indices = @transform_9, window_bounds = array<i64: 1, 12, 1, 8>}, {transform_indices = @transform_10, window_bounds = array<i64: 1, 4, 8, 32>}, {transform_indices = @transform_11, window_bounds = array<i64: 1, 1, 32>}, {transform_indices = @transform_12, window_bounds = array<i64: 1, 32, 64>}, {transform_indices = @transform_13, window_bounds = array<i64: 1, 1, 64>}, {transform_indices = @transform_14, window_bounds = array<i64: 1, 64, 32>}, {transform_indices = @transform_15, window_bounds = array<i64: 1, 1, 32>}, {transform_indices = @transform_16, window_bounds = array<i64: 1, 1, 32>}, {transform_indices = @transform_17, window_bounds = array<i64: 1, 1, 32>}, {transform_indices = @transform_18, window_bounds = array<i64: 1, 1, 32>}, {transform_indices = @transform_19, window_bounds = array<i64: 1, 1, 32>}, {transform_indices = @transform_20, window_bounds = array<i64: 1, 1, 32>}, {transform_indices = @transform_21, window_bounds = array<i64: 1, 1, 32>}, {transform_indices = @transform_22, window_bounds = array<i64: 1, 8, 32>}]} {
    %c0_i32 = arith.constant 0 : i32
    %0 = arith.cmpi eq, %arg1, %c0_i32 : i32
    %1 = arith.extui %0 : i1 to i32
    %c0_i32_0 = arith.constant 0 : i32
    %2 = arith.cmpi ne, %1, %c0_i32_0 : i32
    scf.if %2 {
      %c0_347 = arith.constant 0 : index
      %c0_348 = arith.constant 0 : index
      %c0_349 = arith.constant 0 : index
      %462 = vector.load %arg2[%c0_347, %c0_348, %c0_349] : memref<1x8x32xf32, #tpu.memory_space<vmem>>, vector<1x8x32xf32>
      %463 = vector.shape_cast %462 : vector<1x8x32xf32> to vector<8x32xf32>
      %c0_350 = arith.constant 0 : index
      %c0_351 = arith.constant 0 : index
      %c0_352 = arith.constant 0 : index
      %464 = vector.load %arg24[%c0_350, %c0_351, %c0_352] : memref<1x8x32xf32, #tpu.memory_space<vmem>>, vector<1x8x32xf32>
      %465 = vector.shape_cast %464 : vector<1x8x32xf32> to vector<8x32xf32>
      %466 = vector.shape_cast %463 : vector<8x32xf32> to vector<1x8x32xf32>
      tpu.vector_store %arg24[%c0_350, %c0_351, %c0_352], %466 {strides = array<i32>} : memref<1x8x32xf32, #tpu.memory_space<vmem>>, vector<1x8x32xf32>,
    } else {
    }
    %c0 = arith.constant 0 : index
    %c0_1 = arith.constant 0 : index
    %c0_2 = arith.constant 0 : index
    %3 = vector.load %arg24[%c0, %c0_1, %c0_2] : memref<1x8x32xf32, #tpu.memory_space<vmem>>, vector<1x8x32xf32>
    %4 = vector.shape_cast %3 : vector<1x8x32xf32> to vector<8x32xf32>
    %c0_3 = arith.constant 0 : index
    %c0_4 = arith.constant 0 : index
    %c0_5 = arith.constant 0 : index
    %5 = vector.load %arg3[%c0_3, %c0_4, %c0_5] : memref<1x8x32xf32, #tpu.memory_space<vmem>>, vector<1x8x32xf32>
    %6 = vector.shape_cast %5 : vector<1x8x32xf32> to vector<8x32xf32>
    %c0_6 = arith.constant 0 : index
    %c0_7 = arith.constant 0 : index
    %c0_8 = arith.constant 0 : index
    %7 = vector.load %arg4[%c0_6, %c0_7, %c0_8] : memref<1x16x32xf32, #tpu.memory_space<vmem>>, vector<1x16x32xf32>
    %8 = vector.shape_cast %7 : vector<1x16x32xf32> to vector<16x32xf32>
    %c0_9 = arith.constant 0 : index
    %c0_10 = arith.constant 0 : index
    %c0_11 = arith.constant 0 : index
    %9 = vector.load %arg5[%c0_9, %c0_10, %c0_11] : memref<1x16x32xf32, #tpu.memory_space<vmem>>, vector<1x16x32xf32>
    %10 = vector.shape_cast %9 : vector<1x16x32xf32> to vector<16x32xf32>
    %11 = arith.addf %4, %6 : vector<8x32xf32>
    %12 = arith.truncf %11 : vector<8x32xf32> to vector<8x32xbf16>
    %13 = arith.truncf %11 : vector<8x32xf32> to vector<8x32xbf16>
    %14 = arith.truncf %4 : vector<8x32xf32> to vector<8x32xbf16>
    %cst = arith.constant 0.000000e+00 : f32
    %15 = vector.broadcast %cst : f32 to vector<8x32xf32>
    %c0_12 = arith.constant 0 : index
    %c0_13 = arith.constant 0 : index
    %c0_14 = arith.constant 0 : index
    %c0_15 = arith.constant 0 : index
    %16 = vector.load %arg6[%c0_12, %c0_13, %c0_14, %c0_15] : memref<1x12x32x8xbf16, #tpu.memory_space<vmem>>, vector<1x1x32x8xbf16>
    %17 = vector.shape_cast %16 : vector<1x1x32x8xbf16> to vector<32x8xbf16>
    %cst_16 = arith.constant dense<0.000000e+00> : vector<8x8xf32>
    %18 = tpu.matmul %12, %17, %cst_16 {dimension_numbers = #tpu.dot_dimension_numbers<[1], [0], [0], [1], [0, 0, 1, 1], [], []>} : vector<8x32xbf16>, vector<32x8xbf16>, vector<8x8xf32> -> vector<8x8xf32>
    %c0_17 = arith.constant 0 : index
    %c0_18 = arith.constant 0 : index
    %c0_19 = arith.constant 0 : index
    %c0_20 = arith.constant 0 : index
    %19 = vector.load %arg7[%c0_17, %c0_18, %c0_19, %c0_20] : memref<1x12x1x8xf32, #tpu.memory_space<vmem>>, vector<1x1x1x8xf32>
    %20 = vector.shape_cast %19 : vector<1x1x1x8xf32> to vector<1x8xf32>
    %21 = vector.broadcast %20 : vector<1x8xf32> to vector<8x8xf32>
    %22 = arith.addf %18, %21 : vector<8x8xf32>
    %c0_21 = arith.constant 0 : index
    %c4 = arith.constant 4 : index
    %c0_22 = arith.constant 0 : index
    %c0_23 = arith.constant 0 : index
    %23 = vector.load %arg6[%c0_21, %c4, %c0_22, %c0_23] : memref<1x12x32x8xbf16, #tpu.memory_space<vmem>>, vector<1x1x32x8xbf16>
    %24 = vector.shape_cast %23 : vector<1x1x32x8xbf16> to vector<32x8xbf16>
    %cst_24 = arith.constant dense<0.000000e+00> : vector<8x8xf32>
    %25 = tpu.matmul %13, %24, %cst_24 {dimension_numbers = #tpu.dot_dimension_numbers<[1], [0], [0], [1], [0, 0, 1, 1], [], []>} : vector<8x32xbf16>, vector<32x8xbf16>, vector<8x8xf32> -> vector<8x8xf32>
    %c0_25 = arith.constant 0 : index
    %c4_26 = arith.constant 4 : index
    %c0_27 = arith.constant 0 : index
    %c0_28 = arith.constant 0 : index
    %26 = vector.load %arg7[%c0_25, %c4_26, %c0_27, %c0_28] : memref<1x12x1x8xf32, #tpu.memory_space<vmem>>, vector<1x1x1x8xf32>
    %27 = vector.shape_cast %26 : vector<1x1x1x8xf32> to vector<1x8xf32>
    %28 = vector.broadcast %27 : vector<1x8xf32> to vector<8x8xf32>
    %29 = arith.addf %25, %28 : vector<8x8xf32>
    %c0_29 = arith.constant 0 : index
    %c8 = arith.constant 8 : index
    %c0_30 = arith.constant 0 : index
    %c0_31 = arith.constant 0 : index
    %30 = vector.load %arg6[%c0_29, %c8, %c0_30, %c0_31] : memref<1x12x32x8xbf16, #tpu.memory_space<vmem>>, vector<1x1x32x8xbf16>
    %31 = vector.shape_cast %30 : vector<1x1x32x8xbf16> to vector<32x8xbf16>
    %cst_32 = arith.constant dense<0.000000e+00> : vector<8x8xf32>
    %32 = tpu.matmul %14, %31, %cst_32 {dimension_numbers = #tpu.dot_dimension_numbers<[1], [0], [0], [1], [0, 0, 1, 1], [], []>} : vector<8x32xbf16>, vector<32x8xbf16>, vector<8x8xf32> -> vector<8x8xf32>
    %c0_33 = arith.constant 0 : index
    %c8_34 = arith.constant 8 : index
    %c0_35 = arith.constant 0 : index
    %c0_36 = arith.constant 0 : index
    %33 = vector.load %arg7[%c0_33, %c8_34, %c0_35, %c0_36] : memref<1x12x1x8xf32, #tpu.memory_space<vmem>>, vector<1x1x1x8xf32>
    %34 = vector.shape_cast %33 : vector<1x1x1x8xf32> to vector<1x8xf32>
    %35 = vector.broadcast %34 : vector<1x8xf32> to vector<8x8xf32>
    %36 = arith.addf %32, %35 : vector<8x8xf32>
    %37 = arith.truncf %22 : vector<8x8xf32> to vector<8x8xbf16>
    %38 = arith.truncf %29 : vector<8x8xf32> to vector<8x8xbf16>
    %cst_37 = arith.constant dense<0.000000e+00> : vector<8x8xf32>
    %39 = tpu.matmul %37, %38, %cst_37 {dimension_numbers = #tpu.dot_dimension_numbers<[1], [1], [0], [0], [0, 0, 1, 0], [], []>} : vector<8x8xbf16>, vector<8x8xbf16>, vector<8x8xf32> -> vector<8x8xf32>
    %cst_38 = arith.constant dense<0xFF800000> : vector<8xf32>
    %40 = vector.multi_reduction <maximumf>, %39, %cst_38 [1] : vector<8x8xf32> to vector<8xf32>
    %41 = vector.shape_cast %40 : vector<8xf32> to vector<8x1xf32>
    %42 = vector.broadcast %41 : vector<8x1xf32> to vector<8x8xf32>
    %43 = arith.subf %39, %42 : vector<8x8xf32>
    %44 = math.exp %43 : vector<8x8xf32>
    %cst_39 = arith.constant dense<0.000000e+00> : vector<8xf32>
    %45 = vector.multi_reduction <add>, %44, %cst_39 [1] : vector<8x8xf32> to vector<8xf32>
    %46 = vector.shape_cast %45 : vector<8xf32> to vector<8x1xf32>
    %47 = tpu.reciprocal %46 {approx = true} : vector<8x1xf32> -> vector<8x1xf32>
    %48 = vector.broadcast %47 : vector<8x1xf32> to vector<8x8xf32>
    %49 = arith.mulf %44, %48 : vector<8x8xf32>
    %50 = arith.truncf %49 : vector<8x8xf32> to vector<8x8xbf16>
    %51 = arith.truncf %36 : vector<8x8xf32> to vector<8x8xbf16>
    %cst_40 = arith.constant dense<0.000000e+00> : vector<8x8xf32>
    %52 = tpu.matmul %50, %51, %cst_40 {dimension_numbers = #tpu.dot_dimension_numbers<[1], [0], [0], [1], [0, 0, 1, 1], [], []>} : vector<8x8xbf16>, vector<8x8xbf16>, vector<8x8xf32> -> vector<8x8xf32>
    %53 = arith.truncf %52 : vector<8x8xf32> to vector<8x8xbf16>
    %c0_41 = arith.constant 0 : index
    %c0_42 = arith.constant 0 : index
    %c0_43 = arith.constant 0 : index
    %c0_44 = arith.constant 0 : index
    %54 = vector.load %arg8[%c0_41, %c0_42, %c0_43, %c0_44] : memref<1x4x8x32xbf16, #tpu.memory_space<vmem>>, vector<1x1x8x32xbf16>
    %55 = vector.shape_cast %54 : vector<1x1x8x32xbf16> to vector<8x32xbf16>
    %cst_45 = arith.constant dense<0.000000e+00> : vector<8x32xf32>
    %56 = tpu.matmul %53, %55, %cst_45 {dimension_numbers = #tpu.dot_dimension_numbers<[1], [0], [0], [1], [0, 0, 1, 1], [], []>} : vector<8x8xbf16>, vector<8x32xbf16>, vector<8x32xf32> -> vector<8x32xf32>
    %57 = arith.addf %15, %56 : vector<8x32xf32>
    %c0_46 = arith.constant 0 : index
    %c1 = arith.constant 1 : index
    %c0_47 = arith.constant 0 : index
    %c0_48 = arith.constant 0 : index
    %58 = vector.load %arg6[%c0_46, %c1, %c0_47, %c0_48] : memref<1x12x32x8xbf16, #tpu.memory_space<vmem>>, vector<1x1x32x8xbf16>
    %59 = vector.shape_cast %58 : vector<1x1x32x8xbf16> to vector<32x8xbf16>
    %cst_49 = arith.constant dense<0.000000e+00> : vector<8x8xf32>
    %60 = tpu.matmul %12, %59, %cst_49 {dimension_numbers = #tpu.dot_dimension_numbers<[1], [0], [0], [1], [0, 0, 1, 1], [], []>} : vector<8x32xbf16>, vector<32x8xbf16>, vector<8x8xf32> -> vector<8x8xf32>
    %c0_50 = arith.constant 0 : index
    %c1_51 = arith.constant 1 : index
    %c0_52 = arith.constant 0 : index
    %c0_53 = arith.constant 0 : index
    %61 = vector.load %arg7[%c0_50, %c1_51, %c0_52, %c0_53] : memref<1x12x1x8xf32, #tpu.memory_space<vmem>>, vector<1x1x1x8xf32>
    %62 = vector.shape_cast %61 : vector<1x1x1x8xf32> to vector<1x8xf32>
    %63 = vector.broadcast %62 : vector<1x8xf32> to vector<8x8xf32>
    %64 = arith.addf %60, %63 : vector<8x8xf32>
    %c0_54 = arith.constant 0 : index
    %c5 = arith.constant 5 : index
    %c0_55 = arith.constant 0 : index
    %c0_56 = arith.constant 0 : index
    %65 = vector.load %arg6[%c0_54, %c5, %c0_55, %c0_56] : memref<1x12x32x8xbf16, #tpu.memory_space<vmem>>, vector<1x1x32x8xbf16>
    %66 = vector.shape_cast %65 : vector<1x1x32x8xbf16> to vector<32x8xbf16>
    %cst_57 = arith.constant dense<0.000000e+00> : vector<8x8xf32>
    %67 = tpu.matmul %13, %66, %cst_57 {dimension_numbers = #tpu.dot_dimension_numbers<[1], [0], [0], [1], [0, 0, 1, 1], [], []>} : vector<8x32xbf16>, vector<32x8xbf16>, vector<8x8xf32> -> vector<8x8xf32>
    %c0_58 = arith.constant 0 : index
    %c5_59 = arith.constant 5 : index
    %c0_60 = arith.constant 0 : index
    %c0_61 = arith.constant 0 : index
    %68 = vector.load %arg7[%c0_58, %c5_59, %c0_60, %c0_61] : memref<1x12x1x8xf32, #tpu.memory_space<vmem>>, vector<1x1x1x8xf32>
    %69 = vector.shape_cast %68 : vector<1x1x1x8xf32> to vector<1x8xf32>
    %70 = vector.broadcast %69 : vector<1x8xf32> to vector<8x8xf32>
    %71 = arith.addf %67, %70 : vector<8x8xf32>
    %c0_62 = arith.constant 0 : index
    %c9 = arith.constant 9 : index
    %c0_63 = arith.constant 0 : index
    %c0_64 = arith.constant 0 : index
    %72 = vector.load %arg6[%c0_62, %c9, %c0_63, %c0_64] : memref<1x12x32x8xbf16, #tpu.memory_space<vmem>>, vector<1x1x32x8xbf16>
    %73 = vector.shape_cast %72 : vector<1x1x32x8xbf16> to vector<32x8xbf16>
    %cst_65 = arith.constant dense<0.000000e+00> : vector<8x8xf32>
    %74 = tpu.matmul %14, %73, %cst_65 {dimension_numbers = #tpu.dot_dimension_numbers<[1], [0], [0], [1], [0, 0, 1, 1], [], []>} : vector<8x32xbf16>, vector<32x8xbf16>, vector<8x8xf32> -> vector<8x8xf32>
    %c0_66 = arith.constant 0 : index
    %c9_67 = arith.constant 9 : index
    %c0_68 = arith.constant 0 : index
    %c0_69 = arith.constant 0 : index
    %75 = vector.load %arg7[%c0_66, %c9_67, %c0_68, %c0_69] : memref<1x12x1x8xf32, #tpu.memory_space<vmem>>, vector<1x1x1x8xf32>
    %76 = vector.shape_cast %75 : vector<1x1x1x8xf32> to vector<1x8xf32>
    %77 = vector.broadcast %76 : vector<1x8xf32> to vector<8x8xf32>
    %78 = arith.addf %74, %77 : vector<8x8xf32>
    %79 = arith.truncf %64 : vector<8x8xf32> to vector<8x8xbf16>
    %80 = arith.truncf %71 : vector<8x8xf32> to vector<8x8xbf16>
    %cst_70 = arith.constant dense<0.000000e+00> : vector<8x8xf32>
    %81 = tpu.matmul %79, %80, %cst_70 {dimension_numbers = #tpu.dot_dimension_numbers<[1], [1], [0], [0], [0, 0, 1, 0], [], []>} : vector<8x8xbf16>, vector<8x8xbf16>, vector<8x8xf32> -> vector<8x8xf32>
    %cst_71 = arith.constant dense<0xFF800000> : vector<8xf32>
    %82 = vector.multi_reduction <maximumf>, %81, %cst_71 [1] : vector<8x8xf32> to vector<8xf32>
    %83 = vector.shape_cast %82 : vector<8xf32> to vector<8x1xf32>
    %84 = vector.broadcast %83 : vector<8x1xf32> to vector<8x8xf32>
    %85 = arith.subf %81, %84 : vector<8x8xf32>
    %86 = math.exp %85 : vector<8x8xf32>
    %cst_72 = arith.constant dense<0.000000e+00> : vector<8xf32>
    %87 = vector.multi_reduction <add>, %86, %cst_72 [1] : vector<8x8xf32> to vector<8xf32>
    %88 = vector.shape_cast %87 : vector<8xf32> to vector<8x1xf32>
    %89 = tpu.reciprocal %88 {approx = true} : vector<8x1xf32> -> vector<8x1xf32>
    %90 = vector.broadcast %89 : vector<8x1xf32> to vector<8x8xf32>
    %91 = arith.mulf %86, %90 : vector<8x8xf32>
    %92 = arith.truncf %91 : vector<8x8xf32> to vector<8x8xbf16>
    %93 = arith.truncf %78 : vector<8x8xf32> to vector<8x8xbf16>
    %cst_73 = arith.constant dense<0.000000e+00> : vector<8x8xf32>
    %94 = tpu.matmul %92, %93, %cst_73 {dimension_numbers = #tpu.dot_dimension_numbers<[1], [0], [0], [1], [0, 0, 1, 1], [], []>} : vector<8x8xbf16>, vector<8x8xbf16>, vector<8x8xf32> -> vector<8x8xf32>
    %95 = arith.truncf %94 : vector<8x8xf32> to vector<8x8xbf16>
    %c0_74 = arith.constant 0 : index
    %c1_75 = arith.constant 1 : index
    %c0_76 = arith.constant 0 : index
    %c0_77 = arith.constant 0 : index
    %96 = vector.load %arg8[%c0_74, %c1_75, %c0_76, %c0_77] : memref<1x4x8x32xbf16, #tpu.memory_space<vmem>>, vector<1x1x8x32xbf16>
    %97 = vector.shape_cast %96 : vector<1x1x8x32xbf16> to vector<8x32xbf16>
    %cst_78 = arith.constant dense<0.000000e+00> : vector<8x32xf32>
    %98 = tpu.matmul %95, %97, %cst_78 {dimension_numbers = #tpu.dot_dimension_numbers<[1], [0], [0], [1], [0, 0, 1, 1], [], []>} : vector<8x8xbf16>, vector<8x32xbf16>, vector<8x32xf32> -> vector<8x32xf32>
    %99 = arith.addf %57, %98 : vector<8x32xf32>
    %c0_79 = arith.constant 0 : index
    %c2 = arith.constant 2 : index
    %c0_80 = arith.constant 0 : index
    %c0_81 = arith.constant 0 : index
    %100 = vector.load %arg6[%c0_79, %c2, %c0_80, %c0_81] : memref<1x12x32x8xbf16, #tpu.memory_space<vmem>>, vector<1x1x32x8xbf16>
    %101 = vector.shape_cast %100 : vector<1x1x32x8xbf16> to vector<32x8xbf16>
    %cst_82 = arith.constant dense<0.000000e+00> : vector<8x8xf32>
    %102 = tpu.matmul %12, %101, %cst_82 {dimension_numbers = #tpu.dot_dimension_numbers<[1], [0], [0], [1], [0, 0, 1, 1], [], []>} : vector<8x32xbf16>, vector<32x8xbf16>, vector<8x8xf32> -> vector<8x8xf32>
    %c0_83 = arith.constant 0 : index
    %c2_84 = arith.constant 2 : index
    %c0_85 = arith.constant 0 : index
    %c0_86 = arith.constant 0 : index
    %103 = vector.load %arg7[%c0_83, %c2_84, %c0_85, %c0_86] : memref<1x12x1x8xf32, #tpu.memory_space<vmem>>, vector<1x1x1x8xf32>
    %104 = vector.shape_cast %103 : vector<1x1x1x8xf32> to vector<1x8xf32>
    %105 = vector.broadcast %104 : vector<1x8xf32> to vector<8x8xf32>
    %106 = arith.addf %102, %105 : vector<8x8xf32>
    %c0_87 = arith.constant 0 : index
    %c6 = arith.constant 6 : index
    %c0_88 = arith.constant 0 : index
    %c0_89 = arith.constant 0 : index
    %107 = vector.load %arg6[%c0_87, %c6, %c0_88, %c0_89] : memref<1x12x32x8xbf16, #tpu.memory_space<vmem>>, vector<1x1x32x8xbf16>
    %108 = vector.shape_cast %107 : vector<1x1x32x8xbf16> to vector<32x8xbf16>
    %cst_90 = arith.constant dense<0.000000e+00> : vector<8x8xf32>
    %109 = tpu.matmul %13, %108, %cst_90 {dimension_numbers = #tpu.dot_dimension_numbers<[1], [0], [0], [1], [0, 0, 1, 1], [], []>} : vector<8x32xbf16>, vector<32x8xbf16>, vector<8x8xf32> -> vector<8x8xf32>
    %c0_91 = arith.constant 0 : index
    %c6_92 = arith.constant 6 : index
    %c0_93 = arith.constant 0 : index
    %c0_94 = arith.constant 0 : index
    %110 = vector.load %arg7[%c0_91, %c6_92, %c0_93, %c0_94] : memref<1x12x1x8xf32, #tpu.memory_space<vmem>>, vector<1x1x1x8xf32>
    %111 = vector.shape_cast %110 : vector<1x1x1x8xf32> to vector<1x8xf32>
    %112 = vector.broadcast %111 : vector<1x8xf32> to vector<8x8xf32>
    %113 = arith.addf %109, %112 : vector<8x8xf32>
    %c0_95 = arith.constant 0 : index
    %c10 = arith.constant 10 : index
    %c0_96 = arith.constant 0 : index
    %c0_97 = arith.constant 0 : index
    %114 = vector.load %arg6[%c0_95, %c10, %c0_96, %c0_97] : memref<1x12x32x8xbf16, #tpu.memory_space<vmem>>, vector<1x1x32x8xbf16>
    %115 = vector.shape_cast %114 : vector<1x1x32x8xbf16> to vector<32x8xbf16>
    %cst_98 = arith.constant dense<0.000000e+00> : vector<8x8xf32>
    %116 = tpu.matmul %14, %115, %cst_98 {dimension_numbers = #tpu.dot_dimension_numbers<[1], [0], [0], [1], [0, 0, 1, 1], [], []>} : vector<8x32xbf16>, vector<32x8xbf16>, vector<8x8xf32> -> vector<8x8xf32>
    %c0_99 = arith.constant 0 : index
    %c10_100 = arith.constant 10 : index
    %c0_101 = arith.constant 0 : index
    %c0_102 = arith.constant 0 : index
    %117 = vector.load %arg7[%c0_99, %c10_100, %c0_101, %c0_102] : memref<1x12x1x8xf32, #tpu.memory_space<vmem>>, vector<1x1x1x8xf32>
    %118 = vector.shape_cast %117 : vector<1x1x1x8xf32> to vector<1x8xf32>
    %119 = vector.broadcast %118 : vector<1x8xf32> to vector<8x8xf32>
    %120 = arith.addf %116, %119 : vector<8x8xf32>
    %121 = arith.truncf %106 : vector<8x8xf32> to vector<8x8xbf16>
    %122 = arith.truncf %113 : vector<8x8xf32> to vector<8x8xbf16>
    %cst_103 = arith.constant dense<0.000000e+00> : vector<8x8xf32>
    %123 = tpu.matmul %121, %122, %cst_103 {dimension_numbers = #tpu.dot_dimension_numbers<[1], [1], [0], [0], [0, 0, 1, 0], [], []>} : vector<8x8xbf16>, vector<8x8xbf16>, vector<8x8xf32> -> vector<8x8xf32>
    %cst_104 = arith.constant dense<0xFF800000> : vector<8xf32>
    %124 = vector.multi_reduction <maximumf>, %123, %cst_104 [1] : vector<8x8xf32> to vector<8xf32>
    %125 = vector.shape_cast %124 : vector<8xf32> to vector<8x1xf32>
    %126 = vector.broadcast %125 : vector<8x1xf32> to vector<8x8xf32>
    %127 = arith.subf %123, %126 : vector<8x8xf32>
    %128 = math.exp %127 : vector<8x8xf32>
    %cst_105 = arith.constant dense<0.000000e+00> : vector<8xf32>
    %129 = vector.multi_reduction <add>, %128, %cst_105 [1] : vector<8x8xf32> to vector<8xf32>
    %130 = vector.shape_cast %129 : vector<8xf32> to vector<8x1xf32>
    %131 = tpu.reciprocal %130 {approx = true} : vector<8x1xf32> -> vector<8x1xf32>
    %132 = vector.broadcast %131 : vector<8x1xf32> to vector<8x8xf32>
    %133 = arith.mulf %128, %132 : vector<8x8xf32>
    %134 = arith.truncf %133 : vector<8x8xf32> to vector<8x8xbf16>
    %135 = arith.truncf %120 : vector<8x8xf32> to vector<8x8xbf16>
    %cst_106 = arith.constant dense<0.000000e+00> : vector<8x8xf32>
    %136 = tpu.matmul %134, %135, %cst_106 {dimension_numbers = #tpu.dot_dimension_numbers<[1], [0], [0], [1], [0, 0, 1, 1], [], []>} : vector<8x8xbf16>, vector<8x8xbf16>, vector<8x8xf32> -> vector<8x8xf32>
    %137 = arith.truncf %136 : vector<8x8xf32> to vector<8x8xbf16>
    %c0_107 = arith.constant 0 : index
    %c2_108 = arith.constant 2 : index
    %c0_109 = arith.constant 0 : index
    %c0_110 = arith.constant 0 : index
    %138 = vector.load %arg8[%c0_107, %c2_108, %c0_109, %c0_110] : memref<1x4x8x32xbf16, #tpu.memory_space<vmem>>, vector<1x1x8x32xbf16>
    %139 = vector.shape_cast %138 : vector<1x1x8x32xbf16> to vector<8x32xbf16>
    %cst_111 = arith.constant dense<0.000000e+00> : vector<8x32xf32>
    %140 = tpu.matmul %137, %139, %cst_111 {dimension_numbers = #tpu.dot_dimension_numbers<[1], [0], [0], [1], [0, 0, 1, 1], [], []>} : vector<8x8xbf16>, vector<8x32xbf16>, vector<8x32xf32> -> vector<8x32xf32>
    %141 = arith.addf %99, %140 : vector<8x32xf32>
    %c0_112 = arith.constant 0 : index
    %c3 = arith.constant 3 : index
    %c0_113 = arith.constant 0 : index
    %c0_114 = arith.constant 0 : index
    %142 = vector.load %arg6[%c0_112, %c3, %c0_113, %c0_114] : memref<1x12x32x8xbf16, #tpu.memory_space<vmem>>, vector<1x1x32x8xbf16>
    %143 = vector.shape_cast %142 : vector<1x1x32x8xbf16> to vector<32x8xbf16>
    %cst_115 = arith.constant dense<0.000000e+00> : vector<8x8xf32>
    %144 = tpu.matmul %12, %143, %cst_115 {dimension_numbers = #tpu.dot_dimension_numbers<[1], [0], [0], [1], [0, 0, 1, 1], [], []>} : vector<8x32xbf16>, vector<32x8xbf16>, vector<8x8xf32> -> vector<8x8xf32>
    %c0_116 = arith.constant 0 : index
    %c3_117 = arith.constant 3 : index
    %c0_118 = arith.constant 0 : index
    %c0_119 = arith.constant 0 : index
    %145 = vector.load %arg7[%c0_116, %c3_117, %c0_118, %c0_119] : memref<1x12x1x8xf32, #tpu.memory_space<vmem>>, vector<1x1x1x8xf32>
    %146 = vector.shape_cast %145 : vector<1x1x1x8xf32> to vector<1x8xf32>
    %147 = vector.broadcast %146 : vector<1x8xf32> to vector<8x8xf32>
    %148 = arith.addf %144, %147 : vector<8x8xf32>
    %c0_120 = arith.constant 0 : index
    %c7 = arith.constant 7 : index
    %c0_121 = arith.constant 0 : index
    %c0_122 = arith.constant 0 : index
    %149 = vector.load %arg6[%c0_120, %c7, %c0_121, %c0_122] : memref<1x12x32x8xbf16, #tpu.memory_space<vmem>>, vector<1x1x32x8xbf16>
    %150 = vector.shape_cast %149 : vector<1x1x32x8xbf16> to vector<32x8xbf16>
    %cst_123 = arith.constant dense<0.000000e+00> : vector<8x8xf32>
    %151 = tpu.matmul %13, %150, %cst_123 {dimension_numbers = #tpu.dot_dimension_numbers<[1], [0], [0], [1], [0, 0, 1, 1], [], []>} : vector<8x32xbf16>, vector<32x8xbf16>, vector<8x8xf32> -> vector<8x8xf32>
    %c0_124 = arith.constant 0 : index
    %c7_125 = arith.constant 7 : index
    %c0_126 = arith.constant 0 : index
    %c0_127 = arith.constant 0 : index
    %152 = vector.load %arg7[%c0_124, %c7_125, %c0_126, %c0_127] : memref<1x12x1x8xf32, #tpu.memory_space<vmem>>, vector<1x1x1x8xf32>
    %153 = vector.shape_cast %152 : vector<1x1x1x8xf32> to vector<1x8xf32>
    %154 = vector.broadcast %153 : vector<1x8xf32> to vector<8x8xf32>
    %155 = arith.addf %151, %154 : vector<8x8xf32>
    %c0_128 = arith.constant 0 : index
    %c11 = arith.constant 11 : index
    %c0_129 = arith.constant 0 : index
    %c0_130 = arith.constant 0 : index
    %156 = vector.load %arg6[%c0_128, %c11, %c0_129, %c0_130] : memref<1x12x32x8xbf16, #tpu.memory_space<vmem>>, vector<1x1x32x8xbf16>
    %157 = vector.shape_cast %156 : vector<1x1x32x8xbf16> to vector<32x8xbf16>
    %cst_131 = arith.constant dense<0.000000e+00> : vector<8x8xf32>
    %158 = tpu.matmul %14, %157, %cst_131 {dimension_numbers = #tpu.dot_dimension_numbers<[1], [0], [0], [1], [0, 0, 1, 1], [], []>} : vector<8x32xbf16>, vector<32x8xbf16>, vector<8x8xf32> -> vector<8x8xf32>
    %c0_132 = arith.constant 0 : index
    %c11_133 = arith.constant 11 : index
    %c0_134 = arith.constant 0 : index
    %c0_135 = arith.constant 0 : index
    %159 = vector.load %arg7[%c0_132, %c11_133, %c0_134, %c0_135] : memref<1x12x1x8xf32, #tpu.memory_space<vmem>>, vector<1x1x1x8xf32>
    %160 = vector.shape_cast %159 : vector<1x1x1x8xf32> to vector<1x8xf32>
    %161 = vector.broadcast %160 : vector<1x8xf32> to vector<8x8xf32>
    %162 = arith.addf %158, %161 : vector<8x8xf32>
    %163 = arith.truncf %148 : vector<8x8xf32> to vector<8x8xbf16>
    %164 = arith.truncf %155 : vector<8x8xf32> to vector<8x8xbf16>
    %cst_136 = arith.constant dense<0.000000e+00> : vector<8x8xf32>
    %165 = tpu.matmul %163, %164, %cst_136 {dimension_numbers = #tpu.dot_dimension_numbers<[1], [1], [0], [0], [0, 0, 1, 0], [], []>} : vector<8x8xbf16>, vector<8x8xbf16>, vector<8x8xf32> -> vector<8x8xf32>
    %cst_137 = arith.constant dense<0xFF800000> : vector<8xf32>
    %166 = vector.multi_reduction <maximumf>, %165, %cst_137 [1] : vector<8x8xf32> to vector<8xf32>
    %167 = vector.shape_cast %166 : vector<8xf32> to vector<8x1xf32>
    %168 = vector.broadcast %167 : vector<8x1xf32> to vector<8x8xf32>
    %169 = arith.subf %165, %168 : vector<8x8xf32>
    %170 = math.exp %169 : vector<8x8xf32>
    %cst_138 = arith.constant dense<0.000000e+00> : vector<8xf32>
    %171 = vector.multi_reduction <add>, %170, %cst_138 [1] : vector<8x8xf32> to vector<8xf32>
    %172 = vector.shape_cast %171 : vector<8xf32> to vector<8x1xf32>
    %173 = tpu.reciprocal %172 {approx = true} : vector<8x1xf32> -> vector<8x1xf32>
    %174 = vector.broadcast %173 : vector<8x1xf32> to vector<8x8xf32>
    %175 = arith.mulf %170, %174 : vector<8x8xf32>
    %176 = arith.truncf %175 : vector<8x8xf32> to vector<8x8xbf16>
    %177 = arith.truncf %162 : vector<8x8xf32> to vector<8x8xbf16>
    %cst_139 = arith.constant dense<0.000000e+00> : vector<8x8xf32>
    %178 = tpu.matmul %176, %177, %cst_139 {dimension_numbers = #tpu.dot_dimension_numbers<[1], [0], [0], [1], [0, 0, 1, 1], [], []>} : vector<8x8xbf16>, vector<8x8xbf16>, vector<8x8xf32> -> vector<8x8xf32>
    %179 = arith.truncf %178 : vector<8x8xf32> to vector<8x8xbf16>
    %c0_140 = arith.constant 0 : index
    %c3_141 = arith.constant 3 : index
    %c0_142 = arith.constant 0 : index
    %c0_143 = arith.constant 0 : index
    %180 = vector.load %arg8[%c0_140, %c3_141, %c0_142, %c0_143] : memref<1x4x8x32xbf16, #tpu.memory_space<vmem>>, vector<1x1x8x32xbf16>
    %181 = vector.shape_cast %180 : vector<1x1x8x32xbf16> to vector<8x32xbf16>
    %cst_144 = arith.constant dense<0.000000e+00> : vector<8x32xf32>
    %182 = tpu.matmul %179, %181, %cst_144 {dimension_numbers = #tpu.dot_dimension_numbers<[1], [0], [0], [1], [0, 0, 1, 1], [], []>} : vector<8x8xbf16>, vector<8x32xbf16>, vector<8x32xf32> -> vector<8x32xf32>
    %183 = arith.addf %141, %182 : vector<8x32xf32>
    %c0_145 = arith.constant 0 : index
    %c0_146 = arith.constant 0 : index
    %c0_147 = arith.constant 0 : index
    %184 = vector.load %arg9[%c0_145, %c0_146, %c0_147] : memref<1x1x32xf32, #tpu.memory_space<vmem>>, vector<1x1x32xf32>
    %185 = vector.shape_cast %184 : vector<1x1x32xf32> to vector<1x32xf32>
    %186 = vector.broadcast %185 : vector<1x32xf32> to vector<8x32xf32>
    %187 = arith.addf %183, %186 : vector<8x32xf32>
    %188 = arith.addf %4, %187 : vector<8x32xf32>
    %cst_148 = arith.constant dense<0.000000e+00> : vector<8xf32>
    %189 = vector.multi_reduction <add>, %188, %cst_148 [1] : vector<8x32xf32> to vector<8xf32>
    %190 = vector.shape_cast %189 : vector<8xf32> to vector<8x1xf32>
    %cst_149 = arith.constant 3.200000e+01 : f32
    %191 = vector.broadcast %cst_149 : f32 to vector<8x1xf32>
    %192 = arith.divf %190, %191 : vector<8x1xf32>
    %193 = vector.broadcast %192 : vector<8x1xf32> to vector<8x32xf32>
    %194 = arith.subf %188, %193 : vector<8x32xf32>
    %195 = arith.mulf %194, %194 : vector<8x32xf32>
    %cst_150 = arith.constant dense<0.000000e+00> : vector<8xf32>
    %196 = vector.multi_reduction <add>, %195, %cst_150 [1] : vector<8x32xf32> to vector<8xf32>
    %197 = vector.shape_cast %196 : vector<8xf32> to vector<8x1xf32>
    %cst_151 = arith.constant 3.200000e+01 : f32
    %198 = vector.broadcast %cst_151 : f32 to vector<8x1xf32>
    %199 = arith.divf %197, %198 : vector<8x1xf32>
    %cst_152 = arith.constant 9.99999974E-6 : f32
    %200 = vector.broadcast %cst_152 : f32 to vector<8x1xf32>
    %201 = arith.addf %199, %200 : vector<8x1xf32>
    %202 = math.rsqrt %201 : vector<8x1xf32>
    %203 = vector.broadcast %202 : vector<8x1xf32> to vector<8x32xf32>
    %204 = arith.mulf %194, %203 : vector<8x32xf32>
    %c0_153 = arith.constant 0 : index
    %c0_154 = arith.constant 0 : index
    %c0_155 = arith.constant 0 : index
    %205 = vector.load %arg18[%c0_153, %c0_154, %c0_155] : memref<1x1x32xf32, #tpu.memory_space<vmem>>, vector<1x1x32xf32>
    %206 = vector.shape_cast %205 : vector<1x1x32xf32> to vector<1x32xf32>
    %207 = vector.broadcast %206 : vector<1x32xf32> to vector<8x32xf32>
    %208 = arith.mulf %204, %207 : vector<8x32xf32>
    %c0_156 = arith.constant 0 : index
    %c0_157 = arith.constant 0 : index
    %c0_158 = arith.constant 0 : index
    %209 = vector.load %arg19[%c0_156, %c0_157, %c0_158] : memref<1x1x32xf32, #tpu.memory_space<vmem>>, vector<1x1x32xf32>
    %210 = vector.shape_cast %209 : vector<1x1x32xf32> to vector<1x32xf32>
    %211 = vector.broadcast %210 : vector<1x32xf32> to vector<8x32xf32>
    %212 = arith.addf %208, %211 : vector<8x32xf32>
    %213 = arith.addf %212, %6 : vector<8x32xf32>
    %214 = arith.addf %8, %10 : vector<16x32xf32>
    %215 = arith.truncf %213 : vector<8x32xf32> to vector<8x32xbf16>
    %216 = arith.truncf %214 : vector<16x32xf32> to vector<16x32xbf16>
    %217 = arith.truncf %8 : vector<16x32xf32> to vector<16x32xbf16>
    %cst_159 = arith.constant 0.000000e+00 : f32
    %218 = vector.broadcast %cst_159 : f32 to vector<8x32xf32>
    %c0_160 = arith.constant 0 : index
    %c0_161 = arith.constant 0 : index
    %c0_162 = arith.constant 0 : index
    %c0_163 = arith.constant 0 : index
    %219 = vector.load %arg10[%c0_160, %c0_161, %c0_162, %c0_163] : memref<1x12x32x8xbf16, #tpu.memory_space<vmem>>, vector<1x1x32x8xbf16>
    %220 = vector.shape_cast %219 : vector<1x1x32x8xbf16> to vector<32x8xbf16>
    %cst_164 = arith.constant dense<0.000000e+00> : vector<8x8xf32>
    %221 = tpu.matmul %215, %220, %cst_164 {dimension_numbers = #tpu.dot_dimension_numbers<[1], [0], [0], [1], [0, 0, 1, 1], [], []>} : vector<8x32xbf16>, vector<32x8xbf16>, vector<8x8xf32> -> vector<8x8xf32>
    %c0_165 = arith.constant 0 : index
    %c0_166 = arith.constant 0 : index
    %c0_167 = arith.constant 0 : index
    %c0_168 = arith.constant 0 : index
    %222 = vector.load %arg11[%c0_165, %c0_166, %c0_167, %c0_168] : memref<1x12x1x8xf32, #tpu.memory_space<vmem>>, vector<1x1x1x8xf32>
    %223 = vector.shape_cast %222 : vector<1x1x1x8xf32> to vector<1x8xf32>
    %224 = vector.broadcast %223 : vector<1x8xf32> to vector<8x8xf32>
    %225 = arith.addf %221, %224 : vector<8x8xf32>
    %c0_169 = arith.constant 0 : index
    %c4_170 = arith.constant 4 : index
    %c0_171 = arith.constant 0 : index
    %c0_172 = arith.constant 0 : index
    %226 = vector.load %arg10[%c0_169, %c4_170, %c0_171, %c0_172] : memref<1x12x32x8xbf16, #tpu.memory_space<vmem>>, vector<1x1x32x8xbf16>
    %227 = vector.shape_cast %226 : vector<1x1x32x8xbf16> to vector<32x8xbf16>
    %cst_173 = arith.constant dense<0.000000e+00> : vector<16x8xf32>
    %228 = tpu.matmul %216, %227, %cst_173 {dimension_numbers = #tpu.dot_dimension_numbers<[1], [0], [0], [1], [0, 0, 1, 1], [], []>} : vector<16x32xbf16>, vector<32x8xbf16>, vector<16x8xf32> -> vector<16x8xf32>
    %c0_174 = arith.constant 0 : index
    %c4_175 = arith.constant 4 : index
    %c0_176 = arith.constant 0 : index
    %c0_177 = arith.constant 0 : index
    %229 = vector.load %arg11[%c0_174, %c4_175, %c0_176, %c0_177] : memref<1x12x1x8xf32, #tpu.memory_space<vmem>>, vector<1x1x1x8xf32>
    %230 = vector.shape_cast %229 : vector<1x1x1x8xf32> to vector<1x8xf32>
    %231 = vector.broadcast %230 : vector<1x8xf32> to vector<16x8xf32>
    %232 = arith.addf %228, %231 : vector<16x8xf32>
    %c0_178 = arith.constant 0 : index
    %c8_179 = arith.constant 8 : index
    %c0_180 = arith.constant 0 : index
    %c0_181 = arith.constant 0 : index
    %233 = vector.load %arg10[%c0_178, %c8_179, %c0_180, %c0_181] : memref<1x12x32x8xbf16, #tpu.memory_space<vmem>>, vector<1x1x32x8xbf16>
    %234 = vector.shape_cast %233 : vector<1x1x32x8xbf16> to vector<32x8xbf16>
    %cst_182 = arith.constant dense<0.000000e+00> : vector<16x8xf32>
    %235 = tpu.matmul %217, %234, %cst_182 {dimension_numbers = #tpu.dot_dimension_numbers<[1], [0], [0], [1], [0, 0, 1, 1], [], []>} : vector<16x32xbf16>, vector<32x8xbf16>, vector<16x8xf32> -> vector<16x8xf32>
    %c0_183 = arith.constant 0 : index
    %c8_184 = arith.constant 8 : index
    %c0_185 = arith.constant 0 : index
    %c0_186 = arith.constant 0 : index
    %236 = vector.load %arg11[%c0_183, %c8_184, %c0_185, %c0_186] : memref<1x12x1x8xf32, #tpu.memory_space<vmem>>, vector<1x1x1x8xf32>
    %237 = vector.shape_cast %236 : vector<1x1x1x8xf32> to vector<1x8xf32>
    %238 = vector.broadcast %237 : vector<1x8xf32> to vector<16x8xf32>
    %239 = arith.addf %235, %238 : vector<16x8xf32>
    %240 = arith.truncf %225 : vector<8x8xf32> to vector<8x8xbf16>
    %241 = arith.truncf %232 : vector<16x8xf32> to vector<16x8xbf16>
    %cst_187 = arith.constant dense<0.000000e+00> : vector<8x16xf32>
    %242 = tpu.matmul %240, %241, %cst_187 {dimension_numbers = #tpu.dot_dimension_numbers<[1], [1], [0], [0], [0, 0, 1, 0], [], []>} : vector<8x8xbf16>, vector<16x8xbf16>, vector<8x16xf32> -> vector<8x16xf32>
    %cst_188 = arith.constant dense<0xFF800000> : vector<8xf32>
    %243 = vector.multi_reduction <maximumf>, %242, %cst_188 [1] : vector<8x16xf32> to vector<8xf32>
    %244 = vector.shape_cast %243 : vector<8xf32> to vector<8x1xf32>
    %245 = vector.broadcast %244 : vector<8x1xf32> to vector<8x16xf32>
    %246 = arith.subf %242, %245 : vector<8x16xf32>
    %247 = math.exp %246 : vector<8x16xf32>
    %cst_189 = arith.constant dense<0.000000e+00> : vector<8xf32>
    %248 = vector.multi_reduction <add>, %247, %cst_189 [1] : vector<8x16xf32> to vector<8xf32>
    %249 = vector.shape_cast %248 : vector<8xf32> to vector<8x1xf32>
    %250 = tpu.reciprocal %249 {approx = true} : vector<8x1xf32> -> vector<8x1xf32>
    %251 = vector.broadcast %250 : vector<8x1xf32> to vector<8x16xf32>
    %252 = arith.mulf %247, %251 : vector<8x16xf32>
    %253 = arith.truncf %252 : vector<8x16xf32> to vector<8x16xbf16>
    %254 = arith.truncf %239 : vector<16x8xf32> to vector<16x8xbf16>
    %cst_190 = arith.constant dense<0.000000e+00> : vector<8x8xf32>
    %255 = tpu.matmul %253, %254, %cst_190 {dimension_numbers = #tpu.dot_dimension_numbers<[1], [0], [0], [1], [0, 0, 1, 1], [], []>} : vector<8x16xbf16>, vector<16x8xbf16>, vector<8x8xf32> -> vector<8x8xf32>
    %256 = arith.truncf %255 : vector<8x8xf32> to vector<8x8xbf16>
    %c0_191 = arith.constant 0 : index
    %c0_192 = arith.constant 0 : index
    %c0_193 = arith.constant 0 : index
    %c0_194 = arith.constant 0 : index
    %257 = vector.load %arg12[%c0_191, %c0_192, %c0_193, %c0_194] : memref<1x4x8x32xbf16, #tpu.memory_space<vmem>>, vector<1x1x8x32xbf16>
    %258 = vector.shape_cast %257 : vector<1x1x8x32xbf16> to vector<8x32xbf16>
    %cst_195 = arith.constant dense<0.000000e+00> : vector<8x32xf32>
    %259 = tpu.matmul %256, %258, %cst_195 {dimension_numbers = #tpu.dot_dimension_numbers<[1], [0], [0], [1], [0, 0, 1, 1], [], []>} : vector<8x8xbf16>, vector<8x32xbf16>, vector<8x32xf32> -> vector<8x32xf32>
    %260 = arith.addf %218, %259 : vector<8x32xf32>
    %c0_196 = arith.constant 0 : index
    %c1_197 = arith.constant 1 : index
    %c0_198 = arith.constant 0 : index
    %c0_199 = arith.constant 0 : index
    %261 = vector.load %arg10[%c0_196, %c1_197, %c0_198, %c0_199] : memref<1x12x32x8xbf16, #tpu.memory_space<vmem>>, vector<1x1x32x8xbf16>
    %262 = vector.shape_cast %261 : vector<1x1x32x8xbf16> to vector<32x8xbf16>
    %cst_200 = arith.constant dense<0.000000e+00> : vector<8x8xf32>
    %263 = tpu.matmul %215, %262, %cst_200 {dimension_numbers = #tpu.dot_dimension_numbers<[1], [0], [0], [1], [0, 0, 1, 1], [], []>} : vector<8x32xbf16>, vector<32x8xbf16>, vector<8x8xf32> -> vector<8x8xf32>
    %c0_201 = arith.constant 0 : index
    %c1_202 = arith.constant 1 : index
    %c0_203 = arith.constant 0 : index
    %c0_204 = arith.constant 0 : index
    %264 = vector.load %arg11[%c0_201, %c1_202, %c0_203, %c0_204] : memref<1x12x1x8xf32, #tpu.memory_space<vmem>>, vector<1x1x1x8xf32>
    %265 = vector.shape_cast %264 : vector<1x1x1x8xf32> to vector<1x8xf32>
    %266 = vector.broadcast %265 : vector<1x8xf32> to vector<8x8xf32>
    %267 = arith.addf %263, %266 : vector<8x8xf32>
    %c0_205 = arith.constant 0 : index
    %c5_206 = arith.constant 5 : index
    %c0_207 = arith.constant 0 : index
    %c0_208 = arith.constant 0 : index
    %268 = vector.load %arg10[%c0_205, %c5_206, %c0_207, %c0_208] : memref<1x12x32x8xbf16, #tpu.memory_space<vmem>>, vector<1x1x32x8xbf16>
    %269 = vector.shape_cast %268 : vector<1x1x32x8xbf16> to vector<32x8xbf16>
    %cst_209 = arith.constant dense<0.000000e+00> : vector<16x8xf32>
    %270 = tpu.matmul %216, %269, %cst_209 {dimension_numbers = #tpu.dot_dimension_numbers<[1], [0], [0], [1], [0, 0, 1, 1], [], []>} : vector<16x32xbf16>, vector<32x8xbf16>, vector<16x8xf32> -> vector<16x8xf32>
    %c0_210 = arith.constant 0 : index
    %c5_211 = arith.constant 5 : index
    %c0_212 = arith.constant 0 : index
    %c0_213 = arith.constant 0 : index
    %271 = vector.load %arg11[%c0_210, %c5_211, %c0_212, %c0_213] : memref<1x12x1x8xf32, #tpu.memory_space<vmem>>, vector<1x1x1x8xf32>
    %272 = vector.shape_cast %271 : vector<1x1x1x8xf32> to vector<1x8xf32>
    %273 = vector.broadcast %272 : vector<1x8xf32> to vector<16x8xf32>
    %274 = arith.addf %270, %273 : vector<16x8xf32>
    %c0_214 = arith.constant 0 : index
    %c9_215 = arith.constant 9 : index
    %c0_216 = arith.constant 0 : index
    %c0_217 = arith.constant 0 : index
    %275 = vector.load %arg10[%c0_214, %c9_215, %c0_216, %c0_217] : memref<1x12x32x8xbf16, #tpu.memory_space<vmem>>, vector<1x1x32x8xbf16>
    %276 = vector.shape_cast %275 : vector<1x1x32x8xbf16> to vector<32x8xbf16>
    %cst_218 = arith.constant dense<0.000000e+00> : vector<16x8xf32>
    %277 = tpu.matmul %217, %276, %cst_218 {dimension_numbers = #tpu.dot_dimension_numbers<[1], [0], [0], [1], [0, 0, 1, 1], [], []>} : vector<16x32xbf16>, vector<32x8xbf16>, vector<16x8xf32> -> vector<16x8xf32>
    %c0_219 = arith.constant 0 : index
    %c9_220 = arith.constant 9 : index
    %c0_221 = arith.constant 0 : index
    %c0_222 = arith.constant 0 : index
    %278 = vector.load %arg11[%c0_219, %c9_220, %c0_221, %c0_222] : memref<1x12x1x8xf32, #tpu.memory_space<vmem>>, vector<1x1x1x8xf32>
    %279 = vector.shape_cast %278 : vector<1x1x1x8xf32> to vector<1x8xf32>
    %280 = vector.broadcast %279 : vector<1x8xf32> to vector<16x8xf32>
    %281 = arith.addf %277, %280 : vector<16x8xf32>
    %282 = arith.truncf %267 : vector<8x8xf32> to vector<8x8xbf16>
    %283 = arith.truncf %274 : vector<16x8xf32> to vector<16x8xbf16>
    %cst_223 = arith.constant dense<0.000000e+00> : vector<8x16xf32>
    %284 = tpu.matmul %282, %283, %cst_223 {dimension_numbers = #tpu.dot_dimension_numbers<[1], [1], [0], [0], [0, 0, 1, 0], [], []>} : vector<8x8xbf16>, vector<16x8xbf16>, vector<8x16xf32> -> vector<8x16xf32>
    %cst_224 = arith.constant dense<0xFF800000> : vector<8xf32>
    %285 = vector.multi_reduction <maximumf>, %284, %cst_224 [1] : vector<8x16xf32> to vector<8xf32>
    %286 = vector.shape_cast %285 : vector<8xf32> to vector<8x1xf32>
    %287 = vector.broadcast %286 : vector<8x1xf32> to vector<8x16xf32>
    %288 = arith.subf %284, %287 : vector<8x16xf32>
    %289 = math.exp %288 : vector<8x16xf32>
    %cst_225 = arith.constant dense<0.000000e+00> : vector<8xf32>
    %290 = vector.multi_reduction <add>, %289, %cst_225 [1] : vector<8x16xf32> to vector<8xf32>
    %291 = vector.shape_cast %290 : vector<8xf32> to vector<8x1xf32>
    %292 = tpu.reciprocal %291 {approx = true} : vector<8x1xf32> -> vector<8x1xf32>
    %293 = vector.broadcast %292 : vector<8x1xf32> to vector<8x16xf32>
    %294 = arith.mulf %289, %293 : vector<8x16xf32>
    %295 = arith.truncf %294 : vector<8x16xf32> to vector<8x16xbf16>
    %296 = arith.truncf %281 : vector<16x8xf32> to vector<16x8xbf16>
    %cst_226 = arith.constant dense<0.000000e+00> : vector<8x8xf32>
    %297 = tpu.matmul %295, %296, %cst_226 {dimension_numbers = #tpu.dot_dimension_numbers<[1], [0], [0], [1], [0, 0, 1, 1], [], []>} : vector<8x16xbf16>, vector<16x8xbf16>, vector<8x8xf32> -> vector<8x8xf32>
    %298 = arith.truncf %297 : vector<8x8xf32> to vector<8x8xbf16>
    %c0_227 = arith.constant 0 : index
    %c1_228 = arith.constant 1 : index
    %c0_229 = arith.constant 0 : index
    %c0_230 = arith.constant 0 : index
    %299 = vector.load %arg12[%c0_227, %c1_228, %c0_229, %c0_230] : memref<1x4x8x32xbf16, #tpu.memory_space<vmem>>, vector<1x1x8x32xbf16>
    %300 = vector.shape_cast %299 : vector<1x1x8x32xbf16> to vector<8x32xbf16>
    %cst_231 = arith.constant dense<0.000000e+00> : vector<8x32xf32>
    %301 = tpu.matmul %298, %300, %cst_231 {dimension_numbers = #tpu.dot_dimension_numbers<[1], [0], [0], [1], [0, 0, 1, 1], [], []>} : vector<8x8xbf16>, vector<8x32xbf16>, vector<8x32xf32> -> vector<8x32xf32>
    %302 = arith.addf %260, %301 : vector<8x32xf32>
    %c0_232 = arith.constant 0 : index
    %c2_233 = arith.constant 2 : index
    %c0_234 = arith.constant 0 : index
    %c0_235 = arith.constant 0 : index
    %303 = vector.load %arg10[%c0_232, %c2_233, %c0_234, %c0_235] : memref<1x12x32x8xbf16, #tpu.memory_space<vmem>>, vector<1x1x32x8xbf16>
    %304 = vector.shape_cast %303 : vector<1x1x32x8xbf16> to vector<32x8xbf16>
    %cst_236 = arith.constant dense<0.000000e+00> : vector<8x8xf32>
    %305 = tpu.matmul %215, %304, %cst_236 {dimension_numbers = #tpu.dot_dimension_numbers<[1], [0], [0], [1], [0, 0, 1, 1], [], []>} : vector<8x32xbf16>, vector<32x8xbf16>, vector<8x8xf32> -> vector<8x8xf32>
    %c0_237 = arith.constant 0 : index
    %c2_238 = arith.constant 2 : index
    %c0_239 = arith.constant 0 : index
    %c0_240 = arith.constant 0 : index
    %306 = vector.load %arg11[%c0_237, %c2_238, %c0_239, %c0_240] : memref<1x12x1x8xf32, #tpu.memory_space<vmem>>, vector<1x1x1x8xf32>
    %307 = vector.shape_cast %306 : vector<1x1x1x8xf32> to vector<1x8xf32>
    %308 = vector.broadcast %307 : vector<1x8xf32> to vector<8x8xf32>
    %309 = arith.addf %305, %308 : vector<8x8xf32>
    %c0_241 = arith.constant 0 : index
    %c6_242 = arith.constant 6 : index
    %c0_243 = arith.constant 0 : index
    %c0_244 = arith.constant 0 : index
    %310 = vector.load %arg10[%c0_241, %c6_242, %c0_243, %c0_244] : memref<1x12x32x8xbf16, #tpu.memory_space<vmem>>, vector<1x1x32x8xbf16>
    %311 = vector.shape_cast %310 : vector<1x1x32x8xbf16> to vector<32x8xbf16>
    %cst_245 = arith.constant dense<0.000000e+00> : vector<16x8xf32>
    %312 = tpu.matmul %216, %311, %cst_245 {dimension_numbers = #tpu.dot_dimension_numbers<[1], [0], [0], [1], [0, 0, 1, 1], [], []>} : vector<16x32xbf16>, vector<32x8xbf16>, vector<16x8xf32> -> vector<16x8xf32>
    %c0_246 = arith.constant 0 : index
    %c6_247 = arith.constant 6 : index
    %c0_248 = arith.constant 0 : index
    %c0_249 = arith.constant 0 : index
    %313 = vector.load %arg11[%c0_246, %c6_247, %c0_248, %c0_249] : memref<1x12x1x8xf32, #tpu.memory_space<vmem>>, vector<1x1x1x8xf32>
    %314 = vector.shape_cast %313 : vector<1x1x1x8xf32> to vector<1x8xf32>
    %315 = vector.broadcast %314 : vector<1x8xf32> to vector<16x8xf32>
    %316 = arith.addf %312, %315 : vector<16x8xf32>
    %c0_250 = arith.constant 0 : index
    %c10_251 = arith.constant 10 : index
    %c0_252 = arith.constant 0 : index
    %c0_253 = arith.constant 0 : index
    %317 = vector.load %arg10[%c0_250, %c10_251, %c0_252, %c0_253] : memref<1x12x32x8xbf16, #tpu.memory_space<vmem>>, vector<1x1x32x8xbf16>
    %318 = vector.shape_cast %317 : vector<1x1x32x8xbf16> to vector<32x8xbf16>
    %cst_254 = arith.constant dense<0.000000e+00> : vector<16x8xf32>
    %319 = tpu.matmul %217, %318, %cst_254 {dimension_numbers = #tpu.dot_dimension_numbers<[1], [0], [0], [1], [0, 0, 1, 1], [], []>} : vector<16x32xbf16>, vector<32x8xbf16>, vector<16x8xf32> -> vector<16x8xf32>
    %c0_255 = arith.constant 0 : index
    %c10_256 = arith.constant 10 : index
    %c0_257 = arith.constant 0 : index
    %c0_258 = arith.constant 0 : index
    %320 = vector.load %arg11[%c0_255, %c10_256, %c0_257, %c0_258] : memref<1x12x1x8xf32, #tpu.memory_space<vmem>>, vector<1x1x1x8xf32>
    %321 = vector.shape_cast %320 : vector<1x1x1x8xf32> to vector<1x8xf32>
    %322 = vector.broadcast %321 : vector<1x8xf32> to vector<16x8xf32>
    %323 = arith.addf %319, %322 : vector<16x8xf32>
    %324 = arith.truncf %309 : vector<8x8xf32> to vector<8x8xbf16>
    %325 = arith.truncf %316 : vector<16x8xf32> to vector<16x8xbf16>
    %cst_259 = arith.constant dense<0.000000e+00> : vector<8x16xf32>
    %326 = tpu.matmul %324, %325, %cst_259 {dimension_numbers = #tpu.dot_dimension_numbers<[1], [1], [0], [0], [0, 0, 1, 0], [], []>} : vector<8x8xbf16>, vector<16x8xbf16>, vector<8x16xf32> -> vector<8x16xf32>
    %cst_260 = arith.constant dense<0xFF800000> : vector<8xf32>
    %327 = vector.multi_reduction <maximumf>, %326, %cst_260 [1] : vector<8x16xf32> to vector<8xf32>
    %328 = vector.shape_cast %327 : vector<8xf32> to vector<8x1xf32>
    %329 = vector.broadcast %328 : vector<8x1xf32> to vector<8x16xf32>
    %330 = arith.subf %326, %329 : vector<8x16xf32>
    %331 = math.exp %330 : vector<8x16xf32>
    %cst_261 = arith.constant dense<0.000000e+00> : vector<8xf32>
    %332 = vector.multi_reduction <add>, %331, %cst_261 [1] : vector<8x16xf32> to vector<8xf32>
    %333 = vector.shape_cast %332 : vector<8xf32> to vector<8x1xf32>
    %334 = tpu.reciprocal %333 {approx = true} : vector<8x1xf32> -> vector<8x1xf32>
    %335 = vector.broadcast %334 : vector<8x1xf32> to vector<8x16xf32>
    %336 = arith.mulf %331, %335 : vector<8x16xf32>
    %337 = arith.truncf %336 : vector<8x16xf32> to vector<8x16xbf16>
    %338 = arith.truncf %323 : vector<16x8xf32> to vector<16x8xbf16>
    %cst_262 = arith.constant dense<0.000000e+00> : vector<8x8xf32>
    %339 = tpu.matmul %337, %338, %cst_262 {dimension_numbers = #tpu.dot_dimension_numbers<[1], [0], [0], [1], [0, 0, 1, 1], [], []>} : vector<8x16xbf16>, vector<16x8xbf16>, vector<8x8xf32> -> vector<8x8xf32>
    %340 = arith.truncf %339 : vector<8x8xf32> to vector<8x8xbf16>
    %c0_263 = arith.constant 0 : index
    %c2_264 = arith.constant 2 : index
    %c0_265 = arith.constant 0 : index
    %c0_266 = arith.constant 0 : index
    %341 = vector.load %arg12[%c0_263, %c2_264, %c0_265, %c0_266] : memref<1x4x8x32xbf16, #tpu.memory_space<vmem>>, vector<1x1x8x32xbf16>
    %342 = vector.shape_cast %341 : vector<1x1x8x32xbf16> to vector<8x32xbf16>
    %cst_267 = arith.constant dense<0.000000e+00> : vector<8x32xf32>
    %343 = tpu.matmul %340, %342, %cst_267 {dimension_numbers = #tpu.dot_dimension_numbers<[1], [0], [0], [1], [0, 0, 1, 1], [], []>} : vector<8x8xbf16>, vector<8x32xbf16>, vector<8x32xf32> -> vector<8x32xf32>
    %344 = arith.addf %302, %343 : vector<8x32xf32>
    %c0_268 = arith.constant 0 : index
    %c3_269 = arith.constant 3 : index
    %c0_270 = arith.constant 0 : index
    %c0_271 = arith.constant 0 : index
    %345 = vector.load %arg10[%c0_268, %c3_269, %c0_270, %c0_271] : memref<1x12x32x8xbf16, #tpu.memory_space<vmem>>, vector<1x1x32x8xbf16>
    %346 = vector.shape_cast %345 : vector<1x1x32x8xbf16> to vector<32x8xbf16>
    %cst_272 = arith.constant dense<0.000000e+00> : vector<8x8xf32>
    %347 = tpu.matmul %215, %346, %cst_272 {dimension_numbers = #tpu.dot_dimension_numbers<[1], [0], [0], [1], [0, 0, 1, 1], [], []>} : vector<8x32xbf16>, vector<32x8xbf16>, vector<8x8xf32> -> vector<8x8xf32>
    %c0_273 = arith.constant 0 : index
    %c3_274 = arith.constant 3 : index
    %c0_275 = arith.constant 0 : index
    %c0_276 = arith.constant 0 : index
    %348 = vector.load %arg11[%c0_273, %c3_274, %c0_275, %c0_276] : memref<1x12x1x8xf32, #tpu.memory_space<vmem>>, vector<1x1x1x8xf32>
    %349 = vector.shape_cast %348 : vector<1x1x1x8xf32> to vector<1x8xf32>
    %350 = vector.broadcast %349 : vector<1x8xf32> to vector<8x8xf32>
    %351 = arith.addf %347, %350 : vector<8x8xf32>
    %c0_277 = arith.constant 0 : index
    %c7_278 = arith.constant 7 : index
    %c0_279 = arith.constant 0 : index
    %c0_280 = arith.constant 0 : index
    %352 = vector.load %arg10[%c0_277, %c7_278, %c0_279, %c0_280] : memref<1x12x32x8xbf16, #tpu.memory_space<vmem>>, vector<1x1x32x8xbf16>
    %353 = vector.shape_cast %352 : vector<1x1x32x8xbf16> to vector<32x8xbf16>
    %cst_281 = arith.constant dense<0.000000e+00> : vector<16x8xf32>
    %354 = tpu.matmul %216, %353, %cst_281 {dimension_numbers = #tpu.dot_dimension_numbers<[1], [0], [0], [1], [0, 0, 1, 1], [], []>} : vector<16x32xbf16>, vector<32x8xbf16>, vector<16x8xf32> -> vector<16x8xf32>
    %c0_282 = arith.constant 0 : index
    %c7_283 = arith.constant 7 : index
    %c0_284 = arith.constant 0 : index
    %c0_285 = arith.constant 0 : index
    %355 = vector.load %arg11[%c0_282, %c7_283, %c0_284, %c0_285] : memref<1x12x1x8xf32, #tpu.memory_space<vmem>>, vector<1x1x1x8xf32>
    %356 = vector.shape_cast %355 : vector<1x1x1x8xf32> to vector<1x8xf32>
    %357 = vector.broadcast %356 : vector<1x8xf32> to vector<16x8xf32>
    %358 = arith.addf %354, %357 : vector<16x8xf32>
    %c0_286 = arith.constant 0 : index
    %c11_287 = arith.constant 11 : index
    %c0_288 = arith.constant 0 : index
    %c0_289 = arith.constant 0 : index
    %359 = vector.load %arg10[%c0_286, %c11_287, %c0_288, %c0_289] : memref<1x12x32x8xbf16, #tpu.memory_space<vmem>>, vector<1x1x32x8xbf16>
    %360 = vector.shape_cast %359 : vector<1x1x32x8xbf16> to vector<32x8xbf16>
    %cst_290 = arith.constant dense<0.000000e+00> : vector<16x8xf32>
    %361 = tpu.matmul %217, %360, %cst_290 {dimension_numbers = #tpu.dot_dimension_numbers<[1], [0], [0], [1], [0, 0, 1, 1], [], []>} : vector<16x32xbf16>, vector<32x8xbf16>, vector<16x8xf32> -> vector<16x8xf32>
    %c0_291 = arith.constant 0 : index
    %c11_292 = arith.constant 11 : index
    %c0_293 = arith.constant 0 : index
    %c0_294 = arith.constant 0 : index
    %362 = vector.load %arg11[%c0_291, %c11_292, %c0_293, %c0_294] : memref<1x12x1x8xf32, #tpu.memory_space<vmem>>, vector<1x1x1x8xf32>
    %363 = vector.shape_cast %362 : vector<1x1x1x8xf32> to vector<1x8xf32>
    %364 = vector.broadcast %363 : vector<1x8xf32> to vector<16x8xf32>
    %365 = arith.addf %361, %364 : vector<16x8xf32>
    %366 = arith.truncf %351 : vector<8x8xf32> to vector<8x8xbf16>
    %367 = arith.truncf %358 : vector<16x8xf32> to vector<16x8xbf16>
    %cst_295 = arith.constant dense<0.000000e+00> : vector<8x16xf32>
    %368 = tpu.matmul %366, %367, %cst_295 {dimension_numbers = #tpu.dot_dimension_numbers<[1], [1], [0], [0], [0, 0, 1, 0], [], []>} : vector<8x8xbf16>, vector<16x8xbf16>, vector<8x16xf32> -> vector<8x16xf32>
    %cst_296 = arith.constant dense<0xFF800000> : vector<8xf32>
    %369 = vector.multi_reduction <maximumf>, %368, %cst_296 [1] : vector<8x16xf32> to vector<8xf32>
    %370 = vector.shape_cast %369 : vector<8xf32> to vector<8x1xf32>
    %371 = vector.broadcast %370 : vector<8x1xf32> to vector<8x16xf32>
    %372 = arith.subf %368, %371 : vector<8x16xf32>
    %373 = math.exp %372 : vector<8x16xf32>
    %cst_297 = arith.constant dense<0.000000e+00> : vector<8xf32>
    %374 = vector.multi_reduction <add>, %373, %cst_297 [1] : vector<8x16xf32> to vector<8xf32>
    %375 = vector.shape_cast %374 : vector<8xf32> to vector<8x1xf32>
    %376 = tpu.reciprocal %375 {approx = true} : vector<8x1xf32> -> vector<8x1xf32>
    %377 = vector.broadcast %376 : vector<8x1xf32> to vector<8x16xf32>
    %378 = arith.mulf %373, %377 : vector<8x16xf32>
    %379 = arith.truncf %378 : vector<8x16xf32> to vector<8x16xbf16>
    %380 = arith.truncf %365 : vector<16x8xf32> to vector<16x8xbf16>
    %cst_298 = arith.constant dense<0.000000e+00> : vector<8x8xf32>
    %381 = tpu.matmul %379, %380, %cst_298 {dimension_numbers = #tpu.dot_dimension_numbers<[1], [0], [0], [1], [0, 0, 1, 1], [], []>} : vector<8x16xbf16>, vector<16x8xbf16>, vector<8x8xf32> -> vector<8x8xf32>
    %382 = arith.truncf %381 : vector<8x8xf32> to vector<8x8xbf16>
    %c0_299 = arith.constant 0 : index
    %c3_300 = arith.constant 3 : index
    %c0_301 = arith.constant 0 : index
    %c0_302 = arith.constant 0 : index
    %383 = vector.load %arg12[%c0_299, %c3_300, %c0_301, %c0_302] : memref<1x4x8x32xbf16, #tpu.memory_space<vmem>>, vector<1x1x8x32xbf16>
    %384 = vector.shape_cast %383 : vector<1x1x8x32xbf16> to vector<8x32xbf16>
    %cst_303 = arith.constant dense<0.000000e+00> : vector<8x32xf32>
    %385 = tpu.matmul %382, %384, %cst_303 {dimension_numbers = #tpu.dot_dimension_numbers<[1], [0], [0], [1], [0, 0, 1, 1], [], []>} : vector<8x8xbf16>, vector<8x32xbf16>, vector<8x32xf32> -> vector<8x32xf32>
    %386 = arith.addf %344, %385 : vector<8x32xf32>
    %c0_304 = arith.constant 0 : index
    %c0_305 = arith.constant 0 : index
    %c0_306 = arith.constant 0 : index
    %387 = vector.load %arg13[%c0_304, %c0_305, %c0_306] : memref<1x1x32xf32, #tpu.memory_space<vmem>>, vector<1x1x32xf32>
    %388 = vector.shape_cast %387 : vector<1x1x32xf32> to vector<1x32xf32>
    %389 = vector.broadcast %388 : vector<1x32xf32> to vector<8x32xf32>
    %390 = arith.addf %386, %389 : vector<8x32xf32>
    %391 = arith.addf %212, %390 : vector<8x32xf32>
    %cst_307 = arith.constant dense<0.000000e+00> : vector<8xf32>
    %392 = vector.multi_reduction <add>, %391, %cst_307 [1] : vector<8x32xf32> to vector<8xf32>
    %393 = vector.shape_cast %392 : vector<8xf32> to vector<8x1xf32>
    %cst_308 = arith.constant 3.200000e+01 : f32
    %394 = vector.broadcast %cst_308 : f32 to vector<8x1xf32>
    %395 = arith.divf %393, %394 : vector<8x1xf32>
    %396 = vector.broadcast %395 : vector<8x1xf32> to vector<8x32xf32>
    %397 = arith.subf %391, %396 : vector<8x32xf32>
    %398 = arith.mulf %397, %397 : vector<8x32xf32>
    %cst_309 = arith.constant dense<0.000000e+00> : vector<8xf32>
    %399 = vector.multi_reduction <add>, %398, %cst_309 [1] : vector<8x32xf32> to vector<8xf32>
    %400 = vector.shape_cast %399 : vector<8xf32> to vector<8x1xf32>
    %cst_310 = arith.constant 3.200000e+01 : f32
    %401 = vector.broadcast %cst_310 : f32 to vector<8x1xf32>
    %402 = arith.divf %400, %401 : vector<8x1xf32>
    %cst_311 = arith.constant 9.99999974E-6 : f32
    %403 = vector.broadcast %cst_311 : f32 to vector<8x1xf32>
    %404 = arith.addf %402, %403 : vector<8x1xf32>
    %405 = math.rsqrt %404 : vector<8x1xf32>
    %406 = vector.broadcast %405 : vector<8x1xf32> to vector<8x32xf32>
    %407 = arith.mulf %397, %406 : vector<8x32xf32>
    %c0_312 = arith.constant 0 : index
    %c0_313 = arith.constant 0 : index
    %c0_314 = arith.constant 0 : index
    %408 = vector.load %arg20[%c0_312, %c0_313, %c0_314] : memref<1x1x32xf32, #tpu.memory_space<vmem>>, vector<1x1x32xf32>
    %409 = vector.shape_cast %408 : vector<1x1x32xf32> to vector<1x32xf32>
    %410 = vector.broadcast %409 : vector<1x32xf32> to vector<8x32xf32>
    %411 = arith.mulf %407, %410 : vector<8x32xf32>
    %c0_315 = arith.constant 0 : index
    %c0_316 = arith.constant 0 : index
    %c0_317 = arith.constant 0 : index
    %412 = vector.load %arg21[%c0_315, %c0_316, %c0_317] : memref<1x1x32xf32, #tpu.memory_space<vmem>>, vector<1x1x32xf32>
    %413 = vector.shape_cast %412 : vector<1x1x32xf32> to vector<1x32xf32>
    %414 = vector.broadcast %413 : vector<1x32xf32> to vector<8x32xf32>
    %415 = arith.addf %411, %414 : vector<8x32xf32>
    %416 = arith.truncf %415 : vector<8x32xf32> to vector<8x32xbf16>
    %c0_318 = arith.constant 0 : index
    %c0_319 = arith.constant 0 : index
    %c0_320 = arith.constant 0 : index
    %417 = vector.load %arg14[%c0_318, %c0_319, %c0_320] : memref<1x32x64xbf16, #tpu.memory_space<vmem>>, vector<1x32x64xbf16>
    %418 = vector.shape_cast %417 : vector<1x32x64xbf16> to vector<32x64xbf16>
    %cst_321 = arith.constant dense<0.000000e+00> : vector<8x64xf32>
    %419 = tpu.matmul %416, %418, %cst_321 {dimension_numbers = #tpu.dot_dimension_numbers<[1], [0], [0], [1], [0, 0, 1, 1], [], []>} : vector<8x32xbf16>, vector<32x64xbf16>, vector<8x64xf32> -> vector<8x64xf32>
    %c0_322 = arith.constant 0 : index
    %c0_323 = arith.constant 0 : index
    %c0_324 = arith.constant 0 : index
    %420 = vector.load %arg15[%c0_322, %c0_323, %c0_324] : memref<1x1x64xf32, #tpu.memory_space<vmem>>, vector<1x1x64xf32>
    %421 = vector.shape_cast %420 : vector<1x1x64xf32> to vector<1x64xf32>
    %422 = vector.broadcast %421 : vector<1x64xf32> to vector<8x64xf32>
    %423 = arith.addf %419, %422 : vector<8x64xf32>
    %cst_325 = arith.constant 0.000000e+00 : f32
    %424 = vector.broadcast %cst_325 : f32 to vector<8x64xf32>
    %425 = arith.maximumf %423, %424 : vector<8x64xf32>
    %426 = arith.truncf %425 : vector<8x64xf32> to vector<8x64xbf16>
    %c0_326 = arith.constant 0 : index
    %c0_327 = arith.constant 0 : index
    %c0_328 = arith.constant 0 : index
    %427 = vector.load %arg16[%c0_326, %c0_327, %c0_328] : memref<1x64x32xbf16, #tpu.memory_space<vmem>>, vector<1x64x32xbf16>
    %428 = vector.shape_cast %427 : vector<1x64x32xbf16> to vector<64x32xbf16>
    %cst_329 = arith.constant dense<0.000000e+00> : vector<8x32xf32>
    %429 = tpu.matmul %426, %428, %cst_329 {dimension_numbers = #tpu.dot_dimension_numbers<[1], [0], [0], [1], [0, 0, 1, 1], [], []>} : vector<8x64xbf16>, vector<64x32xbf16>, vector<8x32xf32> -> vector<8x32xf32>
    %c0_330 = arith.constant 0 : index
    %c0_331 = arith.constant 0 : index
    %c0_332 = arith.constant 0 : index
    %430 = vector.load %arg17[%c0_330, %c0_331, %c0_332] : memref<1x1x32xf32, #tpu.memory_space<vmem>>, vector<1x1x32xf32>
    %431 = vector.shape_cast %430 : vector<1x1x32xf32> to vector<1x32xf32>
    %432 = vector.broadcast %431 : vector<1x32xf32> to vector<8x32xf32>
    %433 = arith.addf %429, %432 : vector<8x32xf32>
    %434 = arith.addf %415, %433 : vector<8x32xf32>
    %cst_333 = arith.constant dense<0.000000e+00> : vector<8xf32>
    %435 = vector.multi_reduction <add>, %434, %cst_333 [1] : vector<8x32xf32> to vector<8xf32>
    %436 = vector.shape_cast %435 : vector<8xf32> to vector<8x1xf32>
    %cst_334 = arith.constant 3.200000e+01 : f32
    %437 = vector.broadcast %cst_334 : f32 to vector<8x1xf32>
    %438 = arith.divf %436, %437 : vector<8x1xf32>
    %439 = vector.broadcast %438 : vector<8x1xf32> to vector<8x32xf32>
    %440 = arith.subf %434, %439 : vector<8x32xf32>
    %441 = arith.mulf %440, %440 : vector<8x32xf32>
    %cst_335 = arith.constant dense<0.000000e+00> : vector<8xf32>
    %442 = vector.multi_reduction <add>, %441, %cst_335 [1] : vector<8x32xf32> to vector<8xf32>
    %443 = vector.shape_cast %442 : vector<8xf32> to vector<8x1xf32>
    %cst_336 = arith.constant 3.200000e+01 : f32
    %444 = vector.broadcast %cst_336 : f32 to vector<8x1xf32>
    %445 = arith.divf %443, %444 : vector<8x1xf32>
    %cst_337 = arith.constant 9.99999974E-6 : f32
    %446 = vector.broadcast %cst_337 : f32 to vector<8x1xf32>
    %447 = arith.addf %445, %446 : vector<8x1xf32>
    %448 = math.rsqrt %447 : vector<8x1xf32>
    %449 = vector.broadcast %448 : vector<8x1xf32> to vector<8x32xf32>
    %450 = arith.mulf %440, %449 : vector<8x32xf32>
    %c0_338 = arith.constant 0 : index
    %c0_339 = arith.constant 0 : index
    %c0_340 = arith.constant 0 : index
    %451 = vector.load %arg22[%c0_338, %c0_339, %c0_340] : memref<1x1x32xf32, #tpu.memory_space<vmem>>, vector<1x1x32xf32>
    %452 = vector.shape_cast %451 : vector<1x1x32xf32> to vector<1x32xf32>
    %453 = vector.broadcast %452 : vector<1x32xf32> to vector<8x32xf32>
    %454 = arith.mulf %450, %453 : vector<8x32xf32>
    %c0_341 = arith.constant 0 : index
    %c0_342 = arith.constant 0 : index
    %c0_343 = arith.constant 0 : index
    %455 = vector.load %arg23[%c0_341, %c0_342, %c0_343] : memref<1x1x32xf32, #tpu.memory_space<vmem>>, vector<1x1x32xf32>
    %456 = vector.shape_cast %455 : vector<1x1x32xf32> to vector<1x32xf32>
    %457 = vector.broadcast %456 : vector<1x32xf32> to vector<8x32xf32>
    %458 = arith.addf %454, %457 : vector<8x32xf32>
    %c0_344 = arith.constant 0 : index
    %c0_345 = arith.constant 0 : index
    %c0_346 = arith.constant 0 : index
    %459 = vector.load %arg24[%c0_344, %c0_345, %c0_346] : memref<1x8x32xf32, #tpu.memory_space<vmem>>, vector<1x8x32xf32>
    %460 = vector.shape_cast %459 : vector<1x8x32xf32> to vector<8x32xf32>
    %461 = vector.shape_cast %458 : vector<8x32xf32> to vector<1x8x32xf32>
    tpu.vector_store %arg24[%c0_344, %c0_345, %c0_346], %461 {strides = array<i32>} : memref<1x8x32xf32, #tpu.memory_space<vmem>>, vector<1x8x32xf32>,
    return
  }
  func.func @transform_0(%arg0: i32, %arg1: i32) -> (i32, i32, i32) {
    %c0_i32 = arith.constant 0 : i32
    %c0_i32_0 = arith.constant 0 : i32
    %c0_i32_1 = arith.constant 0 : i32
    return %arg0, %c0_i32, %c0_i32_0 : i32, i32, i32
  }
  func.func @transform_1(%arg0: i32, %arg1: i32) -> (i32, i32, i32) {
    %c0_i32 = arith.constant 0 : i32
    %c0_i32_0 = arith.constant 0 : i32
    %c0_i32_1 = arith.constant 0 : i32
    return %arg0, %c0_i32, %c0_i32_0 : i32, i32, i32
  }
  func.func @transform_2(%arg0: i32, %arg1: i32) -> (i32, i32, i32) {
    %c0_i32 = arith.constant 0 : i32
    %c0_i32_0 = arith.constant 0 : i32
    %c0_i32_1 = arith.constant 0 : i32
    return %arg0, %c0_i32, %c0_i32_0 : i32, i32, i32
  }
  func.func @transform_3(%arg0: i32, %arg1: i32) -> (i32, i32, i32) {
    %c0_i32 = arith.constant 0 : i32
    %c0_i32_0 = arith.constant 0 : i32
    %c0_i32_1 = arith.constant 0 : i32
    return %arg0, %c0_i32, %c0_i32_0 : i32, i32, i32
  }
  func.func @transform_4(%arg0: i32, %arg1: i32) -> (i32, i32, i32, i32) {
    %c0_i32 = arith.constant 0 : i32
    %c0_i32_0 = arith.constant 0 : i32
    %c0_i32_1 = arith.constant 0 : i32
    %c0_i32_2 = arith.constant 0 : i32
    return %arg1, %c0_i32, %c0_i32_0, %c0_i32_1 : i32, i32, i32, i32
  }
  func.func @transform_5(%arg0: i32, %arg1: i32) -> (i32, i32, i32, i32) {
    %c0_i32 = arith.constant 0 : i32
    %c0_i32_0 = arith.constant 0 : i32
    %c0_i32_1 = arith.constant 0 : i32
    %c0_i32_2 = arith.constant 0 : i32
    return %arg1, %c0_i32, %c0_i32_0, %c0_i32_1 : i32, i32, i32, i32
  }
  func.func @transform_6(%arg0: i32, %arg1: i32) -> (i32, i32, i32, i32) {
    %c0_i32 = arith.constant 0 : i32
    %c0_i32_0 = arith.constant 0 : i32
    %c0_i32_1 = arith.constant 0 : i32
    %c0_i32_2 = arith.constant 0 : i32
    return %arg1, %c0_i32, %c0_i32_0, %c0_i32_1 : i32, i32, i32, i32
  }
  func.func @transform_7(%arg0: i32, %arg1: i32) -> (i32, i32, i32) {
    %c0_i32 = arith.constant 0 : i32
    %c0_i32_0 = arith.constant 0 : i32
    %c0_i32_1 = arith.constant 0 : i32
    return %arg1, %c0_i32, %c0_i32_0 : i32, i32, i32
  }
  func.func @transform_8(%arg0: i32, %arg1: i32) -> (i32, i32, i32, i32) {
    %c0_i32 = arith.constant 0 : i32
    %c0_i32_0 = arith.constant 0 : i32
    %c0_i32_1 = arith.constant 0 : i32
    %c0_i32_2 = arith.constant 0 : i32
    return %arg1, %c0_i32, %c0_i32_0, %c0_i32_1 : i32, i32, i32, i32
  }
  func.func @transform_9(%arg0: i32, %arg1: i32) -> (i32, i32, i32, i32) {
    %c0_i32 = arith.constant 0 : i32
    %c0_i32_0 = arith.constant 0 : i32
    %c0_i32_1 = arith.constant 0 : i32
    %c0_i32_2 = arith.constant 0 : i32
    return %arg1, %c0_i32, %c0_i32_0, %c0_i32_1 : i32, i32, i32, i32
  }
  func.func @transform_10(%arg0: i32, %arg1: i32) -> (i32, i32, i32, i32) {
    %c0_i32 = arith.constant 0 : i32
    %c0_i32_0 = arith.constant 0 : i32
    %c0_i32_1 = arith.constant 0 : i32
    %c0_i32_2 = arith.constant 0 : i32
    return %arg1, %c0_i32, %c0_i32_0, %c0_i32_1 : i32, i32, i32, i32
  }
  func.func @transform_11(%arg0: i32, %arg1: i32) -> (i32, i32, i32) {
    %c0_i32 = arith.constant 0 : i32
    %c0_i32_0 = arith.constant 0 : i32
    %c0_i32_1 = arith.constant 0 : i32
    return %arg1, %c0_i32, %c0_i32_0 : i32, i32, i32
  }
  func.func @transform_12(%arg0: i32, %arg1: i32) -> (i32, i32, i32) {
    %c0_i32 = arith.constant 0 : i32
    %c0_i32_0 = arith.constant 0 : i32
    %c0_i32_1 = arith.constant 0 : i32
    return %arg1, %c0_i32, %c0_i32_0 : i32, i32, i32
  }
  func.func @transform_13(%arg0: i32, %arg1: i32) -> (i32, i32, i32) {
    %c0_i32 = arith.constant 0 : i32
    %c0_i32_0 = arith.constant 0 : i32
    %c0_i32_1 = arith.constant 0 : i32
    return %arg1, %c0_i32, %c0_i32_0 : i32, i32, i32
  }
  func.func @transform_14(%arg0: i32, %arg1: i32) -> (i32, i32, i32) {
    %c0_i32 = arith.constant 0 : i32
    %c0_i32_0 = arith.constant 0 : i32
    %c0_i32_1 = arith.constant 0 : i32
    return %arg1, %c0_i32, %c0_i32_0 : i32, i32, i32
  }
  func.func @transform_15(%arg0: i32, %arg1: i32) -> (i32, i32, i32) {
    %c0_i32 = arith.constant 0 : i32
    %c0_i32_0 = arith.constant 0 : i32
    %c0_i32_1 = arith.constant 0 : i32
    return %arg1, %c0_i32, %c0_i32_0 : i32, i32, i32
  }
  func.func @transform_16(%arg0: i32, %arg1: i32) -> (i32, i32, i32) {
    %c0_i32 = arith.constant 0 : i32
    %c0_i32_0 = arith.constant 0 : i32
    %c0_i32_1 = arith.constant 0 : i32
    return %arg1, %c0_i32, %c0_i32_0 : i32, i32, i32
  }
  func.func @transform_17(%arg0: i32, %arg1: i32) -> (i32, i32, i32) {
    %c0_i32 = arith.constant 0 : i32
    %c0_i32_0 = arith.constant 0 : i32
    %c0_i32_1 = arith.constant 0 : i32
    return %arg1, %c0_i32, %c0_i32_0 : i32, i32, i32
  }
  func.func @transform_18(%arg0: i32, %arg1: i32) -> (i32, i32, i32) {
    %c0_i32 = arith.constant 0 : i32
    %c0_i32_0 = arith.constant 0 : i32
    %c0_i32_1 = arith.constant 0 : i32
    return %arg1, %c0_i32, %c0_i32_0 : i32, i32, i32
  }
  func.func @transform_19(%arg0: i32, %arg1: i32) -> (i32, i32, i32) {
    %c0_i32 = arith.constant 0 : i32
    %c0_i32_0 = arith.constant 0 : i32
    %c0_i32_1 = arith.constant 0 : i32
    return %arg1, %c0_i32, %c0_i32_0 : i32, i32, i32
  }
  func.func @transform_20(%arg0: i32, %arg1: i32) -> (i32, i32, i32) {
    %c0_i32 = arith.constant 0 : i32
    %c0_i32_0 = arith.constant 0 : i32
    %c0_i32_1 = arith.constant 0 : i32
    return %arg1, %c0_i32, %c0_i32_0 : i32, i32, i32
  }
  func.func @transform_21(%arg0: i32, %arg1: i32) -> (i32, i32, i32) {
    %c0_i32 = arith.constant 0 : i32
    %c0_i32_0 = arith.constant 0 : i32
    %c0_i32_1 = arith.constant 0 : i32
    return %arg1, %c0_i32, %c0_i32_0 : i32, i32, i32
  }
  func.func @transform_22(%arg0: i32, %arg1: i32) -> (i32, i32, i32) {
    %c0_i32 = arith.constant 0 : i32
    %c0_i32_0 = arith.constant 0 : i32
    %c0_i32_1 = arith.constant 0 : i32
    return %arg0, %c0_i32, %c0_i32_0 : i32, i32, i32
  }
}

</mosaic_0001>

<bundles_post_ra>
// kernel: tpu_custom_call.1
= control target key start
LH: loop header
LB: loop body
LE: loop exit
PB: predicated region body
PF: predicated region fallthrough
CT: control target
= control target key end

     0   :  { %s6336_s0 = inlined_call_operand.vmem [shape: f32[2,8,32], index: 0, kind: input, shape index: {}]   ;;  %s6337_s1 = inlined_call_operand.vmem [shape: f32[2,8,32], index: 1, kind: input, shape index: {}]   ;;  %s6338_s2 = inlined_call_operand.vmem [shape: f32[2,16,32], index: 2, kind: input, shape index: {}]   ;;  %s6339_s3 = inlined_call_operand.vmem [shape: f32[2,16,32], index: 3, kind: input, shape index: {}]   ;;  %s6340_s4 = inlined_call_operand.vmem [shape: bf16[2,12,32,8], index: 4, kind: input, shape index: {}]   ;;  %s6341_s5 = inlined_call_operand.vmem [shape: f32[2,12,1,8], index: 5, kind: input, shape index: {}]   ;;  %s6342_s6 = inlined_call_operand.vmem [shape: bf16[2,4,8,32], index: 6, kind: input, shape index: {}]   ;;  %s6343_s7 = inlined_call_operand.vmem [shape: f32[2,1,32], index: 7, kind: input, shape index: {}]   ;;  %s6344_s8 = inlined_call_operand.vmem [shape: bf16[2,12,32,8], index: 8, kind: input, shape index: {}]   ;;  %s6345_s9 = inlined_call_operand.vmem [shape: f32[2,12,1,8], index: 9, kind: input, shape index: {}]   ;;  %s6346_s10 = inlined_call_operand.vmem [shape: bf16[2,4,8,32], index: 10, kind: input, shape index: {}]   ;;  %s6347_s11 = inlined_call_operand.vmem [shape: f32[2,1,32], index: 11, kind: input, shape index: {}]   ;;  %s6348_s12 = inlined_call_operand.vmem [shape: bf16[2,32,64], index: 12, kind: input, shape index: {}]   ;;  %s6349_s13 = inlined_call_operand.vmem [shape: f32[2,1,64], index: 13, kind: input, shape index: {}]   ;;  %s6350_s14 = inlined_call_operand.vmem [shape: bf16[2,64,32], index: 14, kind: input, shape index: {}]   ;;  %s6351_s15 = inlined_call_operand.vmem [shape: f32[2,1,32], index: 15, kind: input, shape index: {}]   ;;  %s6352_s16 = inlined_call_operand.vmem [shape: f32[2,1,32], index: 16, kind: input, shape index: {}]   ;;  %s6353_s17 = inlined_call_operand.vmem [shape: f32[2,1,32], index: 17, kind: input, shape index: {}]   ;;  %s6354_s18 = inlined_call_operand.vmem [shape: f32[2,1,32], index: 18, kind: input, shape index: {}]   ;;  %s6355_s19 = inlined_call_operand.vmem [shape: f32[2,1,32], index: 19, kind: input, shape index: {}]   ;;  %s6356_s20 = inlined_call_operand.vmem [shape: f32[2,1,32], index: 20, kind: input, shape index: {}]   ;;  %s6357_s21 = inlined_call_operand.vmem [shape: f32[2,1,32], index: 21, kind: input, shape index: {}]   ;;  %s6358_s22 = inlined_call_operand.hbm [shape: f32[2,8,32], index: 22, kind: output, shape index: {}]  }
   0x1   :  { %6379 = sst [smem:[#allocation24_spill]] %s6336_s0 }
   0x2   :  { %6380 = sst [smem:[#allocation25_spill]] %s6337_s1 }
   0x3   :  { %6381 = sst [smem:[#allocation26_spill]] %s6338_s2 }
   0x4   :  { %6382 = sst [smem:[#allocation27_spill]] %s6339_s3 }
   0x5   :  { %6383 = sst [smem:[#allocation28_spill]] %s6340_s4 }
   0x6   :  { %6384 = sst [smem:[#allocation29_spill]] %s6341_s5 }
   0x7   :  { %6385 = sst [smem:[#allocation30_spill]] %s6342_s6 }
   0x8   :  { %6386 = sst [smem:[#allocation31_spill]] %s6343_s7 }
   0x9   :  { %6387 = sst [smem:[#allocation32_spill]] %s6344_s8 }
   0xa   :  { %6388 = sst [smem:[#allocation33_spill]] %s6345_s9 }
   0xb   :  { %6389 = sst [smem:[#allocation34_spill]] %s6346_s10 }
   0xc   :  { %6390 = sst [smem:[#allocation35_spill]] %s6348_s12 }
   0xd   :  { %6391 = sst [smem:[#allocation36_spill]] %s6349_s13 }
   0xe   :  { %6392 = sst [smem:[#allocation37_spill]] %s6350_s14 }
   0xf   :  { %6393 = sst [smem:[#allocation38_spill]] %s6351_s15 }
  0x10   :  { %6394 = sst [smem:[#allocation39_spill]] %s6353_s17 }
  0x11   :  { %6395 = sst [smem:[#allocation40_spill]] %s6354_s18 }
  0x12   :  { %6396 = sst [smem:[#allocation41_spill]] %s6355_s19 }
  0x13   :  { %6397 = sst [smem:[#allocation42_spill]] %s6356_s20 }
  0x14   :  { %6398 = sst [smem:[#allocation43_spill]] %s6357_s21 }
  0x15   :  { %6399 = sst [smem:[#allocation44_spill]] %s6358_s22 }
  0x16   :  { %27 = vsyncpa [#allocation3], 0 }
  0x17   :  { %29 = vsyncpa [#allocation3 + $0x1], 0  ;;  %s5604_s3 = smov 0   ;;  %s5606_s28 = smov 0  }
  0x18   :  { %s5608_s29 = smov 0   ;;  %s5610_s30 = smov 0  }
  0x19   :  { %s5612_s4 = smov 0   ;;  %s5614_s0 = smov 0  }
  0x1a   :  { %s5616_s23 = smov 0   ;;  %s5618_s1 = smov 0  }
  0x1b LB: > { %6400 = sst [smem:[#allocation5_spill]] %s5456_s3  ;;  %s4452_s5 = sadd.s32 4294967295, %s5484_s1   ;;  %s5484_s1 = sphi %s5618_s1, %s35_s1   ;;  %s5480_s23 = sphi %s5616_s23, %s6475_s23   ;;  %s5476_s0 = sphi %s5614_s0, %s6474_s0   ;;  %s5472_s4 = sphi %s5612_s4, %s6473_s4   ;;  %s5468_s30 = sphi %s5610_s30, %s6472_s30   ;;  %s5464_s29 = sphi %s5608_s29, %s6471_s29   ;;  %s5460_s28 = sphi %s5606_s28, %s6470_s28   ;;  %s5456_s3 = sphi %s5604_s3, %s6469_s3  }
  0x1c   : > { %6401 = sst [smem:[#allocation6_spill]] %s5460_s28  ;;  %s4453_s24 = sadd.s32 4294967294, %s5484_s1  }
  0x1d   : > { %6402 = sst [smem:[#allocation7_spill]] %s5464_s29  ;;  %s44_s6 = sadd.s32 1, %s5476_s0 }
  0x1e   : > { %6403 = sst [smem:[#allocation8_spill]] %s5468_s30  ;;  %p45_p0 = scmp.ge.s32.totalorder %s44_s6, 2 }
  0x1f   : > { %6404 = sst [smem:[#allocation9_spill]] %s5472_s4  ;;  %s47_s25 = sadd.s32 1, %s5480_s23 }
  0x20   : > { %6405 = sst [smem:[#allocation10_spill]] %s5476_s0  ;;  %p636_p1 = scmp.ne.s32.totalorder %s5464_s29, %s5460_s28 }
  0x21   : > { %6406 = sst [smem:[#allocation11_spill]] %s5480_s23  ;;  %p637_p2 = scmp.eq.s32.totalorder %s4452_s5, 3 }
  0x22   : > { %6407 = sst [smem:[#allocation12_spill]] %s5484_s1  ;;  %s6477_s6 = smov (%p45_p0, %s44_s6), 0 }
  0x23   : > { %6408 = sst [smem:[#allocation13_spill]] %s6477_s6  ;;  %s6479_s25 = smov (!%p45_p0, %s47_s25), %s5480_s23 }
  0x24   : > { %p5653_p3 = por %p637_p2, %p636_p1  ;;  %p642_p4 = scmp.ne.s32.totalorder %s5460_s28, %s5456_s3 }
  0x25   : > { %p49_p5 = scmp.ge.s32.totalorder %s6479_s25, 2  ;;  %p643_p6 = scmp.eq.s32.totalorder %s4453_s24, 3 }
  0x26   : > { %s6409_s26 = scalar_select %p5653_p3, 1, 0 }
  0x27   : > { %p4456_p7 = scmp.ge.s32.totalorder %s5484_s1, 1  ;;  %p813_p8 = scmp.lt.s32.totalorder %s5484_s1, 5 }
  0x28   : > { %6410 = sst [smem:[#allocation14_spill]] %s6409_s26  ;;  %s6481_s25 = smov (%p49_p5, %s6479_s25), 0 }
  0x29   : > { %6411 = sst [smem:[#allocation15_spill]] %s6481_s25  ;;  %p5663_p9 = por %p643_p6, %p642_p4 }
  0x2a   : > { %p814_p10 = pnand %p4456_p7, %p813_p8  ;;  %s623_s27 = ssub.s32 %s5480_s23, %s6481_s25 }
  0x2b   : > { %s6412_s2 = scalar_select %p5663_p9, 1, 0 }
  0x2c   : > { %s626_s5 = sadd.s32 1, %s5464_s29  ;;  %p624_p11 = scmp.eq.s32.totalorder %s623_s27, 0 }
  0x2d   : > { %6413 = sst [smem:[#allocation16_spill]] %s6412_s2  ;;  %817 = sbr.rel (%p814_p10) target bundleno = 9262 (0x242e), region = 108 }
  0x2e   : > { %s5671_s6 = scalar_select %p624_p11, %s5464_s29, %s626_s5  }
  0x30   : > { %6414 = sst [smem:[#allocation17_spill]] %s5671_s6 }
  0x34   : > { %s6370_s24 = sand.u32 1, %s5460_s28   ;;  %p956_p12 = scmp.lt.s32.totalorder %s5472_s4, 1 }
  0x35   : > { %s5677_s0 = sshll.u32 %s6370_s24, 3  ;;  %p974_p13 = scmp.lt.s32.totalorder %s5468_s30, 1 }
  0x36   : > { %s957_s2 = scalar_select %p956_p12, %s5472_s4, 1 }
  0x37   : > { %s5682_s3 = scalar_select %p974_p13, %s5468_s30, 1 }
  0x38   : > { %s4458_s27 = sshll.u32 %s957_s2, 3  ;;  %s4733_s5 = sshll.u32 %s957_s2, 4 }
  0x39   : > { %s6415_s6 = sld [smem:[#allocation24_spill]]  ;;  %s6416_s26 = sld [smem:[#allocation25_spill]] }
  0x3a   : > { %s6418_s30 = sld [smem:[#allocation26_spill]]  ;;  %s6420_s18 = sld [smem:[#allocation27_spill]] }
  0x3b   : > { %s5223_s23 = smul.u32 192, %s5682_s3  ;;  %s6424_s4 = sld [smem:[#allocation28_spill]] }
  0x3c   : > { %s5224_s22 = smul.u32 12, %s5682_s3  ;;  %s6427_s8 = sld [smem:[#allocation32_spill]] }
  0x3d   : > { %s6428_s9 = sld [smem:[#allocation33_spill]]  ;;  %s6429_s10 = sld [smem:[#allocation34_spill]] }
  0x3e   : > { %s6430_s12 = sld [smem:[#allocation35_spill]]  ;;  %s6433_s14 = sld [smem:[#allocation37_spill]] }
  0x3f   : > { %s959_s29 = scalar_lea.vmem %s6415_s6, %s4458_s27  ;;  %s5690_s24 = scalar_lea.vmem %s6416_s26, %s4458_s27 }
  0x40   : > { %6417 = sst [smem:[#allocation18_spill]] %s5690_s24  ;;  %s5695_s21 = scalar_lea.vmem %s6418_s30, %s4733_s5 }
  0x41   : > { %6419 = sst [smem:[#allocation19_spill]] %s5695_s21  ;;  %s5700_s2 = scalar_lea.vmem %s6420_s18, %s4733_s5 }
  0x42   : > { %6421 = sst [smem:[#allocation20_spill]] %s5700_s2  ;;  %s4735_s6 = sshll.u32 %s5682_s3, 4 }
  0x43   : > { %s6422_s26 = sld [smem:[#allocation30_spill]]  ;;  %s5713_s21 = scalar_lea.vmem %s6424_s4, %s5223_s23 }
  0x44   : > { %s6426_s24 = sld [smem:[#allocation29_spill]]  ;;  %s5732_s4 = scalar_lea.vmem %s6428_s9, %s5224_s22 }
  0x45   : > { %s5737_s20 = scalar_lea.vmem %s6429_s10, %s4735_s6  ;;  %s5746_s1 = scalar_lea.vmem %s6430_s12, %s4735_s6 }
  0x46   : > { %6431 = sst [smem:[#allocation22_spill]] %s5746_s1  ;;  %s6436_s10 = sld [smem:[#allocation39_spill]] }
  0x47   : > { %s6437_s28 = sld [smem:[#allocation40_spill]]  ;;  %s6439_s9 = sld [smem:[#allocation42_spill]] }
  0x48   : > { %s5787_s7 = scalar_lea.vmem [#allocation2], %s5677_s0 }
  0x49   : > { %s5708_s27 = scalar_lea.vmem %s6422_s26, %s4735_s6  ;;  %s5727_s26 = scalar_lea.vmem %s6427_s8, %s5223_s23 }
  0x4a   : > { %6423 = sst [smem:[#allocation21_spill]] %s5708_s27  ;;  %s5722_s17 = scalar_lea.vmem %s6426_s24, %s5224_s22 }
  0x4b   : > { %s4738_s22 = sshll.u32 %s5682_s3, 5  ;;  %s6440_s24 = sld [smem:[#allocation43_spill]] }
  0x4c   : > { %s5756_s18 = scalar_lea.vmem %s6433_s14, %s4738_s22  ;;  %s1029_s12 = scalar_lea.vmem %s6436_s10, %s5682_s3 }
  0x4d   : > { %6434 = sst [smem:[#allocation23_spill]] %s5756_s18  ;;  %s1032_s13 = scalar_lea.vmem %s6437_s28, %s5682_s3 }
  0x4e   : > { %s6438_s22 = sld [smem:[#allocation41_spill]]  ;;  %s1038_s19 = scalar_lea.vmem %s6439_s9, %s5682_s3 }
  0x4f   : > { %s6441_s6 = sld [smem:[#allocation8_spill]] }
  0x51   : > { %s1041_s5 = scalar_lea.vmem %s6440_s24, %s5682_s3 }
  0x54   : > { %s1035_s30 = scalar_lea.vmem %s6438_s22, %s5682_s3 }
  0x55   : > { %p4474_p0 = scmp.ne.s32.totalorder %s6441_s6, 0 }
  0x56   : > { %v1047_v0 = vld [vmem:[%s959_s29] sm:$0xff] (!%p4474_p0)  ;;  %vm1048_vm0 = vcmask (!%p4474_p0), 261120  }
  0x57   : > { %1046 = sbr.rel (%p4474_p0) target bundleno = 94 (0x5e), region = 112  ;;  %1049 = vst.msk [vmem:[%s5787_s7] sm:$0xff] (!%p4474_p0), %vm1048_vm0, %v1047_v0 }
  0x5e PF: > { %s6442_s10 = sld [smem:[#allocation18_spill]]  ;;  %v5298_v1 = vld [vmem:[%s5713_s21 + $0x40] sm:$0xff]   ;;  %v5486_v2 = vmov 0.0   ;;  %v5299_v3 = vld [vmem:[%s5713_s21 + $0x48] sm:$0xff]   ;;  %vm5487_vm1 = vmmov 0   ;;  %vm1082_vm2 = vcmask 261120   ;;  %s6448_s2 = scalar_lea.vmem %s6352_s16, %s5682_s3 }
  0x5f   : > { %4875 = vmatprep.subr.bf16.mxu1 %v5486_v2  ;;  %4867 = vmatprep.subr.bf16.mxu0 %v5486_v2  ;;  %v5300_v4 = vld [vmem:[%s5713_s21] sm:$0xff]   ;;  %v5301_v8 = vld [vmem:[%s5713_s21 + $0x8] sm:$0xff]   ;;  %vm1261_vm3 = vcmask 64512   ;;  %vm1324_vm4 = vcmask 1043456   ;;  %v5306_v46 = vld [vmem:[%s5713_s21 + $0x10] sm:$0xff]   ;;  %s6443_s14 = sld [smem:[#allocation21_spill]] }
  0x60   : > { %4876 = vmatpush3.bf16.msra.mxu1 %v5298_v1  ;;  %4879 = vmatprep.mubr.msk.bf16.mxu1 %vm5487_vm1, %v5486_v2  ;;  %v5800_v5 = vld [vmem:[%s5787_s7] sm:$0xff]  ;;  %v5307_v47 = vld [vmem:[%s5713_s21 + $0x18] sm:$0xff]   ;;  %v5304_v51 = vld [vmem:[%s5713_s21 + $0x50] sm:$0xff]   ;;  %s6446_s0 = sld [smem:[#allocation19_spill]]  ;;  %s6447_s1 = sld [smem:[#allocation20_spill]]  ;;  %vm2768_vm5 = vcmask 130048  }
  0x61   : > { %4877 = vmatprep.subr.bf16.mxu1 %v5486_v2  ;;  %4871 = vmatprep.mubr.msk.bf16.mxu0 %vm5487_vm1, %v5486_v2  ;;  %v4484_v10 = vld [vmem:[%s5722_s17 + $0x4] ss:$0 sm:$0xff]  ;;  %v4475_v15 = vld [vmem:[%s5722_s17] ss:$0 sm:$0xff]  ;;  %v5303_v26 = vld [vmem:[%s5713_s21 + $0x88] sm:$0xff]   ;;  %v5835_v27 = vpack.c.bf16 %v5800_v5, %v5800_v5  ;;  %s6452_s8 = sld [smem:[#allocation23_spill]] }
  0x62   : > { %4868 = vmatpush3.bf16.msra.mxu0 %v5300_v4  ;;  %v5302_v25 = vld [vmem:[%s5713_s21 + $0x80] sm:$0xff]   ;;  %v4493_v41 = vld [vmem:[%s5722_s17 + $0x8] ss:$0 sm:$0xff]  ;;  %v5305_v53 = vld [vmem:[%s5713_s21 + $0x58] sm:$0xff]   ;;  %vm4071_vm6 = vcmask 523264   ;;  %s6459_s28 = sld [smem:[#allocation9_spill]] }
  0x63   : > { %4869 = vmatprep.subr.bf16.mxu0 %v5486_v2  ;;  %v4513_v62 = vld [vmem:[%s5722_s17 + $0x5] ss:$0 sm:$0xff]  ;;  %v4504_v4 = vld [vmem:[%s5722_s17 + $0x1] ss:$0 sm:$0xff]  ;;  %s6460_s18 = sld [smem:[#allocation6_spill]]  ;;  %s6464_s24 = sld [smem:[#allocation44_spill]] }
  0x64   : > { %v5803_v6 = vld [vmem:[%s6442_s10] sm:$0xff]  ;;  %4878 = vmatpush3.bf16.msra.mxu1 %v5299_v3 }
  0x65   : > { %v1056_v7 = vadd.f32 %v5803_v6, %v5800_v5  ;;  %4891 = vmatprep.subr.bf16.mxu1 %v5486_v2 }
  0x66   : > { %4870 = vmatpush3.bf16.msra.mxu0 %v5301_v8 }
  0x67   : > { %v5811_v9 = vpack.c.bf16 %v1056_v7, %v1056_v7  ;;  %4883 = vmatprep.subr.bf16.mxu0 %v5486_v2 }
  0x69   : > { %4880 = vmatmul.mubr.msk.bf16.vlgmr.msra.gmra.mrb[0].mxu1 %vm1082_vm2, %v5811_v9  ;;  %4872 = vmatmul.mubr.msk.bf16.vlgmr.msra.gmra.mrb[0].mxu0 %vm1082_vm2, %v5811_v9 }
  0x6a   : > { %4893 = vmatprep.mubr.msk.bf16.mxu1 %vm5487_vm1, %v5486_v2  ;;  %4887 = vmatprep.mubr.msk.bf16.mxu0 %vm5487_vm1, %v5486_v2 }
  0x6b   : > { %4884 = vmatpush3.bf16.msra.mxu0 %v5302_v25 }
  0x6c   : > { %4885 = vmatprep.subr.bf16.mxu0 %v5486_v2 }
  0x6f   : > { %4886 = vmatpush3.bf16.msra.mxu0 %v5303_v26 }
  0x70   : > { %4897 = vmatprep.subr.bf16.mxu0 %v5486_v2 }
  0x72   : > { %4888 = vmatmul.mubr.msk.bf16.vlgmr.msra.gmra.mrb[4].mxu0 %vm1082_vm2, %v5835_v27 }
  0x73   : > { %4899 = vmatprep.mubr.msk.bf16.mxu0 %vm5487_vm1, %v5486_v2 }
 0x13c   : > { %v1185_v11 = vpop.f32.mrb[0].mxu1  ;;  %v1120_v16 = vpop.f32.mrb[0].mxu0 }
 0x13d   : > { %v1186_v12 = vadd.f32 %v4484_v10, %v1185_v11  ;;  %v4881_v13 = vpop.f32.mrb[1].mxu1  ;;  %v4873_v19 = vpop.f32.mrb[1].mxu0  ;;  %v1121_v22 = vadd.f32 %v4475_v15, %v1120_v16 }
 0x13e   : > { %v1188_v14 = vpop.f32.mrb[2].mxu1  ;;  %v1123_v20 = vpop.f32.mrb[2].mxu0  ;;  %v5308_v13 = vld [vmem:[%s5713_s21 + $0x90] sm:$0xff]  }
 0x13f   : > { %v1260_v17 = vpack.c.bf16 %v1186_v12, %v1186_v12  ;;  %v4882_v18 = vpop.f32.mrb[3].mxu1  ;;  %v4874_v23 = vpop.f32.mrb[3].mxu0  ;;  %v1259_v24 = vpack.c.bf16 %v1121_v22, %v1121_v22  ;;  %v5309_v14 = vld [vmem:[%s5713_s21 + $0x98] sm:$0xff]   ;;  %v4522_v20 = vld [vmem:[%s5722_s17 + $0x9] ss:$0 sm:$0xff] }
 0x141   : > { %v1266_v21 = vsel %vm1261_vm3, %v1260_v17, 0 }
 0x142   : > { %4892 = vmatpush3.bf16.xpose.msra.mxu1 %v1266_v21 }
 0x143   : > { %4903 = vmatprep.subr.bf16.mxu1 %v5486_v2 }
 0x145   : > { %v1253_v38 = vpop.f32.mrb[4].mxu0 }
 0x146   : > { %v4889_v39 = vpop.f32.mrb[5].mxu0  ;;  %v1254_v43 = vadd.f32 %v4493_v41, %v1253_v38  ;;  %v1369_v38 = vld [vmem:[%s6443_s14] sm:$0xf] }
 0x147   : > { %v1256_v40 = vpop.f32.mrb[6].mxu0  ;;  %v1725_v41 = vsel %vm1324_vm4, %v1369_v38, 0 }
 0x148   : > { %v4890_v42 = vpop.f32.mrb[7].mxu0  ;;  %v1320_v44 = vpack.c.bf16 %v1254_v43, %v1254_v43 }
 0x149   : > { %4894 = vmatmul.mubr.msk.bf16.vlgmr.msra.gmra.mrb[4].mxu1 %vm1261_vm3, %v1259_v24  ;;  %v5310_v42 = vld [vmem:[%s5713_s21 + $0x60] sm:$0xff]  }
 0x14a   : > { %4907 = vmatprep.mubr.msk.bf16.mxu1 %vm5487_vm1, %v5486_v2  ;;  %v1326_v45 = vsel %vm1324_vm4, %v1320_v44, 0  ;;  %4904 = vmatpush3.bf16.msra.mxu1 %v5306_v46  ;;  %v5311_v44 = vld [vmem:[%s5713_s21 + $0x68] sm:$0xff]   ;;  %v5312_v46 = vld [vmem:[%s5713_s21 + $0x20] sm:$0xff]  }
 0x14b   : > { %4898 = vmatpush3.bf16.msra.mxu0 %v1326_v45  ;;  %4905 = vmatprep.subr.bf16.mxu1 %v5486_v2 }
 0x14c   : > { %4911 = vmatprep.subr.bf16.mxu0 %v5486_v2 }
 0x14e   : > { %4906 = vmatpush3.bf16.msra.mxu1 %v5307_v47 }
 0x14f   : > { %4919 = vmatprep.subr.bf16.mxu1 %v5486_v2 }
 0x151   : > { %4908 = vmatmul.mubr.msk.bf16.vlgmr.msra.gmra.mrb[8].mxu1 %vm1082_vm2, %v5811_v9 }
 0x152   : > { %4923 = vmatprep.mubr.msk.bf16.mxu1 %vm5487_vm1, %v5486_v2  ;;  %4920 = vmatpush3.bf16.msra.mxu1 %v5308_v13 }
 0x153   : > { %4921 = vmatprep.subr.bf16.mxu1 %v5486_v2 }
 0x156   : > { %4922 = vmatpush3.bf16.msra.mxu1 %v5309_v14 }
 0x157   : > { %4933 = vmatprep.subr.bf16.mxu1 %v5486_v2 }
 0x159   : > { %4924 = vmatmul.mubr.msk.bf16.vlgmr.msra.gmra.mrb[12].mxu1 %vm1082_vm2, %v5835_v27 }
 0x15a   : > { %4935 = vmatprep.mubr.msk.bf16.mxu1 %vm5487_vm1, %v5486_v2 }
 0x21c   : > { %v1302_v28 = vpop.f32.mrb[4].mxu1 }
 0x21d   : > { %v4895_v29 = vpop.f32.mrb[5].mxu1  ;;  %v1308_v30 = vsel %vm1261_vm3, %v1302_v28, -inf }
 0x21e   : > { %1309 = vmax.xlane.f32.xlu0 %v1308_v30  ;;  %v1305_v31 = vpop.f32.mrb[6].mxu1 }
 0x21f   : > { %v4896_v32 = vpop.f32.mrb[7].mxu1 }
 0x224   : > { %v1429_v54 = vpop.f32.mrb[8].mxu1 }
 0x225   : > { %v4909_v55 = vpop.f32.mrb[9].mxu1  ;;  %v1430_v11 = vadd.f32 %v4504_v4, %v1429_v54 }
 0x226   : > { %v1432_v56 = vpop.f32.mrb[10].mxu1 }
 0x227   : > { %v4910_v57 = vpop.f32.mrb[11].mxu1  ;;  %v1565_v12 = vpack.c.bf16 %v1430_v11, %v1430_v11  ;;  %v4545_v56 = vld [vmem:[%s5722_s17 + $0x6] ss:$0 sm:$0xff] }
 0x22c   : > { %v1559_v21 = vpop.f32.mrb[12].mxu1 }
 0x22d   : > { %v1560_v22 = vadd.f32 %v4522_v20, %v1559_v21  ;;  %v4925_v23 = vpop.f32.mrb[13].mxu1 }
 0x22e   : > { %v1562_v24 = vpop.f32.mrb[14].mxu1 }
 0x22f   : > { %v1625_v25 = vpack.c.bf16 %v1560_v22, %v1560_v22  ;;  %v4926_v26 = vpop.f32.mrb[15].mxu1 }
 0x2ab   : > { %v1310_v33 = vpop.xlane.xlu0 %1309 }
 0x2ac   : > { %v1311_v34 = vsub.f32 %v1302_v28, %v1310_v33  ;;  %v1630_v28 = vsel %vm1324_vm4, %v1625_v25, 0 }
 0x2ad   : > { %4934 = vmatpush3.bf16.msra.mxu1 %v1630_v28 }
 0x2ae   : > { %v1312_v35 = vmul.f32 1.442695, %v1311_v34  ;;  %4945 = vmatprep.subr.bf16.mxu1 %v5486_v2  ;;  %v4528_v34 = vld [vmem:[%s6443_s14 + $0x4] sm:$0xf] }
 0x2b0   : > { %5352 = vpow2.f32 %v1312_v35  ;;  %v1679_v35 = vsel %vm1324_vm4, %v4528_v34, 0 }
 0x2ba   : > { %v5353_v36 = vpop.eup %5352 }
 0x2bb   : > { %v1314_v37 = vsel %vm1261_vm3, %v5353_v36, 0.0 }
 0x2bc   : > { %1315 = vadd.xlane.f32.xlu0 %v1314_v37 }
 0x349   : > { %v1316_v48 = vpop.xlane.xlu0 %1315 }
 0x34a   : > { %5354 = vrcp.f32 %v1316_v48 }
 0x354   : > { %v5355_v49 = vpop.eup %5354 }
 0x355   : > { %v1318_v50 = vmul.f32 %v5355_v49, %v5353_v36 }
 0x357   : > { %v1319_v52 = vpack.c.bf16 %v1318_v50, %v1318_v50 }
 0x359   : > { %4900 = vmatmul.mubr.msk.bf16.vlgmr.msra.gmra.mrb[8].mxu0 %vm1261_vm3, %v1319_v52 }
 0x35a   : > { %4912 = vmatpush3.bf16.msra.mxu0 %v5304_v51  ;;  %4915 = vmatprep.mubr.msk.bf16.mxu0 %vm5487_vm1, %v5486_v2  ;;  %v5313_v51 = vld [vmem:[%s5713_s21 + $0x28] sm:$0xff]  }
 0x35b   : > { %4913 = vmatprep.subr.bf16.mxu0 %v5486_v2 }
 0x35e   : > { %4914 = vmatpush3.bf16.msra.mxu0 %v5305_v53 }
 0x35f   : > { %4927 = vmatprep.subr.bf16.mxu0 %v5486_v2 }
 0x361   : > { %4916 = vmatmul.mubr.msk.bf16.vlgmr.msra.gmra.mrb[12].mxu0 %vm1082_vm2, %v5811_v9 }
 0x362   : > { %4929 = vmatprep.mubr.msk.bf16.mxu0 %vm5487_vm1, %v5486_v2 }
 0x42c   : > { %v5866_v58 = vpop.f32.mrb[8].mxu0 }
 0x42d   : > { %v4901_v59 = vpop.f32.mrb[9].mxu0  ;;  %v1368_v43 = vpack.c.bf16 %v5866_v58, %v5866_v58 }
 0x42e   : > { %v1365_v60 = vpop.f32.mrb[10].mxu0 }
 0x42f   : > { %v4902_v61 = vpop.f32.mrb[11].mxu0 }
 0x434   : > { %v1494_v63 = vpop.f32.mrb[12].mxu0 }
 0x435   : > { %v1495_v0 = vadd.f32 %v4513_v62, %v1494_v63  ;;  %v4917_v1 = vpop.f32.mrb[13].mxu0 }
 0x436   : > { %v1497_v3 = vpop.f32.mrb[14].mxu0 }
 0x437   : > { %v1566_v7 = vpack.c.bf16 %v1495_v0, %v1495_v0  ;;  %v4918_v8 = vpop.f32.mrb[15].mxu0 }
 0x438   : > { %v4536_v8 = vld [vmem:[%s5722_s17 + $0x2] ss:$0 sm:$0xff] }
 0x439   : > { %v1571_v10 = vsel %vm1261_vm3, %v1566_v7, 0 }
 0x43a   : > { %4928 = vmatpush3.bf16.xpose.msra.mxu0 %v1571_v10 }
 0x43b   : > { %4939 = vmatprep.subr.bf16.mxu0 %v5486_v2 }
 0x441   : > { %4930 = vmatmul.mubr.msk.bf16.vlgmr.msra.gmra.mrb[16].mxu0 %vm1261_vm3, %v1565_v12 }
 0x442   : > { %4941 = vmatprep.mubr.msk.bf16.mxu0 %vm5487_vm1, %v5486_v2  ;;  %4940 = vmatpush3.bf16.msra.mxu0 %v1679_v35 }
 0x443   : > { %4951 = vmatprep.subr.bf16.mxu0 %v5486_v2 }
 0x514   : > { %v1607_v15 = vpop.f32.mrb[16].mxu0 }
 0x515   : > { %v4931_v16 = vpop.f32.mrb[17].mxu0  ;;  %v1613_v17 = vsel %vm1261_vm3, %v1607_v15, -inf }
 0x516   : > { %1614 = vmax.xlane.f32.xlu1 %v1613_v17  ;;  %v1610_v18 = vpop.f32.mrb[18].mxu0  ;;  %v5314_v16 = vld [vmem:[%s5713_s21 + $0xa0] sm:$0xff]   ;;  %v5315_v17 = vld [vmem:[%s5713_s21 + $0xa8] sm:$0xff]  }
 0x517   : > { %v4932_v19 = vpop.f32.mrb[19].mxu0 }
 0x5a3   : > { %v1615_v29 = vpop.xlane.xlu1 %1614 }
 0x5a4   : > { %v1616_v30 = vsub.f32 %v1607_v15, %v1615_v29 }
 0x5a6   : > { %v1617_v31 = vmul.f32 1.442695, %v1616_v30 }
 0x5a8   : > { %5356 = vpow2.f32 %v1617_v31 }
 0x5b2   : > { %v5357_v32 = vpop.eup %5356 }
 0x5b3   : > { %v1619_v33 = vsel %vm1261_vm3, %v5357_v32, 0.0 }
 0x5b4   : > { %1620 = vadd.xlane.f32.xlu1 %v1619_v33 }
 0x641   : > { %v1621_v36 = vpop.xlane.xlu1 %1620 }
 0x642   : > { %5358 = vrcp.f32 %v1621_v36 }
 0x64c   : > { %v5359_v37 = vpop.eup %5358 }
 0x64d   : > { %v1623_v39 = vmul.f32 %v5359_v37, %v5357_v32  ;;  %v4554_v32 = vld [vmem:[%s5722_s17 + $0xa] ss:$0 sm:$0xff] }
 0x64e   : > { %v4560_v37 = vld [vmem:[%s6443_s14 + $0x8] sm:$0xf] }
 0x64f   : > { %v1624_v40 = vpack.c.bf16 %v1623_v39, %v1623_v39  ;;  %v2076_v38 = vsel %vm1324_vm4, %v4560_v37, 0 }
 0x651   : > { %4936 = vmatmul.mubr.msk.bf16.vlgmr.msra.gmra.mrb[16].mxu1 %vm1261_vm3, %v1624_v40 }
 0x652   : > { %4946 = vmatpush3.bf16.msra.mxu1 %v1725_v41  ;;  %4947 = vmatprep.mubr.msk.bf16.mxu1 %vm5487_vm1, %v5486_v2 }
 0x653   : > { %4959 = vmatprep.subr.bf16.mxu1 %v5486_v2 }
 0x659   : > { %4948 = vmatmul.mubr.msk.bf16.vlgmr.msra.gmra.mrb[20].mxu1 %vm1261_vm3, %v1368_v43  ;;  %v5318_v43 = vld [vmem:[%s5713_s21 + $0x30] sm:$0xff]  }
 0x65a   : > { %4960 = vmatpush3.bf16.msra.mxu1 %v5310_v42  ;;  %4963 = vmatprep.mubr.msk.bf16.mxu1 %vm5487_vm1, %v5486_v2 }
 0x65b   : > { %4961 = vmatprep.subr.bf16.mxu1 %v5486_v2 }
 0x65e   : > { %4962 = vmatpush3.bf16.msra.mxu1 %v5311_v44  ;;  %v5319_v44 = vld [vmem:[%s5713_s21 + $0x38] sm:$0xff]  }
 0x65f   : > { %4975 = vmatprep.subr.bf16.mxu1 %v5486_v2 }
 0x661   : > { %4964 = vmatmul.mubr.msk.bf16.vlgmr.msra.gmra.mrb[24].mxu1 %vm1082_vm2, %v5811_v9 }
 0x662   : > { %4977 = vmatprep.mubr.msk.bf16.mxu1 %vm5487_vm1, %v5486_v2 }
 0x724   : > { %v1666_v45 = vpop.f32.mrb[16].mxu1 }
 0x725   : > { %v1672_v47 = vpack.c.bf16 %v1666_v45, %v1666_v45  ;;  %v4937_v48 = vpop.f32.mrb[17].mxu1 }
 0x726   : > { %v1669_v49 = vpop.f32.mrb[18].mxu1 }
 0x727   : > { %v4938_v50 = vpop.f32.mrb[19].mxu1  ;;  %4942 = vmatmul.mubr.msk.bf16.vlgmr.msra.gmra.mrb[20].mxu0 %vm1261_vm3, %v1672_v47 }
 0x728   : > { %4952 = vmatpush3.bf16.msra.mxu0 %v5312_v46  ;;  %4955 = vmatprep.mubr.msk.bf16.mxu0 %vm5487_vm1, %v5486_v2  ;;  %v5316_v46 = vld [vmem:[%s5713_s21 + $0x70] sm:$0xff]  }
 0x729   : > { %4953 = vmatprep.subr.bf16.mxu0 %v5486_v2 }
 0x72c   : > { %v1761_v52 = vpop.f32.mrb[20].mxu1  ;;  %4954 = vmatpush3.bf16.msra.mxu0 %v5313_v51  ;;  %v5317_v51 = vld [vmem:[%s5713_s21 + $0x78] sm:$0xff]  }
 0x72d   : > { %v4949_v53 = vpop.f32.mrb[21].mxu1  ;;  %4967 = vmatprep.subr.bf16.mxu0 %v5486_v2 }
 0x72e   : > { %v1764_v54 = vpop.f32.mrb[22].mxu1 }
 0x72f   : > { %v4950_v55 = vpop.f32.mrb[23].mxu1  ;;  %4956 = vmatmul.mubr.msk.bf16.vlgmr.msra.gmra.mrb[24].mxu0 %vm1082_vm2, %v5811_v9 }
 0x730   : > { %4971 = vmatprep.mubr.msk.bf16.mxu0 %vm5487_vm1, %v5486_v2  ;;  %4968 = vmatpush3.bf16.msra.mxu0 %v5314_v16 }
 0x731   : > { %4969 = vmatprep.subr.bf16.mxu0 %v5486_v2 }
 0x734   : > { %v1891_v57 = vpop.f32.mrb[24].mxu1  ;;  %4970 = vmatpush3.bf16.msra.mxu0 %v5315_v17 }
 0x735   : > { %v1892_v58 = vadd.f32 %v4545_v56, %v1891_v57  ;;  %v4965_v59 = vpop.f32.mrb[25].mxu1  ;;  %4981 = vmatprep.subr.bf16.mxu0 %v5486_v2 }
 0x736   : > { %v1894_v60 = vpop.f32.mrb[26].mxu1 }
 0x737   : > { %v1963_v61 = vpack.c.bf16 %v1892_v58, %v1892_v58  ;;  %v4966_v62 = vpop.f32.mrb[27].mxu1  ;;  %4972 = vmatmul.mubr.msk.bf16.vlgmr.msra.gmra.mrb[28].mxu0 %vm1082_vm2, %v5835_v27 }
 0x738   : > { %4983 = vmatprep.mubr.msk.bf16.mxu0 %vm5487_vm1, %v5486_v2 }
 0x739   : > { %v1968_v63 = vsel %vm1261_vm3, %v1963_v61, 0  ;;  %v4576_v61 = vld [vmem:[%s5722_s17 + $0x7] ss:$0 sm:$0xff] }
 0x73a   : > { %4976 = vmatpush3.bf16.xpose.msra.mxu1 %v1968_v63 }
 0x73b   : > { %4987 = vmatprep.subr.bf16.mxu1 %v5486_v2 }
 0x7fa   : > { %v1715_v0 = vpop.f32.mrb[20].mxu0 }
 0x7fb   : > { %v5924_v1 = vadd.f32 %v1761_v52, %v1715_v0  ;;  %v4943_v3 = vpop.f32.mrb[21].mxu0 }
 0x7fc   : > { %v1718_v4 = vpop.f32.mrb[22].mxu0  ;;  %v4567_v3 = vld [vmem:[%s5722_s17 + $0x3] ss:$0 sm:$0xff] }
 0x7fd   : > { %v4944_v7 = vpop.f32.mrb[23].mxu0 }
 0x802   : > { %v1826_v10 = vpop.f32.mrb[24].mxu0 }
 0x803   : > { %v1827_v11 = vadd.f32 %v4536_v8, %v1826_v10  ;;  %v4957_v12 = vpop.f32.mrb[25].mxu0 }
 0x804   : > { %v1829_v13 = vpop.f32.mrb[26].mxu0  ;;  %v5321_v12 = vld [vmem:[%s5713_s21 + $0xb8] sm:$0xff]  }
 0x805   : > { %v1962_v14 = vpack.c.bf16 %v1827_v11, %v1827_v11  ;;  %v4958_v15 = vpop.f32.mrb[27].mxu0  ;;  %v5320_v11 = vld [vmem:[%s5713_s21 + $0xb0] sm:$0xff]   ;;  %s6444_s21 = sld [smem:[#allocation31_spill]] }
 0x807   : > { %4978 = vmatmul.mubr.msk.bf16.vlgmr.msra.gmra.mrb[28].mxu1 %vm1261_vm3, %v1962_v14 }
 0x808   : > { %4989 = vmatprep.mubr.msk.bf16.mxu1 %vm5487_vm1, %v5486_v2  ;;  %4988 = vmatpush3.bf16.msra.mxu1 %v2076_v38 }
 0x809   : > { %5001 = vmatprep.subr.bf16.mxu1 %v5486_v2 }
 0x80a   : > { %v1956_v29 = vpop.f32.mrb[28].mxu0 }
 0x80b   : > { %v4973_v30 = vpop.f32.mrb[29].mxu0  ;;  %v1957_v34 = vadd.f32 %v4554_v32, %v1956_v29  ;;  %s6445_s29 = scalar_lea.vmem %s6444_s21, %s5682_s3 }
 0x80c   : > { %v1959_v31 = vpop.f32.mrb[30].mxu0 }
 0x80d   : > { %v4974_v33 = vpop.f32.mrb[31].mxu0  ;;  %v2022_v35 = vpack.c.bf16 %v1957_v34, %v1957_v34  ;;  %v4591_v31 = vld [vmem:[%s6443_s14 + $0xc] sm:$0xf] }
 0x80e   : > { %v2428_v32 = vsel %vm1324_vm4, %v4591_v31, 0 }
 0x80f   : > { %v2027_v36 = vsel %vm1324_vm4, %v2022_v35, 0 }
 0x810   : > { %4982 = vmatpush3.bf16.msra.mxu0 %v2027_v36 }
 0x811   : > { %4993 = vmatprep.subr.bf16.mxu0 %v5486_v2 }
 0x8da   : > { %v2004_v18 = vpop.f32.mrb[28].mxu1 }
 0x8db   : > { %v4979_v19 = vpop.f32.mrb[29].mxu1  ;;  %v2010_v20 = vsel %vm1261_vm3, %v2004_v18, -inf }
 0x8dc   : > { %2011 = vmax.xlane.f32.xlu0 %v2010_v20  ;;  %v2007_v21 = vpop.f32.mrb[30].mxu1 }
 0x8dd   : > { %v4980_v22 = vpop.f32.mrb[31].mxu1 }
 0x969   : > { %v2012_v23 = vpop.xlane.xlu0 %2011 }
 0x96a   : > { %v2013_v24 = vsub.f32 %v2004_v18, %v2012_v23 }
 0x96c   : > { %v2014_v25 = vmul.f32 1.442695, %v2013_v24 }
 0x96e   : > { %5360 = vpow2.f32 %v2014_v25  ;;  %v4585_v25 = vld [vmem:[%s5722_s17 + $0xb] ss:$0 sm:$0xff]  ;;  %s6455_s17 = sld [smem:[#allocation36_spill]] }
 0x974   : > { %s6456_s21 = scalar_lea.vmem %s6455_s17, %s5682_s3 }
 0x978   : > { %v5361_v26 = vpop.eup %5360 }
 0x979   : > { %v2016_v28 = vsel %vm1261_vm3, %v5361_v26, 0.0 }
 0x97a   : > { %2017 = vadd.xlane.f32.xlu1 %v2016_v28 }
 0xa07   : > { %v2018_v39 = vpop.xlane.xlu1 %2017 }
 0xa08   : > { %5362 = vrcp.f32 %v2018_v39 }
 0xa12   : > { %v5363_v40 = vpop.eup %5362 }
 0xa13   : > { %v2020_v41 = vmul.f32 %v5363_v40, %v5361_v26 }
 0xa15   : > { %v2021_v42 = vpack.c.bf16 %v2020_v41, %v2020_v41 }
 0xa17   : > { %4984 = vmatmul.mubr.msk.bf16.vlgmr.msra.gmra.mrb[32].mxu0 %vm1261_vm3, %v2021_v42 }
 0xa18   : > { %4997 = vmatprep.mubr.msk.bf16.mxu0 %vm5487_vm1, %v5486_v2  ;;  %4994 = vmatpush3.bf16.msra.mxu0 %v5318_v43  ;;  %v4593_v43 = vld [vmem:[%s6445_s29] ss:$0 sm:$0xff] }
 0xa19   : > { %4995 = vmatprep.subr.bf16.mxu0 %v5486_v2 }
 0xa1c   : > { %4996 = vmatpush3.bf16.msra.mxu0 %v5319_v44 }
 0xa1d   : > { %5009 = vmatprep.subr.bf16.mxu0 %v5486_v2 }
 0xa1f   : > { %4998 = vmatmul.mubr.msk.bf16.vlgmr.msra.gmra.mrb[36].mxu0 %vm1082_vm2, %v5811_v9 }
 0xa20   : > { %5013 = vmatprep.mubr.msk.bf16.mxu0 %vm5487_vm1, %v5486_v2  ;;  %5010 = vmatpush3.bf16.msra.mxu0 %v5320_v11  ;;  %v4595_v11 = vld [vmem:[%s1029_s12] ss:$0 sm:$0xff] }
 0xa21   : > { %5011 = vmatprep.subr.bf16.mxu0 %v5486_v2 }
 0xa24   : > { %5012 = vmatpush3.bf16.msra.mxu0 %v5321_v12 }
 0xa25   : > { %5023 = vmatprep.subr.bf16.mxu0 %v5486_v2 }
 0xa27   : > { %5014 = vmatmul.mubr.msk.bf16.vlgmr.msra.gmra.mrb[40].mxu0 %vm1082_vm2, %v5835_v27 }
 0xa28   : > { %5025 = vmatprep.mubr.msk.bf16.mxu0 %vm5487_vm1, %v5486_v2 }
 0xaea   : > { %v2063_v45 = vpop.f32.mrb[32].mxu0 }
 0xaeb   : > { %v2069_v47 = vpack.c.bf16 %v2063_v45, %v2063_v45  ;;  %v4985_v48 = vpop.f32.mrb[33].mxu0 }
 0xaec   : > { %v2066_v49 = vpop.f32.mrb[34].mxu0 }
 0xaed   : > { %v4986_v50 = vpop.f32.mrb[35].mxu0  ;;  %4990 = vmatmul.mubr.msk.bf16.vlgmr.msra.gmra.mrb[32].mxu1 %vm1261_vm3, %v2069_v47 }
 0xaee   : > { %5002 = vmatpush3.bf16.msra.mxu1 %v5316_v46  ;;  %5005 = vmatprep.mubr.msk.bf16.mxu1 %vm5487_vm1, %v5486_v2 }
 0xaef   : > { %5003 = vmatprep.subr.bf16.mxu1 %v5486_v2 }
 0xaf2   : > { %5004 = vmatpush3.bf16.msra.mxu1 %v5317_v51  ;;  %v2178_v52 = vpop.f32.mrb[36].mxu0 }
 0xaf3   : > { %5017 = vmatprep.subr.bf16.mxu1 %v5486_v2  ;;  %v4999_v53 = vpop.f32.mrb[37].mxu0  ;;  %v2179_v10 = vadd.f32 %v4567_v3, %v2178_v52 }
 0xaf4   : > { %v2181_v54 = vpop.f32.mrb[38].mxu0 }
 0xaf5   : > { %5006 = vmatmul.mubr.msk.bf16.vlgmr.msra.gmra.mrb[36].mxu1 %vm1082_vm2, %v5811_v9  ;;  %v5000_v55 = vpop.f32.mrb[39].mxu0 }
 0xaf6   : > { %5019 = vmatprep.mubr.msk.bf16.mxu1 %vm5487_vm1, %v5486_v2 }
 0xafa   : > { %v2308_v27 = vpop.f32.mrb[40].mxu0 }
 0xafb   : > { %v5015_v23 = vpop.f32.mrb[41].mxu0  ;;  %v2309_v28 = vadd.f32 %v4585_v25, %v2308_v27 }
 0xafc   : > { %v2311_v24 = vpop.f32.mrb[42].mxu0  ;;  %v4596_v23 = vld [vmem:[%s5732_s4] ss:$0 sm:$0xff] }
 0xafd   : > { %v5016_v26 = vpop.f32.mrb[43].mxu0  ;;  %v2374_v29 = vpack.c.bf16 %v2309_v28, %v2309_v28 }
 0xaff   : > { %v2379_v30 = vsel %vm1324_vm4, %v2374_v29, 0  ;;  %v5326_v29 = vld [vmem:[%s5727_s26 + $0x10] sm:$0xff]  }
 0xb00   : > { %5024 = vmatpush3.bf16.msra.mxu0 %v2379_v30 }
 0xb01   : > { %5035 = vmatprep.subr.bf16.mxu0 %v5486_v2 }
 0xbc0   : > { %v2112_v56 = vpop.f32.mrb[32].mxu1 }
 0xbc1   : > { %v5969_v57 = vadd.f32 %v2112_v56, %v5924_v1  ;;  %v4991_v58 = vpop.f32.mrb[33].mxu1  ;;  %v2314_v1 = vpack.c.bf16 %v2179_v10, %v2179_v10  ;;  %v5322_v56 = vld [vmem:[%s5727_s26 + $0x40] sm:$0xff]  }
 0xbc2   : > { %v2115_v59 = vpop.f32.mrb[34].mxu1  ;;  %v6013_v58 = vld [vmem:[%s6446_s0] sm:$0xff] }
 0xbc3   : > { %v4992_v60 = vpop.f32.mrb[35].mxu1  ;;  %v1054_v59 = vld [vmem:[%s6447_s1] sm:$0xff] }
 0xbc4   : > { %v1055_v60 = vld [vmem:[%s6447_s1 + $0x8] sm:$0xff]  ;;  %v4594_v10 = vld [vmem:[%s6448_s2] ss:$0 sm:$0xff] }
 0xbc8   : > { %v2243_v62 = vpop.f32.mrb[36].mxu1 }
 0xbc9   : > { %v2244_v9 = vadd.f32 %v4576_v61, %v2243_v62  ;;  %v5007_v63 = vpop.f32.mrb[37].mxu1  ;;  %v2511_v61 = vadd.f32 %v1054_v59, %v6013_v58 }
 0xbca   : > { %v2246_v0 = vpop.f32.mrb[38].mxu1  ;;  %v5324_v63 = vld [vmem:[%s5727_s26] sm:$0xff]  }
 0xbcb   : > { %v2315_v4 = vpack.c.bf16 %v2244_v9, %v2244_v9  ;;  %v5008_v7 = vpop.f32.mrb[39].mxu1  ;;  %v5325_v0 = vld [vmem:[%s5727_s26 + $0x8] sm:$0xff]  }
 0xbcd   : > { %v2320_v8 = vsel %vm1261_vm3, %v2315_v4, 0 }
 0xbce   : > { %5018 = vmatpush3.bf16.xpose.msra.mxu1 %v2320_v8 }
 0xbcf   : > { %5029 = vmatprep.subr.bf16.mxu1 %v5486_v2 }
 0xbd5   : > { %5020 = vmatmul.mubr.msk.bf16.vlgmr.msra.gmra.mrb[40].mxu1 %vm1261_vm3, %v2314_v1 }
 0xbd6   : > { %5031 = vmatprep.mubr.msk.bf16.mxu1 %vm5487_vm1, %v5486_v2  ;;  %5030 = vmatpush3.bf16.msra.mxu1 %v2428_v32  ;;  %v5327_v32 = vld [vmem:[%s5727_s26 + $0x18] sm:$0xff]  }
 0xbd7   : > { %5043 = vmatprep.subr.bf16.mxu1 %v5486_v2 }
 0xca8   : > { %v2356_v13 = vpop.f32.mrb[40].mxu1 }
 0xca9   : > { %v5021_v14 = vpop.f32.mrb[41].mxu1  ;;  %v2362_v15 = vsel %vm1261_vm3, %v2356_v13, -inf }
 0xcaa   : > { %2363 = vmax.xlane.f32.xlu0 %v2362_v15  ;;  %v2359_v16 = vpop.f32.mrb[42].mxu1 }
 0xcab   : > { %v5022_v17 = vpop.f32.mrb[43].mxu1  ;;  %v4605_v16 = vld [vmem:[%s5732_s4 + $0x4] ss:$0 sm:$0xff] }
 0xd37   : > { %v2364_v18 = vpop.xlane.xlu0 %2363 }
 0xd38   : > { %v2365_v19 = vsub.f32 %v2356_v13, %v2364_v18 }
 0xd3a   : > { %v2366_v20 = vmul.f32 1.442695, %v2365_v19 }
 0xd3c   : > { %5364 = vpow2.f32 %v2366_v20 }
 0xd46   : > { %v5365_v21 = vpop.eup %5364 }
 0xd47   : > { %v2368_v22 = vsel %vm1261_vm3, %v5365_v21, 0.0 }
 0xd48   : > { %2369 = vadd.xlane.f32.xlu1 %v2368_v22 }
 0xdd5   : > { %v2370_v33 = vpop.xlane.xlu1 %2369 }
 0xdd6   : > { %5366 = vrcp.f32 %v2370_v33  ;;  %v5328_v33 = vld [vmem:[%s5727_s26 + $0x80] sm:$0xff]  }
 0xde0   : > { %v5367_v34 = vpop.eup %5366 }
 0xde1   : > { %v2372_v35 = vmul.f32 %v5367_v34, %v5365_v21  ;;  %v5329_v34 = vld [vmem:[%s5727_s26 + $0x88] sm:$0xff]  }
 0xde3   : > { %v2373_v36 = vpack.c.bf16 %v2372_v35, %v2372_v35 }
 0xde5   : > { %5026 = vmatmul.mubr.msk.bf16.vlgmr.msra.gmra.mrb[44].mxu0 %vm1261_vm3, %v2373_v36 }
 0xde6   : > { %5039 = vmatprep.mubr.msk.bf16.mxu0 %vm5487_vm1, %v5486_v2  ;;  %5036 = vmatpush3.bf16.msra.mxu0 %v5324_v63 }
 0xde7   : > { %5037 = vmatprep.subr.bf16.mxu0 %v5486_v2 }
 0xdea   : > { %5038 = vmatpush3.bf16.msra.mxu0 %v5325_v0 }
 0xdeb   : > { %5051 = vmatprep.subr.bf16.mxu0 %v5486_v2 }
 0xeb8   : > { %v2415_v37 = vpop.f32.mrb[44].mxu0 }
 0xeb9   : > { %v2421_v38 = vpack.c.bf16 %v2415_v37, %v2415_v37  ;;  %v5027_v39 = vpop.f32.mrb[45].mxu0 }
 0xeba   : > { %v2418_v40 = vpop.f32.mrb[46].mxu0 }
 0xebb   : > { %v5028_v41 = vpop.f32.mrb[47].mxu0  ;;  %5032 = vmatmul.mubr.msk.bf16.vlgmr.msra.gmra.mrb[44].mxu1 %vm1261_vm3, %v2421_v38 }
 0xebc   : > { %5047 = vmatprep.mubr.msk.bf16.mxu1 %vm5487_vm1, %v5486_v2  ;;  %5044 = vmatpush3.bf16.msra.mxu1 %v5322_v56 }
 0xebd   : > { %5045 = vmatprep.subr.bf16.mxu1 %v5486_v2 }
 0xf8e   : > { %v2464_v42 = vpop.f32.mrb[44].mxu1 }
 0xf8f   : > { %v2470_v44 = vadd.f32 %v2464_v42, %v5969_v57  ;;  %v5033_v45 = vpop.f32.mrb[45].mxu1  ;;  %v5323_v57 = vld [vmem:[%s5727_s26 + $0x48] sm:$0xff]  }
 0xf90   : > { %v2467_v46 = vpop.f32.mrb[46].mxu1  ;;  %5046 = vmatpush3.bf16.msra.mxu1 %v5323_v57 }
 0xf91   : > { %v2478_v47 = vadd.f32 %v4593_v43, %v2470_v44  ;;  %v5034_v48 = vpop.f32.mrb[47].mxu1  ;;  %5059 = vmatprep.subr.bf16.mxu1 %v5486_v2 }
 0xf93   : > { %v2479_v49 = vadd.f32 %v2478_v47, %v5800_v5  ;;  %v1053_v5 = vld [vmem:[%s6446_s0 + $0x8] sm:$0xff]  ;;  %s6457_s0 = sld [smem:[#allocation38_spill]] }
 0xf94   : > { %v2512_v62 = vadd.f32 %v1055_v60, %v1053_v5  ;;  %v6069_v35 = vpack.c.bf16 %v1053_v5, %v6013_v58  ;;  %v5330_v60 = vld [vmem:[%s5727_s26 + $0x50] sm:$0xff]  }
 0xf95   : > { %v2480_v50 = vsel %vm1082_vm2, %v2479_v49, 0.0 }
 0xf96   : > { %2481 = vadd.xlane.f32.xlu0 %v2480_v50  ;;  %v6020_v9 = vpack.c.bf16 %v2512_v62, %v2511_v61  ;;  %v5331_v62 = vld [vmem:[%s5727_s26 + $0x58] sm:$0xff]  }
 0xf98   : > { %5048 = vmatmul.mubr.msk.bf16.vlgmr.msra.gmra.mrb[48].mxu1 %vm1082_vm2, %v6020_v9 }
 0xf99   : > { %5061 = vmatprep.mubr.msk.bf16.mxu1 %vm5487_vm1, %v5486_v2  ;;  %s6458_s1 = scalar_lea.vmem %s6457_s0, %s5682_s3 }
0x1023   : > { %v2482_v51 = vpop.xlane.xlu0 %2481 }
0x1024   : > { %v2484_v52 = vmul.f32 0.03125, %v2482_v51 }
0x1026   : > { %v2485_v53 = vsub.f32 %v2479_v49, %v2484_v52  ;;  %v4614_v52 = vld [vmem:[%s5732_s4 + $0x8] ss:$0 sm:$0xff] }
0x1028   : > { %v2486_v54 = vmul.f32 %v2485_v53, %v2485_v53 }
0x102a   : > { %v2487_v55 = vsel %vm1082_vm2, %v2486_v54, 0.0 }
0x102b   : > { %2488 = vadd.xlane.f32.xlu1 %v2487_v55 }
0x106b   : > { %v2644_v17 = vpop.f32.mrb[48].mxu1 }
0x106c   : > { %v2645_v18 = vadd.f32 %v4605_v16, %v2644_v17  ;;  %v5049_v19 = vpop.f32.mrb[49].mxu1  ;;  %v4625_v17 = vld [vmem:[%s5732_s4 + $0x1] ss:$0 sm:$0xff] }
0x106d   : > { %v2647_v20 = vpop.f32.mrb[50].mxu1 }
0x106e   : > { %v2648_v21 = vadd.f32 %v4605_v16, %v2647_v20  ;;  %v5050_v22 = vpop.f32.mrb[51].mxu1 }
0x106f   : > { %v5333_v22 = vld [vmem:[%s5727_s26 + $0x98] sm:$0xff]  }
0x1070   : > { %v2721_v27 = vpack.c.bf16 %v2648_v21, %v2645_v18  ;;  %v5332_v21 = vld [vmem:[%s5727_s26 + $0x90] sm:$0xff]  }
0x10b8   : > { %v2489_v3 = vpop.xlane.xlu1 %2488 }
0x10b9   : > { %v2490_v4 = vmul.f32 0.03125, %v2489_v3 }
0x10bb   : > { %v2491_v7 = vadd.f32 1e-05, %v2490_v4 }
0x10bd   : > { %5368 = vrsqrt.f32 %v2491_v7  ;;  %v4634_v7 = vld [vmem:[%s5732_s4 + $0x5] ss:$0 sm:$0xff] }
0x10c7   : > { %v5369_v8 = vpop.eup %5368 }
0x10c8   : > { %v2493_v1 = vmul.f32 %v5369_v8, %v2485_v53 }
0x10ca   : > { %v2501_v12 = vmul.f32 %v4594_v10, %v2493_v1 }
0x10cc   : > { %v6040_v13 = vadd.f32 %v4595_v11, %v2501_v12 }
0x10ce   : > { %v2510_v14 = vadd.f32 %v6040_v13, %v5803_v6  ;;  %v2726_v6 = vsel %vm1261_vm3, %v2721_v27, 0 }
0x10cf   : > { %5060 = vmatpush3.bf16.xpose.msra.mxu1 %v2726_v6 }
0x10d0   : > { %v6044_v15 = vpack.c.bf16 %v2510_v14, %v2510_v14  ;;  %5071 = vmatprep.subr.bf16.mxu1 %v5486_v2 }
0x10d2   : > { %5040 = vmatmul.mubr.msk.bf16.vlgmr.msra.gmra.mrb[48].mxu0 %vm1082_vm2, %v6044_v15 }
0x10d3   : > { %5055 = vmatprep.mubr.msk.bf16.mxu0 %vm5487_vm1, %v5486_v2  ;;  %5052 = vmatpush3.bf16.msra.mxu0 %v5328_v33 }
0x10d4   : > { %5053 = vmatprep.subr.bf16.mxu0 %v5486_v2 }
0x10d7   : > { %5054 = vmatpush3.bf16.msra.mxu0 %v5329_v34  ;;  %v4643_v34 = vld [vmem:[%s5732_s4 + $0x9] ss:$0 sm:$0xff] }
0x10d8   : > { %5065 = vmatprep.subr.bf16.mxu0 %v5486_v2 }
0x10da   : > { %5056 = vmatmul.mubr.msk.bf16.vlgmr.msra.gmra.mrb[52].mxu0 %vm1082_vm2, %v6069_v35 }
0x10db   : > { %5067 = vmatprep.mubr.msk.bf16.mxu0 %vm5487_vm1, %v5486_v2 }
0x11a5   : > { %v2576_v24 = vpop.f32.mrb[48].mxu0 }
0x11a6   : > { %v2577_v25 = vadd.f32 %v4596_v23, %v2576_v24  ;;  %v5041_v26 = vpop.f32.mrb[49].mxu0 }
0x11a7   : > { %v2579_v28 = vpop.f32.mrb[50].mxu0 }
0x11a8   : > { %v2720_v30 = vpack.c.bf16 %v2577_v25, %v2577_v25  ;;  %v5042_v31 = vpop.f32.mrb[51].mxu0 }
0x11aa   : > { %5062 = vmatmul.mubr.msk.bf16.vlgmr.msra.gmra.mrb[52].mxu1 %vm1261_vm3, %v2720_v30 }
0x11ab   : > { %5072 = vmatpush3.bf16.msra.mxu1 %v5326_v29  ;;  %5075 = vmatprep.mubr.msk.bf16.mxu1 %vm5487_vm1, %v5486_v2 }
0x11ac   : > { %5073 = vmatprep.subr.bf16.mxu1 %v5486_v2 }
0x11ad   : > { %v2713_v45 = vpop.f32.mrb[52].mxu0 }
0x11ae   : > { %v5057_v46 = vpop.f32.mrb[53].mxu0  ;;  %v2714_v53 = vadd.f32 %v4614_v52, %v2713_v45  ;;  %v2826_v45 = vld [vmem:[%s5737_s20] sm:$0xf] }
0x11af   : > { %5074 = vmatpush3.bf16.msra.mxu1 %v5327_v32  ;;  %v2716_v54 = vpop.f32.mrb[54].mxu0 }
0x11b0   : > { %5087 = vmatprep.subr.bf16.mxu1 %v5486_v2  ;;  %v5058_v55 = vpop.f32.mrb[55].mxu0  ;;  %v2717_v56 = vadd.f32 %v4614_v52, %v2716_v54 }
0x11b2   : > { %5076 = vmatmul.mubr.msk.bf16.vlgmr.msra.gmra.mrb[56].mxu1 %vm1082_vm2, %v6044_v15  ;;  %v2781_v57 = vpack.c.bf16 %v2717_v56, %v2714_v53  ;;  %v5336_v53 = vld [vmem:[%s5727_s26 + $0x20] sm:$0xff]  }
0x11b3   : > { %5091 = vmatprep.mubr.msk.bf16.mxu1 %vm5487_vm1, %v5486_v2  ;;  %5088 = vmatpush3.bf16.msra.mxu1 %v5332_v21 }
0x11b4   : > { %5066 = vmatpush3.bf16.msra.mxu0 %v2781_v57  ;;  %5089 = vmatprep.subr.bf16.mxu1 %v5486_v2 }
0x11b5   : > { %5079 = vmatprep.subr.bf16.mxu0 %v5486_v2 }
0x11b7   : > { %5090 = vmatpush3.bf16.msra.mxu1 %v5333_v22 }
0x11b8   : > { %5101 = vmatprep.subr.bf16.mxu1 %v5486_v2 }
0x11ba   : > { %5092 = vmatmul.mubr.msk.bf16.vlgmr.msra.gmra.mrb[60].mxu1 %vm1082_vm2, %v6069_v35 }
0x11bb   : > { %5103 = vmatprep.mubr.msk.bf16.mxu1 %vm5487_vm1, %v5486_v2 }
0x127d   : > { %v2762_v36 = vpop.f32.mrb[52].mxu1 }
0x127e   : > { %v5063_v37 = vpop.f32.mrb[53].mxu1  ;;  %v2769_v38 = vsel %vm2768_vm5, %v2762_v36, -inf }
0x127f   : > { %2770 = vmax.xlane.f32.xlu0 %v2769_v38  ;;  %v2765_v39 = vpop.f32.mrb[54].mxu1 }
0x1280   : > { %v5064_v40 = vpop.f32.mrb[55].mxu1 }
0x1285   : > { %v2886_v41 = vpop.f32.mrb[56].mxu1 }
0x1286   : > { %v5077_v42 = vpop.f32.mrb[57].mxu1  ;;  %v2887_v19 = vadd.f32 %v4625_v17, %v2886_v41  ;;  %v4649_v41 = vld [vmem:[%s5737_s20 + $0x4] sm:$0xf] }
0x1287   : > { %v2889_v43 = vpop.f32.mrb[58].mxu1  ;;  %v3135_v42 = vsel %vm1324_vm4, %v4649_v41, 0 }
0x1288   : > { %v5078_v44 = vpop.f32.mrb[59].mxu1  ;;  %v3024_v20 = vpack.c.bf16 %v2887_v19, %v2887_v19 }
0x128d   : > { %v3017_v26 = vpop.f32.mrb[60].mxu1 }
0x128e   : > { %v5093_v28 = vpop.f32.mrb[61].mxu1 }
0x128f   : > { %v3020_v37 = vpop.f32.mrb[62].mxu1 }
0x1290   : > { %v5094_v38 = vpop.f32.mrb[63].mxu1  ;;  %v3021_v39 = vadd.f32 %v4643_v34, %v3020_v37 }
0x130c   : > { %v2771_v47 = vpop.xlane.xlu0 %2770 }
0x130d   : > { %v2772_v48 = vsub.f32 %v2762_v36, %v2771_v47  ;;  %v3018_v36 = vadd.f32 %v4643_v34, %v3017_v26 }
0x130f   : > { %v2773_v49 = vmul.f32 1.442695, %v2772_v48  ;;  %v3084_v40 = vpack.c.bf16 %v3021_v39, %v3018_v36  ;;  %v3181_v48 = vsel %vm1324_vm4, %v2826_v45, 0  ;;  %v4675_v39 = vld [vmem:[%s5732_s4 + $0xa] ss:$0 sm:$0xff] }
0x1310   : > { %v4681_v45 = vld [vmem:[%s5737_s20 + $0x8] sm:$0xf] }
0x1311   : > { %5370 = vpow2.f32 %v2773_v49  ;;  %5102 = vmatpush3.bf16.msra.mxu1 %v3084_v40  ;;  %v5334_v49 = vld [vmem:[%s5727_s26 + $0x60] sm:$0xff]  }
0x1312   : > { %5113 = vmatprep.subr.bf16.mxu1 %v5486_v2 }
0x131b   : > { %v5371_v50 = vpop.eup %5370 }
0x131c   : > { %v2775_v51 = vsel %vm2768_vm5, %v5371_v50, 0.0 }
0x131d   : > { %2776 = vadd.xlane.f32.xlu1 %v2775_v51  ;;  %v5335_v51 = vld [vmem:[%s5727_s26 + $0x68] sm:$0xff]  }
0x13aa   : > { %v2777_v58 = vpop.xlane.xlu1 %2776 }
0x13ab   : > { %5372 = vrcp.f32 %v2777_v58  ;;  %v5337_v58 = vld [vmem:[%s5727_s26 + $0x28] sm:$0xff]  }
0x13b5   : > { %v5373_v5 = vpop.eup %5372 }
0x13b6   : > { %v2779_v59 = vmul.f32 %v5373_v5, %v5371_v50 }
0x13b8   : > { %v2780_v61 = vpack.c.bf16 %v2779_v59, %v2779_v59 }
0x13ba   : > { %5068 = vmatmul.mubr.msk.bf16.vlgmr.msra.gmra.mrb[56].mxu0 %vm2768_vm5, %v2780_v61 }
0x13bb   : > { %5080 = vmatpush3.bf16.msra.mxu0 %v5330_v60  ;;  %5083 = vmatprep.mubr.msk.bf16.mxu0 %vm5487_vm1, %v5486_v2 }
0x13bc   : > { %5081 = vmatprep.subr.bf16.mxu0 %v5486_v2 }
0x13bf   : > { %5082 = vmatpush3.bf16.msra.mxu0 %v5331_v62  ;;  %v4666_v62 = vld [vmem:[%s5732_s4 + $0x6] ss:$0 sm:$0xff] }
0x13c0   : > { %5095 = vmatprep.subr.bf16.mxu0 %v5486_v2 }
0x13c2   : > { %5084 = vmatmul.mubr.msk.bf16.vlgmr.msra.gmra.mrb[60].mxu0 %vm1082_vm2, %v6020_v9 }
0x13c3   : > { %5097 = vmatprep.mubr.msk.bf16.mxu0 %vm5487_vm1, %v5486_v2 }
0x148d   : > { %v6091_v63 = vpop.f32.mrb[56].mxu0 }
0x148e   : > { %v5069_v0 = vpop.f32.mrb[57].mxu0  ;;  %v2825_v50 = vpack.c.bf16 %v6091_v63, %v6091_v63 }
0x148f   : > { %v2822_v3 = vpop.f32.mrb[58].mxu0 }
0x1490   : > { %v5070_v4 = vpop.f32.mrb[59].mxu0 }
0x1495   : > { %v2951_v8 = vpop.f32.mrb[60].mxu0 }
0x1496   : > { %v5085_v10 = vpop.f32.mrb[61].mxu0  ;;  %v2952_v11 = vadd.f32 %v4634_v7, %v2951_v8 }
0x1497   : > { %v2954_v1 = vpop.f32.mrb[62].mxu0 }
0x1498   : > { %v2955_v12 = vadd.f32 %v4634_v7, %v2954_v1  ;;  %v5086_v14 = vpop.f32.mrb[63].mxu0 }
0x149a   : > { %v3025_v16 = vpack.c.bf16 %v2955_v12, %v2952_v11 }
0x149c   : > { %v3030_v18 = vsel %vm1261_vm3, %v3025_v16, 0 }
0x149d   : > { %5096 = vmatpush3.bf16.xpose.msra.mxu0 %v3030_v18  ;;  %v4657_v18 = vld [vmem:[%s5732_s4 + $0x2] ss:$0 sm:$0xff] }
0x149e   : > { %5107 = vmatprep.subr.bf16.mxu0 %v5486_v2 }
0x14a4   : > { %5098 = vmatmul.mubr.msk.bf16.vlgmr.msra.gmra.mrb[64].mxu0 %vm1261_vm3, %v3024_v20 }
0x14a5   : > { %5109 = vmatprep.mubr.msk.bf16.mxu0 %vm5487_vm1, %v5486_v2  ;;  %5108 = vmatpush3.bf16.msra.mxu0 %v3135_v42 }
0x14a6   : > { %5119 = vmatprep.subr.bf16.mxu0 %v5486_v2 }
0x1577   : > { %v3066_v27 = vpop.f32.mrb[64].mxu0 }
0x1578   : > { %v5099_v6 = vpop.f32.mrb[65].mxu0  ;;  %v3072_v23 = vsel %vm2768_vm5, %v3066_v27, -inf }
0x1579   : > { %3073 = vmax.xlane.f32.xlu0 %v3072_v23  ;;  %v3069_v24 = vpop.f32.mrb[66].mxu0  ;;  %v5338_v23 = vld [vmem:[%s5727_s26 + $0xa0] sm:$0xff]  }
0x157a   : > { %v5100_v25 = vpop.f32.mrb[67].mxu0  ;;  %v5339_v24 = vld [vmem:[%s5727_s26 + $0xa8] sm:$0xff]  }
0x1606   : > { %v3074_v29 = vpop.xlane.xlu0 %3073 }
0x1607   : > { %v3075_v30 = vsub.f32 %v3066_v27, %v3074_v29 }
0x1609   : > { %v3076_v31 = vmul.f32 1.442695, %v3075_v30 }
0x160b   : > { %5374 = vpow2.f32 %v3076_v31 }
0x1615   : > { %v5375_v32 = vpop.eup %5374 }
0x1616   : > { %v3078_v33 = vsel %vm2768_vm5, %v5375_v32, 0.0 }
0x1617   : > { %3079 = vadd.xlane.f32.xlu1 %v3078_v33 }
0x16a4   : > { %v3080_v43 = vpop.xlane.xlu1 %3079 }
0x16a5   : > { %5376 = vrcp.f32 %v3080_v43 }
0x16af   : > { %v5377_v44 = vpop.eup %5376 }
0x16b0   : > { %v3082_v46 = vmul.f32 %v5377_v44, %v5375_v32 }
0x16b2   : > { %v3083_v47 = vpack.c.bf16 %v3082_v46, %v3082_v46  ;;  %v3531_v46 = vsel %vm1324_vm4, %v4681_v45, 0 }
0x16b4   : > { %5104 = vmatmul.mubr.msk.bf16.vlgmr.msra.gmra.mrb[64].mxu1 %vm2768_vm5, %v3083_v47 }
0x16b5   : > { %5114 = vmatpush3.bf16.msra.mxu1 %v3181_v48  ;;  %5115 = vmatprep.mubr.msk.bf16.mxu1 %vm5487_vm1, %v5486_v2 }
0x16b6   : > { %5127 = vmatprep.subr.bf16.mxu1 %v5486_v2 }
0x16bc   : > { %5116 = vmatmul.mubr.msk.bf16.vlgmr.msra.gmra.mrb[68].mxu1 %vm1261_vm3, %v2825_v50  ;;  %v5340_v50 = vld [vmem:[%s5727_s26 + $0x30] sm:$0xff]  }
0x16bd   : > { %5128 = vmatpush3.bf16.msra.mxu1 %v5334_v49  ;;  %5131 = vmatprep.mubr.msk.bf16.mxu1 %vm5487_vm1, %v5486_v2 }
0x16be   : > { %5129 = vmatprep.subr.bf16.mxu1 %v5486_v2 }
0x16c1   : > { %5130 = vmatpush3.bf16.msra.mxu1 %v5335_v51 }
0x16c2   : > { %5143 = vmatprep.subr.bf16.mxu1 %v5486_v2 }
0x16c4   : > { %5132 = vmatmul.mubr.msk.bf16.vlgmr.msra.gmra.mrb[72].mxu1 %vm1082_vm2, %v6020_v9 }
0x16c5   : > { %5145 = vmatprep.mubr.msk.bf16.mxu1 %vm5487_vm1, %v5486_v2 }
0x1787   : > { %v3122_v52 = vpop.f32.mrb[64].mxu1 }
0x1788   : > { %v3128_v54 = vpack.c.bf16 %v3122_v52, %v3122_v52  ;;  %v5105_v55 = vpop.f32.mrb[65].mxu1  ;;  %v5341_v52 = vld [vmem:[%s5727_s26 + $0x38] sm:$0xff]  }
0x1789   : > { %v3125_v56 = vpop.f32.mrb[66].mxu1 }
0x178a   : > { %v5106_v57 = vpop.f32.mrb[67].mxu1  ;;  %5110 = vmatmul.mubr.msk.bf16.vlgmr.msra.gmra.mrb[68].mxu0 %vm1261_vm3, %v3128_v54  ;;  %v5342_v54 = vld [vmem:[%s5727_s26 + $0x70] sm:$0xff]  }
0x178b   : > { %5120 = vmatpush3.bf16.msra.mxu0 %v5336_v53  ;;  %5123 = vmatprep.mubr.msk.bf16.mxu0 %vm5487_vm1, %v5486_v2 }
0x178c   : > { %5121 = vmatprep.subr.bf16.mxu0 %v5486_v2 }
0x178f   : > { %v3217_v5 = vpop.f32.mrb[68].mxu1  ;;  %5122 = vmatpush3.bf16.msra.mxu0 %v5337_v58 }
0x1790   : > { %v5117_v59 = vpop.f32.mrb[69].mxu1  ;;  %5135 = vmatprep.subr.bf16.mxu0 %v5486_v2 }
0x1791   : > { %v3220_v60 = vpop.f32.mrb[70].mxu1 }
0x1792   : > { %v5118_v61 = vpop.f32.mrb[71].mxu1  ;;  %5124 = vmatmul.mubr.msk.bf16.vlgmr.msra.gmra.mrb[72].mxu0 %vm1082_vm2, %v6044_v15 }
0x1793   : > { %5139 = vmatprep.mubr.msk.bf16.mxu0 %vm5487_vm1, %v5486_v2  ;;  %5136 = vmatpush3.bf16.msra.mxu0 %v5338_v23 }
0x1794   : > { %5137 = vmatprep.subr.bf16.mxu0 %v5486_v2 }
0x1797   : > { %v3347_v63 = vpop.f32.mrb[72].mxu1  ;;  %5138 = vmatpush3.bf16.msra.mxu0 %v5339_v24 }
0x1798   : > { %v3348_v0 = vadd.f32 %v4666_v62, %v3347_v63  ;;  %v5133_v3 = vpop.f32.mrb[73].mxu1  ;;  %5149 = vmatprep.subr.bf16.mxu0 %v5486_v2 }
0x1799   : > { %v3350_v4 = vpop.f32.mrb[74].mxu1 }
0x179a   : > { %v3351_v7 = vadd.f32 %v4666_v62, %v3350_v4  ;;  %v5134_v8 = vpop.f32.mrb[75].mxu1  ;;  %5140 = vmatmul.mubr.msk.bf16.vlgmr.msra.gmra.mrb[76].mxu0 %vm1082_vm2, %v6069_v35 }
0x179b   : > { %5151 = vmatprep.mubr.msk.bf16.mxu0 %vm5487_vm1, %v5486_v2 }
0x179c   : > { %v3421_v10 = vpack.c.bf16 %v3351_v7, %v3348_v0  ;;  %v4697_v7 = vld [vmem:[%s5732_s4 + $0x7] ss:$0 sm:$0xff] }
0x179e   : > { %v3426_v1 = vsel %vm1261_vm3, %v3421_v10, 0 }
0x179f   : > { %5144 = vmatpush3.bf16.xpose.msra.mxu1 %v3426_v1 }
0x17a0   : > { %5155 = vmatprep.subr.bf16.mxu1 %v5486_v2 }
0x185d   : > { %v3171_v11 = vpop.f32.mrb[68].mxu0 }
0x185e   : > { %v6148_v12 = vadd.f32 %v3217_v5, %v3171_v11  ;;  %v5111_v14 = vpop.f32.mrb[69].mxu0  ;;  %v5343_v5 = vld [vmem:[%s5727_s26 + $0x78] sm:$0xff]  }
0x185f   : > { %v3174_v16 = vpop.f32.mrb[70].mxu0 }
0x1860   : > { %v5112_v17 = vpop.f32.mrb[71].mxu0 }
0x1861   : > { %v4688_v17 = vld [vmem:[%s5732_s4 + $0x3] ss:$0 sm:$0xff] }
0x1865   : > { %v3282_v19 = vpop.f32.mrb[72].mxu0 }
0x1866   : > { %v3283_v20 = vadd.f32 %v4657_v18, %v3282_v19  ;;  %v5125_v21 = vpop.f32.mrb[73].mxu0 }
0x1867   : > { %v3285_v22 = vpop.f32.mrb[74].mxu0  ;;  %v5345_v21 = vld [vmem:[%s5727_s26 + $0xb8] sm:$0xff]  }
0x1868   : > { %v3420_v27 = vpack.c.bf16 %v3283_v20, %v3283_v20  ;;  %v5126_v6 = vpop.f32.mrb[75].mxu0  ;;  %v5344_v20 = vld [vmem:[%s5727_s26 + $0xb0] sm:$0xff]   ;;  %s6450_s26 = scalar_lea.vmem %s6347_s11, %s5682_s3 }
0x186a   : > { %5146 = vmatmul.mubr.msk.bf16.vlgmr.msra.gmra.mrb[76].mxu1 %vm1261_vm3, %v3420_v27 }
0x186b   : > { %5157 = vmatprep.mubr.msk.bf16.mxu1 %vm5487_vm1, %v5486_v2  ;;  %5156 = vmatpush3.bf16.msra.mxu1 %v3531_v46 }
0x186c   : > { %5169 = vmatprep.subr.bf16.mxu1 %v5486_v2 }
0x186d   : > { %v3413_v31 = vpop.f32.mrb[76].mxu0 }
0x186e   : > { %v5141_v32 = vpop.f32.mrb[77].mxu0  ;;  %v3414_v40 = vadd.f32 %v4675_v39, %v3413_v31 }
0x186f   : > { %v3416_v41 = vpop.f32.mrb[78].mxu0  ;;  %v4706_v32 = vld [vmem:[%s5732_s4 + $0xb] ss:$0 sm:$0xff]  ;;  %s6451_s4 = sld [smem:[#allocation22_spill]] }
0x1870   : > { %v5142_v42 = vpop.f32.mrb[79].mxu0  ;;  %v3417_v43 = vadd.f32 %v4675_v39, %v3416_v41  ;;  %v4712_v39 = vld [vmem:[%s5737_s20 + $0xc] sm:$0xf] }
0x1872   : > { %v3480_v44 = vpack.c.bf16 %v3417_v43, %v3414_v40  ;;  %v3882_v40 = vsel %vm1324_vm4, %v4712_v39, 0 }
0x1874   : > { %5150 = vmatpush3.bf16.msra.mxu0 %v3480_v44 }
0x1875   : > { %5161 = vmatprep.subr.bf16.mxu0 %v5486_v2 }
0x193d   : > { %v3462_v25 = vpop.f32.mrb[76].mxu1 }
0x193e   : > { %v5147_v26 = vpop.f32.mrb[77].mxu1  ;;  %v3468_v28 = vsel %vm2768_vm5, %v3462_v25, -inf }
0x193f   : > { %3469 = vmax.xlane.f32.xlu0 %v3468_v28  ;;  %v3465_v29 = vpop.f32.mrb[78].mxu1 }
0x1940   : > { %v5148_v30 = vpop.f32.mrb[79].mxu1 }
0x19cc   : > { %v3470_v33 = vpop.xlane.xlu0 %3469 }
0x19cd   : > { %v3471_v34 = vsub.f32 %v3462_v25, %v3470_v33 }
0x19cf   : > { %v3472_v36 = vmul.f32 1.442695, %v3471_v34 }
0x19d1   : > { %5378 = vpow2.f32 %v3472_v36 }
0x19db   : > { %v5379_v37 = vpop.eup %5378 }
0x19dc   : > { %v3474_v38 = vsel %vm2768_vm5, %v5379_v37, 0.0 }
0x19dd   : > { %3475 = vadd.xlane.f32.xlu1 %v3474_v38 }
0x1a6a   : > { %v3476_v47 = vpop.xlane.xlu1 %3475 }
0x1a6b   : > { %5380 = vrcp.f32 %v3476_v47 }
0x1a75   : > { %v5381_v48 = vpop.eup %5380 }
0x1a76   : > { %v3478_v49 = vmul.f32 %v5381_v48, %v5379_v37 }
0x1a78   : > { %v3479_v51 = vpack.c.bf16 %v3478_v49, %v3478_v49 }
0x1a7a   : > { %5152 = vmatmul.mubr.msk.bf16.vlgmr.msra.gmra.mrb[80].mxu0 %vm2768_vm5, %v3479_v51  ;;  %v4714_v51 = vld [vmem:[%s6450_s26] ss:$0 sm:$0xff] }
0x1a7b   : > { %5162 = vmatpush3.bf16.msra.mxu0 %v5340_v50  ;;  %5165 = vmatprep.mubr.msk.bf16.mxu0 %vm5487_vm1, %v5486_v2 }
0x1a7c   : > { %5163 = vmatprep.subr.bf16.mxu0 %v5486_v2 }
0x1a7f   : > { %5164 = vmatpush3.bf16.msra.mxu0 %v5341_v52 }
0x1a80   : > { %5177 = vmatprep.subr.bf16.mxu0 %v5486_v2 }
0x1a82   : > { %5166 = vmatmul.mubr.msk.bf16.vlgmr.msra.gmra.mrb[84].mxu0 %vm1082_vm2, %v6044_v15 }
0x1a83   : > { %5181 = vmatprep.mubr.msk.bf16.mxu0 %vm5487_vm1, %v5486_v2  ;;  %5178 = vmatpush3.bf16.msra.mxu0 %v5344_v20 }
0x1a84   : > { %5179 = vmatprep.subr.bf16.mxu0 %v5486_v2 }
0x1a87   : > { %5180 = vmatpush3.bf16.msra.mxu0 %v5345_v21 }
0x1a88   : > { %5191 = vmatprep.subr.bf16.mxu0 %v5486_v2 }
0x1a8a   : > { %5182 = vmatmul.mubr.msk.bf16.vlgmr.msra.gmra.mrb[88].mxu0 %vm1082_vm2, %v6069_v35 }
0x1a8b   : > { %5193 = vmatprep.mubr.msk.bf16.mxu0 %vm5487_vm1, %v5486_v2 }
0x1b4d   : > { %v3518_v53 = vpop.f32.mrb[80].mxu0 }
0x1b4e   : > { %v3524_v55 = vpack.c.bf16 %v3518_v53, %v3518_v53  ;;  %v5153_v56 = vpop.f32.mrb[81].mxu0 }
0x1b4f   : > { %v3521_v57 = vpop.f32.mrb[82].mxu0 }
0x1b50   : > { %v5154_v58 = vpop.f32.mrb[83].mxu0  ;;  %5158 = vmatmul.mubr.msk.bf16.vlgmr.msra.gmra.mrb[80].mxu1 %vm1261_vm3, %v3524_v55 }
0x1b51   : > { %5170 = vmatpush3.bf16.msra.mxu1 %v5342_v54  ;;  %5173 = vmatprep.mubr.msk.bf16.mxu1 %vm5487_vm1, %v5486_v2 }
0x1b52   : > { %5171 = vmatprep.subr.bf16.mxu1 %v5486_v2 }
0x1b55   : > { %v3633_v15 = vpop.f32.mrb[84].mxu0  ;;  %5172 = vmatpush3.bf16.msra.mxu1 %v5343_v5 }
0x1b56   : > { %v5167_v59 = vpop.f32.mrb[85].mxu0  ;;  %5185 = vmatprep.subr.bf16.mxu1 %v5486_v2  ;;  %v3634_v19 = vadd.f32 %v4688_v17, %v3633_v15  ;;  %v5350_v17 = vld [vmem:[%s6452_s8 + $0x10] sm:$0xff]  }
0x1b57   : > { %v3636_v60 = vpop.f32.mrb[86].mxu0 }
0x1b58   : > { %v5168_v61 = vpop.f32.mrb[87].mxu0  ;;  %5174 = vmatmul.mubr.msk.bf16.vlgmr.msra.gmra.mrb[84].mxu1 %vm1082_vm2, %v6020_v9 }
0x1b59   : > { %5187 = vmatprep.mubr.msk.bf16.mxu1 %vm5487_vm1, %v5486_v2 }
0x1b5d   : > { %v3764_v25 = vpop.f32.mrb[88].mxu0 }
0x1b5e   : > { %v5183_v26 = vpop.f32.mrb[89].mxu0  ;;  %v3765_v33 = vadd.f32 %v4706_v32, %v3764_v25 }
0x1b5f   : > { %v3767_v34 = vpop.f32.mrb[90].mxu0 }
0x1b60   : > { %v5184_v36 = vpop.f32.mrb[91].mxu0  ;;  %v3768_v37 = vadd.f32 %v4706_v32, %v3767_v34 }
0x1b62   : > { %v3831_v38 = vpack.c.bf16 %v3768_v37, %v3765_v33 }
0x1b64   : > { %5192 = vmatpush3.bf16.msra.mxu0 %v3831_v38 }
0x1b65   : > { %5203 = vmatprep.subr.bf16.mxu0 %v5486_v2 }
0x1c23   : > { %v3567_v62 = vpop.f32.mrb[80].mxu1 }
0x1c24   : > { %v6192_v63 = vadd.f32 %v3567_v62, %v6148_v12  ;;  %v5159_v0 = vpop.f32.mrb[81].mxu1  ;;  %v3771_v12 = vpack.c.bf16 %v3634_v19, %v3634_v19  ;;  %v5346_v62 = vld [vmem:[%s6451_s4] sm:$0xff]  }
0x1c25   : > { %v3570_v3 = vpop.f32.mrb[82].mxu1  ;;  %v5349_v0 = vld [vmem:[%s6452_s8 + $0x8] sm:$0xff]   ;;  %v4717_v19 = vld [vmem:[%s6456_s21] ss:$0 sm:$0xff] }
0x1c26   : > { %v5160_v4 = vpop.f32.mrb[83].mxu1 }
0x1c2b   : > { %v3698_v8 = vpop.f32.mrb[84].mxu1 }
0x1c2c   : > { %v5175_v10 = vpop.f32.mrb[85].mxu1  ;;  %v3699_v11 = vadd.f32 %v4697_v7, %v3698_v8 }
0x1c2d   : > { %v3701_v1 = vpop.f32.mrb[86].mxu1  ;;  %v4715_v10 = vld [vmem:[%s1032_s13] ss:$0 sm:$0xff] }
0x1c2e   : > { %v3702_v14 = vadd.f32 %v4697_v7, %v3701_v1  ;;  %v5176_v16 = vpop.f32.mrb[87].mxu1 }
0x1c30   : > { %v3772_v9 = vpack.c.bf16 %v3702_v14, %v3699_v11  ;;  %v4716_v11 = vld [vmem:[%s1035_s30] ss:$0 sm:$0xff] }
0x1c32   : > { %v3777_v18 = vsel %vm1261_vm3, %v3772_v9, 0 }
0x1c33   : > { %5186 = vmatpush3.bf16.xpose.msra.mxu1 %v3777_v18  ;;  %v5351_v18 = vld [vmem:[%s6452_s8 + $0x18] sm:$0xff]  }
0x1c34   : > { %5197 = vmatprep.subr.bf16.mxu1 %v5486_v2 }
0x1c3a   : > { %5188 = vmatmul.mubr.msk.bf16.vlgmr.msra.gmra.mrb[88].mxu1 %vm1261_vm3, %v3771_v12 }
0x1c3b   : > { %5199 = vmatprep.mubr.msk.bf16.mxu1 %vm5487_vm1, %v5486_v2  ;;  %5198 = vmatpush3.bf16.msra.mxu1 %v3882_v40 }
0x1c3c   : > { %5211 = vmatprep.subr.bf16.mxu1 %v5486_v2 }
0x1d0d   : > { %v3813_v22 = vpop.f32.mrb[88].mxu1 }
0x1d0e   : > { %v5189_v27 = vpop.f32.mrb[89].mxu1  ;;  %v3819_v6 = vsel %vm2768_vm5, %v3813_v22, -inf }
0x1d0f   : > { %3820 = vmax.xlane.f32.xlu0 %v3819_v6  ;;  %v3816_v23 = vpop.f32.mrb[90].mxu1 }
0x1d10   : > { %v5190_v24 = vpop.f32.mrb[91].mxu1 }
0x1d9c   : > { %v3821_v28 = vpop.xlane.xlu0 %3820 }
0x1d9d   : > { %v3822_v29 = vsub.f32 %v3813_v22, %v3821_v28 }
0x1d9f   : > { %v3823_v30 = vmul.f32 1.442695, %v3822_v29 }
0x1da1   : > { %5382 = vpow2.f32 %v3823_v30 }
0x1dab   : > { %v5383_v31 = vpop.eup %5382 }
0x1dac   : > { %v3825_v35 = vsel %vm2768_vm5, %v5383_v31, 0.0 }
0x1dad   : > { %3826 = vadd.xlane.f32.xlu1 %v3825_v35 }
0x1e3a   : > { %v3827_v41 = vpop.xlane.xlu1 %3826 }
0x1e3b   : > { %5384 = vrcp.f32 %v3827_v41  ;;  %v4727_v41 = vld [vmem:[%s1038_s19] ss:$0 sm:$0xff]  ;;  %s6465_s19 = sand.u32 1, %s6460_s18  }
0x1e3c   : > { %s4147_s10 = scalar_lea.sflag [#allocation3], %s6465_s19 }
0x1e45   : > { %v5385_v42 = vpop.eup %5384 }
0x1e46   : > { %v3829_v43 = vmul.f32 %v5385_v42, %v5383_v31 }
0x1e48   : > { %v3830_v44 = vpack.c.bf16 %v3829_v43, %v3829_v43  ;;  %v4728_v43 = vld [vmem:[%s1041_s5] ss:$0 sm:$0xff]  ;;  %s5488_s5 = smov [#allocation2]  }
0x1e49   : > { %s5394_s14 = sshll.u32 %s5488_s5, 4  ;;  %s5395_s14 = int_to_ptr.vmem [resolvable:$false] %s5394_s14 }
0x1e4a   : > { %5194 = vmatmul.mubr.msk.bf16.vlgmr.msra.gmra.mrb[92].mxu0 %vm2768_vm5, %v3830_v44  ;;  %s5396_s15 = scalar_lea.vmem %s5395_s14, 256 }
0x1e4b   : > { %5207 = vmatprep.mubr.msk.bf16.mxu0 %vm5487_vm1, %v5486_v2  ;;  %5204 = vmatpush3.bf16.msra.mxu0 %v5346_v62 }
0x1e4c   : > { %5205 = vmatprep.subr.bf16.mxu0 %v5486_v2 }
0x1f1d   : > { %v3869_v45 = vpop.f32.mrb[92].mxu0 }
0x1f1e   : > { %v3875_v46 = vpack.c.bf16 %v3869_v45, %v3869_v45  ;;  %v5195_v47 = vpop.f32.mrb[93].mxu0 }
0x1f1f   : > { %v3872_v48 = vpop.f32.mrb[94].mxu0 }
0x1f20   : > { %v5196_v49 = vpop.f32.mrb[95].mxu0  ;;  %5200 = vmatmul.mubr.msk.bf16.vlgmr.msra.gmra.mrb[92].mxu1 %vm1261_vm3, %v3875_v46 }
0x1f21   : > { %5219 = vmatprep.mubr.msk.bf16.mxu1 %vm5487_vm1, %v5486_v2 }
0x1ff3   : > { %v3918_v50 = vpop.f32.mrb[92].mxu1 }
0x1ff4   : > { %v3924_v52 = vadd.f32 %v3918_v50, %v6192_v63  ;;  %v5201_v53 = vpop.f32.mrb[93].mxu1  ;;  %v5347_v63 = vld [vmem:[%s6451_s4 + $0x8] sm:$0xff]   ;;  %s4730_s4 = sshll.u32 %s6459_s28, 7 }
0x1ff5   : > { %v3921_v54 = vpop.f32.mrb[94].mxu1  ;;  %5206 = vmatpush3.bf16.msra.mxu0 %v5347_v63  ;;  %s6279_s6 = scalar_lea.hbm %s6464_s24, %s4730_s4 }
0x1ff6   : > { %v3932_v55 = vadd.f32 %v4714_v51, %v3924_v52  ;;  %v5202_v56 = vpop.f32.mrb[95].mxu1 }
0x1ff8   : > { %v3933_v57 = vadd.f32 %v3932_v55, %v6040_v13  ;;  %v5348_v13 = vld [vmem:[%s6452_s8] sm:$0xff]   ;;  %s4160_s8 = sshll.u32 %s5787_s7, 4  ;;  %s6281_s8 = int_to_ptr.vmem [resolvable:$true] %s4160_s8 }
0x1ff9   : > { %5212 = vmatpush3.bf16.msra.mxu1 %v5348_v13  ;;  %s5390_s3 = scalar_lea.vmem %s6281_s8, 128  ;;  %p5397_p5 = scmp.lt.s32.totalorder %s6281_s8, %s5395_s14 }
0x1ffa   : > { %v3934_v58 = vsel %vm1082_vm2, %v3933_v57, 0.0  ;;  %5213 = vmatprep.subr.bf16.mxu1 %v5486_v2  ;;  %p5391_p1 = scmp.ne.s32.totalorder %s6281_s8, %s5390_s3  ;;  %p5398_p6 = scmp.lt.s32.totalorder %s5396_s15, %s5390_s3 }
0x1ffb   : > { %3935 = vadd.xlane.f32.xlu0 %v3934_v58 }
0x1ffc   : > { %p5392_p2 = pnand %p5391_p1, %p5653_p3  ;;  %p5399_p7 = por %p5398_p6, %p5397_p5 }
0x1ffd   : > { %5214 = vmatpush3.bf16.msra.mxu1 %v5349_v0 }
0x1ffe   : > { %5215 = vmatprep.subr.bf16.mxu1 %v5486_v2  ;;  %p5393_p4 = pneg %p5392_p2 }
0x2000   : > { %p5400_p8 = pnand %p5399_p7, %p5393_p4 }
0x2001   : > { %5216 = vmatpush3.bf16.msra.mxu1 %v5350_v17 }
0x2002   : > { %5217 = vmatprep.subr.bf16.mxu1 %v5486_v2  ;;  %v4721_v2 = vld [vmem:[%s6458_s1] ss:$0 sm:$0xff] }
0x2005   : > { %5218 = vmatpush3.bf16.msra.mxu1 %v5351_v18 }
0x2088   : > { %v3936_v5 = vpop.xlane.xlu0 %3935 }
0x2089   : > { %v3937_v15 = vmul.f32 0.03125, %v3936_v5 }
0x208b   : > { %v3938_v59 = vsub.f32 %v3933_v57, %v3937_v15 }
0x208d   : > { %v3939_v60 = vmul.f32 %v3938_v59, %v3938_v59 }
0x208f   : > { %v3940_v61 = vsel %vm1082_vm2, %v3939_v60, 0.0 }
0x2090   : > { %3941 = vadd.xlane.f32.xlu1 %v3940_v61 }
0x211d   : > { %v3942_v3 = vpop.xlane.xlu1 %3941 }
0x211e   : > { %v3943_v4 = vmul.f32 0.03125, %v3942_v3 }
0x2120   : > { %v3944_v7 = vadd.f32 1e-05, %v3943_v4 }
0x2122   : > { %5386 = vrsqrt.f32 %v3944_v7 }
0x212c   : > { %v5387_v8 = vpop.eup %5386 }
0x212d   : > { %v3946_v1 = vmul.f32 %v5387_v8, %v3938_v59 }
0x212f   : > { %v3954_v14 = vmul.f32 %v4715_v10, %v3946_v1 }
0x2131   : > { %v3962_v16 = vadd.f32 %v4716_v11, %v3954_v14 }
0x2133   : > { %v3963_v9 = vpack.c.bf16 %v3962_v16, %v3962_v16 }
0x2135   : > { %5208 = vmatmul.mubr.msk.bf16.vlgmr.msra.gmra.mrb[96].mxu0 %vm1082_vm2, %v3963_v9 }
0x2208   : > { %v4024_v12 = vpop.f32.mrb[96].mxu0 }
0x2209   : > { %v4025_v20 = vadd.f32 %v4717_v19, %v4024_v12  ;;  %v5209_v21 = vpop.f32.mrb[97].mxu0 }
0x220a   : > { %v4027_v22 = vpop.f32.mrb[98].mxu0 }
0x220b   : > { %v4030_v27 = vmax.f32 %v4025_v20, 0.0  ;;  %v5210_v6 = vpop.f32.mrb[99].mxu0 }
0x220d   : > { %v4031_v23 = vpack.c.bf16 %v4030_v27, %v4030_v27 }
0x220f   : > { %5220 = vmatmul.mubr.msk.bf16.vlgmr.msra.gmra.mrb[96].mxu1 %vm4071_vm6, %v4031_v23 }
0x22e2   : > { %v4109_v24 = vpop.f32.mrb[96].mxu1 }
0x22e3   : > { %v4110_v25 = vadd.f32 %v4721_v2, %v4109_v24  ;;  %v5221_v26 = vpop.f32.mrb[97].mxu1 }
0x22e4   : > { %v4112_v28 = vpop.f32.mrb[98].mxu1 }
0x22e5   : > { %v5222_v29 = vpop.f32.mrb[99].mxu1  ;;  %v4115_v30 = vadd.f32 %v4110_v25, %v3962_v16 }
0x22e7   : > { %v4116_v31 = vsel %vm1082_vm2, %v4115_v30, 0.0 }
0x22e8   : > { %4117 = vadd.xlane.f32.xlu0 %v4116_v31 }
0x2375   : > { %v4118_v35 = vpop.xlane.xlu0 %4117 }
0x2376   : > { %v4119_v32 = vmul.f32 0.03125, %v4118_v35 }
0x2378   : > { %v4120_v33 = vsub.f32 %v4115_v30, %v4119_v32 }
0x237a   : > { %v4121_v34 = vmul.f32 %v4120_v33, %v4120_v33 }
0x237c   : > { %v4122_v36 = vsel %vm1082_vm2, %v4121_v34, 0.0 }
0x237d   : > { %4123 = vadd.xlane.f32.xlu1 %v4122_v36 }
0x240a   : > { %v4124_v37 = vpop.xlane.xlu1 %4123 }
0x240b   : > { %v4125_v38 = vmul.f32 0.03125, %v4124_v37 }
0x240d   : > { %v4126_v39 = vadd.f32 1e-05, %v4125_v38 }
0x240f   : > { %5388 = vrsqrt.f32 %v4126_v39 }
0x2419   : > { %v5389_v40 = vpop.eup %5388 }
0x241a   : > { %v4128_v42 = vmul.f32 %v5389_v40, %v4120_v33 }
0x241c   : > { %v4136_v44 = vmul.f32 %v4727_v41, %v4128_v42 }
0x241e   : > { %v4144_v45 = vadd.f32 %v4728_v43, %v4136_v44 }
0x2420   : > { %4145 = vst.msk [vmem:[%s5787_s7] sm:$0xff] %vm1082_vm2, %v4144_v45 }
0x2421   : > { %5403 = shalt.err (!%p5400_p8)
}
0x2422   : > { %s5404_s7 = scalar_lea.hbm %s6279_s6, 128  ;;  %s5408_s21 = scalar_lea.hbm %s6464_s24, 256 }
0x2423   : > { %p5405_p10 = scmp.ne.s32.totalorder %s6279_s6, %s5404_s7  ;;  %p5409_p13 = scmp.lt.u32.totalorder %s6279_s6, %s6464_s24 }
0x2424   : > { %p5410_p0 = scmp.lt.u32.totalorder %s5408_s21, %s5404_s7  ;;  %p5412_p2 = scmp.lt.u32.totalorder %s5404_s7, %s6279_s6 }
0x2425   : > { %p5406_p11 = pnand %p5405_p10, %p5653_p3 }
0x2426   : > { %p5411_p1 = por %p5410_p0, %p5409_p13 }
0x2427   : > { %p5407_p12 = pneg %p5406_p11 }
0x2428   : > { %p5413_p4 = por %p5412_p2, %p5411_p1 }
0x242a   : > { %p5414_p5 = pnand %p5413_p4, %p5407_p12 }
0x242c   : > { %5417 = shalt.err (!%p5414_p5)
}
0x242d   : > { %5225 = dma.vmem_to_hbm [thread:$0]  (%p5653_p3), %s6281_s8, 128, %s6279_s6, %s4147_s10  }
0x242e PF: > { %s6466_s0 = sld [smem:[#allocation12_spill]]  ;;  %s6467_s1 = sld [smem:[#allocation5_spill]] }
0x2434   : > { %p5231_p6 = scmp.ge.s32.totalorder %s6466_s0, 2  ;;  %s4172_s18 = sand.u32 1, %s6467_s1  }
0x2435   : > { %s4173_s27 = scalar_lea.sflag [#allocation3], %s4172_s18 }
0x2436   : > { %p5228_p7 = pnand %p5231_p6, %p5663_p9 }
0x2438   : > { %5451 = dma.done.wait (!%p5228_p7), %s4173_s27, 128  }
0x2439   : > { %5453 = vsyncadd (!%p5228_p7), %s4173_s27, 4294967168  ;;  %s35_s1 = sadd.s32 1, %s6466_s0   ;;  %s6469_s3 = sld [smem:[#allocation6_spill]] }
0x243a   : > { %p32_p8 = scmp.ge.s32.totalorder %s35_s1, 6   ;;  %s6470_s28 = sld [smem:[#allocation7_spill]] }
0x243b   : > { %s6471_s29 = sld [smem:[#allocation17_spill]]  ;;  %s6472_s30 = sld [smem:[#allocation10_spill]] }
0x243c   : > { %s6473_s4 = sld [smem:[#allocation11_spill]]  ;;  %s6474_s0 = sld [smem:[#allocation13_spill]] }
0x243d   : > { %s6475_s23 = sld [smem:[#allocation15_spill]]  ;;  %34 = sbr.rel (!%p32_p8) target bundleno = 27 (0x1b), region = 260 }
0x2444   :  { %4178 = vsyncpa [#allocation3], 1 }
0x2445   :  { %4180 = vsyncpa [#allocation3 + $0x1], 1 }

</bundles_post_ra>
